<compile_context>
chip_gen: v6e
topology: v6e:2x2x1
jax: 0.10.0
libtpu: 0.0.40
codegen_flags: <defaults>
</compile_context>

<pallas_src>
import functools

import jax
import jax.numpy as jnp
from jax.experimental import pallas as pl
from jax.experimental.pallas import tpu as pltpu

POOL_SIZES = (4, 2, 1)      # SPP levels of the PyTorch module
LEAKY_SLOPE = 0.01          # F.leaky_relu default
BN_EPS = 1e-5               # nn.BatchNorm2d default


def _round_up(x, m):
    return (x + m - 1) // m * m


# ----------------------------- Pallas kernels ------------------------------

def _conv1_kernel(a_ref, w_ref, o_ref):
    """leaky_relu(a @ w); bf16 operands, f32 accumulation."""
    acc = jnp.dot(a_ref[...], w_ref[...], preferred_element_type=jnp.float32)
    acc = jnp.where(acc >= 0, acc, LEAKY_SLOPE * acc)
    o_ref[...] = acc.astype(o_ref.dtype)


def _conv2_bn_kernel(a_ref, w_ref, g_ref, b_ref, o_ref, *, eps):
    """leaky_relu(BatchNorm(a @ w)) with train-mode batch statistics, fused in
    the matmul epilogue (the whole (M, C) output is resident in one block)."""
    acc = jnp.dot(a_ref[...], w_ref[...], preferred_element_type=jnp.float32)
    mean = jnp.mean(acc, axis=0, keepdims=True)
    var = jnp.mean(jnp.square(acc - mean), axis=0, keepdims=True)  # biased, like PyTorch BN
    scale = g_ref[...] * jax.lax.rsqrt(var + eps)
    shift = b_ref[...] - mean * scale
    y = acc * scale + shift
    o_ref[...] = jnp.where(y >= 0, y, LEAKY_SLOPE * y).astype(o_ref.dtype)


def _conv3_spp_fc_kernel(a_ref, w_ref, fcw_ref, fcb_ref, o_ref, *, H, W, pool_sizes):
    """conv3 matmul -> spatial pyramid max-pool -> fc -> sigmoid, all fused.

    fcw_ref holds the fc weight re-laid-out as (O*P, C) where P = sum(k*k) and
    rows follow the pooled (level, ph*k+pw) order, so the fc reduces to a VPU
    multiply + XLU reduce against the (P, C) pooled block."""
    acc = jnp.dot(a_ref[...], w_ref[...], preferred_element_type=jnp.float32)  # (H*W, C)

    levels = []
    for k in pool_sizes:
        hw, ww = H // k, W // k
        if hw == 1 and ww == 1:
            levels.append(acc)                                   # identity pooling (k == H == W)
        elif k == 1:
            levels.append(jnp.max(acc, axis=0, keepdims=True))   # global max
        else:
            cells = []
            for ph in range(k):
                for pw in range(k):
                    m = None
                    for i in range(hw):
                        r0 = (ph * hw + i) * W + pw * ww
                        mm = jnp.max(acc[r0:r0 + ww, :], axis=0, keepdims=True)
                        m = mm if m is None else jnp.maximum(m, mm)
                    cells.append(m)
            levels.append(jnp.concatenate(cells, axis=0))
    pooled = jnp.concatenate(levels, axis=0)                     # (P, C)

    fcw = fcw_ref[...]                                           # (O*P, C)
    P = pooled.shape[0]
    O = fcw.shape[0] // P
    sums = [jnp.sum(pooled * fcw[o * P:(o + 1) * P, :], axis=0, keepdims=True)
            for o in range(O)]                                   # O x (1, C)
    per_out = jnp.concatenate(sums, axis=0)                      # (O, C)
    logits = jnp.sum(per_out, axis=1, keepdims=True) + fcb_ref[...]   # (O, 1)
    o_ref[...] = jax.nn.sigmoid(logits)


# ------------------------------ kernel wrappers -----------------------------

def conv1_matmul(a, w):
    M, K = a.shape
    _, N = w.shape
    # 2-way split over M so both v7x TensorCores get work (no-op on v5e/v6e).
    tm = min(_round_up(pl.cdiv(M, 2), 16), _round_up(M, 16))
    return pl.pallas_call(
        _conv1_kernel,
        out_shape=jax.ShapeDtypeStruct((M, N), jnp.bfloat16),
        grid=(pl.cdiv(M, tm),),
        in_specs=[pl.BlockSpec((tm, K), lambda i: (i, 0)),
                  pl.BlockSpec((K, N), lambda i: (0, 0))],
        out_specs=pl.BlockSpec((tm, N), lambda i: (i, 0)),
        compiler_params=pltpu.CompilerParams(dimension_semantics=("parallel",)),
    )(a, w)


def conv2_bn_lrelu(a, w, gamma, beta, eps=BN_EPS):
    M, K = a.shape
    _, N = w.shape
    return pl.pallas_call(
        functools.partial(_conv2_bn_kernel, eps=eps),
        out_shape=jax.ShapeDtypeStruct((M, N), jnp.bfloat16),
        grid=(1,),
        in_specs=[pl.BlockSpec((M, K), lambda i: (0, 0)),
                  pl.BlockSpec((K, N), lambda i: (0, 0)),
                  pl.BlockSpec((1, N), lambda i: (0, 0)),
                  pl.BlockSpec((1, N), lambda i: (0, 0))],
        out_specs=pl.BlockSpec((M, N), lambda i: (0, 0)),
        compiler_params=pltpu.CompilerParams(dimension_semantics=("arbitrary",)),
    )(a, w, gamma, beta)


def conv3_spp_fc(a, w, fc_w, fc_b, H, W, pool_sizes=POOL_SIZES):
    M, K = a.shape
    _, N = w.shape
    O = fc_b.shape[0]
    P = sum(k * k for k in pool_sizes)
    # TODO(synk): only the exact-tiling SPP case (H, W divisible by every level) is
    # implemented; the PyTorch `ceil(H // k)` + MaxPool2d padding path is unreachable here.
    for k in pool_sizes:
        assert H % k == 0 and W % k == 0
    assert M == H * W and fc_w.shape == (O * P, N)
    return pl.pallas_call(
        functools.partial(_conv3_spp_fc_kernel, H=H, W=W, pool_sizes=tuple(pool_sizes)),
        out_shape=jax.ShapeDtypeStruct((O, 1), jnp.float32),
        grid=(1,),
        in_specs=[pl.BlockSpec((M, K), lambda i: (0, 0)),
                  pl.BlockSpec((K, N), lambda i: (0, 0)),
                  pl.BlockSpec((O * P, N), lambda i: (0, 0)),
                  pl.BlockSpec((O, 1), lambda i: (0, 0))],
        out_specs=pl.BlockSpec((O, 1), lambda i: (0, 0)),
        compiler_params=pltpu.CompilerParams(dimension_semantics=("arbitrary",)),
    )(a, w, fc_w, fc_b)


# -------------------------------- JAX glue ----------------------------------

def extract_patches(x_nhwc, kh, kw, stride):
    """NHWC -> (N*OH*OW, Cin*kh*kw); feature order (cin, kh, kw), one XLA op."""
    p = jax.lax.conv_general_dilated_patches(
        x_nhwc, filter_shape=(kh, kw), window_strides=(stride, stride),
        padding="VALID", dimension_numbers=("NHWC", "HWIO", "NHWC"))
    n, oh, ow, f = p.shape
    return p.reshape(n * oh * ow, f), oh, ow


@jax.jit
def combine_forward(x_nchw, params):
    n = x_nchw.shape[0]
    assert n == 1  # spatial_pyramid_pool is called with num_sample=1 in the module
    x = jnp.transpose(x_nchw, (0, 2, 3, 1)).astype(jnp.bfloat16)   # NCHW -> NHWC, bf16

    # conv1 (5x5, stride 2, no bias) + leaky_relu
    a1, oh1, ow1 = extract_patches(x, 5, 5, 2)
    x1 = conv1_matmul(a1, params["w1"]).reshape(n, oh1, ow1, -1)

    # conv2 + BatchNorm2d(BN1, batch stats) + leaky_relu (fused kernel)
    a2, oh2, ow2 = extract_patches(x1, 5, 5, 2)
    x2 = conv2_bn_lrelu(a2, params["w2"], params["bn1_gamma"],
                        params["bn1_beta"]).reshape(n, oh2, ow2, -1)

    # conv3 + spatial pyramid pooling + fc1 + sigmoid (single fused kernel)
    a3, oh3, ow3 = extract_patches(x2, 5, 5, 2)
    out = conv3_spp_fc(a3, params["w3"], params["fc_w"], params["fc_b"], oh3, ow3)
    return out.reshape(1, -1)   # (1, 2)


# --------------------------- one-time parameter prep -------------------------

def conv_weight_to_matrix(w):
    """PyTorch OIHW (Cout, Cin, KH, KW) -> (Cin*KH*KW, Cout); rows ordered
    (cin, kh, kw) to match conv_general_dilated_patches' feature ordering."""
    cout, cin, kh, kw = w.shape
    return jnp.transpose(w, (1, 2, 3, 0)).reshape(cin * kh * kw, cout)


def rearrange_fc_weight(fc_w, channels, pool_sizes):
    """PyTorch Linear weight (O, C*sum k^2) with per-level feature order (c, ph, pw)
    -> (O * sum k^2, C) matching the kernel's pooled (cell, channel) layout."""
    o = fc_w.shape[0]
    parts, off = [], 0
    for k in pool_sizes:
        blk = fc_w[:, off:off + channels * k * k].reshape(o, channels, k * k)
        parts.append(jnp.transpose(blk, (0, 2, 1)))      # (O, k*k, C)
        off += channels * k * k
    w3d = jnp.concatenate(parts, axis=1)                 # (O, sum k^2, C)
    return w3d.reshape(o * w3d.shape[1], channels)


# ---------------------------------- main -------------------------------------

if __name__ == "__main__":
    input_nd, nf = 4, 64
    # Smallest input for which the conv stack yields a 4x4 map so SPP produces
    # 256*(16+4+1) = 5376 features, matching nn.Linear(5376, 2):
    # 53 -conv1-> 25 -conv2-> 11 -conv3-> 4
    H = W = 53

    key = jax.random.PRNGKey(0)
    ks = jax.random.split(key, 8)
    w1 = jax.random.normal(ks[0], (nf, input_nd, 5, 5), jnp.float32) * 0.05
    w2 = jax.random.normal(ks[1], (nf * 2, nf, 5, 5), jnp.float32) * 0.02
    w3 = jax.random.normal(ks[2], (nf * 4, nf * 2, 5, 5), jnp.float32) * 0.02
    bn1_gamma = 1.0 + 0.1 * jax.random.normal(ks[3], (nf * 2,), jnp.float32)
    bn1_beta = 0.1 * jax.random.normal(ks[4], (nf * 2,), jnp.float32)
    fc_w = jax.random.normal(ks[5], (2, 5376), jnp.float32) * 0.02   # PyTorch (out, in)
    fc_b = 0.1 * jax.random.normal(ks[6], (2,), jnp.float32)

    # All weight preprocessing hoisted here: runs once, never in the jitted forward.
    params = {
        "w1": conv_weight_to_matrix(w1).astype(jnp.bfloat16),
        "w2": conv_weight_to_matrix(w2).astype(jnp.bfloat16),
        "w3": conv_weight_to_matrix(w3).astype(jnp.bfloat16),
        "bn1_gamma": bn1_gamma.reshape(1, -1),
        "bn1_beta": bn1_beta.reshape(1, -1),
        "fc_w": rearrange_fc_weight(fc_w, nf * 4, POOL_SIZES),
        "fc_b": fc_b.reshape(-1, 1),
    }
    params = jax.device_put(params)

    x = jax.random.normal(ks[7], (1, input_nd, H, W), jnp.float32)
    out = combine_forward(x, params)
    out = jax.block_until_ready(out)
    assert out.shape == (1, 2) and out.dtype == jnp.float32
    print("KERNEL_OK")
</pallas_src>

<mosaic_0001>
module attributes {stable_mosaic.version = 11 : i64} {
  func.func @_conv1_kernel(%arg0: i32, %arg1: memref<320x100xbf16, #tpu.memory_space<vmem>>, %arg2: memref<100x64xbf16, #tpu.memory_space<vmem>>, %arg3: memref<320x64xbf16, #tpu.memory_space<vmem>>) attributes {dimension_semantics = [#tpu.dimension_semantics<parallel>], iteration_bounds = array<i64: 2>, scalar_prefetch = 0 : i64, scratch_operands = 0 : i64, tpu.core_type = #tpu.core_type<tc>, window_params = [{transform_indices = @transform_0, window_bounds = array<i64: 320, 100>}, {pipeline_mode = #tpu.pipeline_mode<synchronous>, transform_indices = @transform_1, window_bounds = array<i64: 100, 64>}, {transform_indices = @transform_2, window_bounds = array<i64: 320, 64>}]} {
    %c0 = arith.constant 0 : index
    %c0_0 = arith.constant 0 : index
    %0 = vector.load %arg1[%c0, %c0_0] : memref<320x100xbf16, #tpu.memory_space<vmem>>, vector<320x100xbf16>
    %c0_1 = arith.constant 0 : index
    %c0_2 = arith.constant 0 : index
    %1 = vector.load %arg2[%c0_1, %c0_2] : memref<100x64xbf16, #tpu.memory_space<vmem>>, vector<100x64xbf16>
    %cst = arith.constant dense<0.000000e+00> : vector<320x64xf32>
    %2 = tpu.matmul %0, %1, %cst {dimension_numbers = #tpu.dot_dimension_numbers<[1], [0], [0], [1], [0, 0, 1, 1], [], []>} : vector<320x100xbf16>, vector<100x64xbf16>, vector<320x64xf32> -> vector<320x64xf32>
    %cst_3 = arith.constant 0.000000e+00 : f32
    %3 = vector.broadcast %cst_3 : f32 to vector<320x64xf32>
    %4 = arith.cmpf oge, %2, %3 : vector<320x64xf32>
    %cst_4 = arith.constant 0.00999999977 : f32
    %5 = vector.broadcast %cst_4 : f32 to vector<320x64xf32>
    %6 = arith.mulf %5, %2 : vector<320x64xf32>
    %7 = arith.select %4, %2, %6 : vector<320x64xi1>, vector<320x64xf32>
    %8 = arith.truncf %7 : vector<320x64xf32> to vector<320x64xbf16>
    %c0_5 = arith.constant 0 : index
    %c0_6 = arith.constant 0 : index
    %9 = vector.load %arg3[%c0_5, %c0_6] : memref<320x64xbf16, #tpu.memory_space<vmem>>, vector<320x64xbf16>
    tpu.vector_store %arg3[%c0_5, %c0_6], %8 {strides = array<i32>} : memref<320x64xbf16, #tpu.memory_space<vmem>>, vector<320x64xbf16>,
    return
  }
  func.func @transform_0(%arg0: i32) -> (i32, i32) {
    %c0_i32 = arith.constant 0 : i32
    %c0_i32_0 = arith.constant 0 : i32
    return %arg0, %c0_i32 : i32, i32
  }
  func.func @transform_1(%arg0: i32) -> (i32, i32) {
    %c0_i32 = arith.constant 0 : i32
    %c0_i32_0 = arith.constant 0 : i32
    %c0_i32_1 = arith.constant 0 : i32
    return %c0_i32, %c0_i32_0 : i32, i32
  }
  func.func @transform_2(%arg0: i32) -> (i32, i32) {
    %c0_i32 = arith.constant 0 : i32
    %c0_i32_0 = arith.constant 0 : i32
    return %arg0, %c0_i32 : i32, i32
  }
}

module attributes {stable_mosaic.version = 11 : i64} {
  func.func @_conv2_bn_kernel(%arg0: i32, %arg1: memref<121x1600xbf16, #tpu.memory_space<vmem>>, %arg2: memref<1600x128xbf16, #tpu.memory_space<vmem>>, %arg3: memref<1x128xf32, #tpu.memory_space<vmem>>, %arg4: memref<1x128xf32, #tpu.memory_space<vmem>>, %arg5: memref<121x128xbf16, #tpu.memory_space<vmem>>) attributes {dimension_semantics = [#tpu.dimension_semantics<arbitrary>], iteration_bounds = array<i64: 1>, scalar_prefetch = 0 : i64, scratch_operands = 0 : i64, tpu.core_type = #tpu.core_type<tc>, window_params = [{pipeline_mode = #tpu.pipeline_mode<synchronous>, transform_indices = @transform_0, window_bounds = array<i64: 121, 1600>}, {pipeline_mode = #tpu.pipeline_mode<synchronous>, transform_indices = @transform_1, window_bounds = array<i64: 1600, 128>}, {pipeline_mode = #tpu.pipeline_mode<synchronous>, transform_indices = @transform_2, window_bounds = array<i64: 1, 128>}, {pipeline_mode = #tpu.pipeline_mode<synchronous>, transform_indices = @transform_3, window_bounds = array<i64: 1, 128>}, {pipeline_mode = #tpu.pipeline_mode<synchronous>, transform_indices = @transform_4, window_bounds = array<i64: 121, 128>}]} {
    %c0 = arith.constant 0 : index
    %c0_0 = arith.constant 0 : index
    %0 = vector.load %arg1[%c0, %c0_0] : memref<121x1600xbf16, #tpu.memory_space<vmem>>, vector<121x1600xbf16>
    %c0_1 = arith.constant 0 : index
    %c0_2 = arith.constant 0 : index
    %1 = vector.load %arg2[%c0_1, %c0_2] : memref<1600x128xbf16, #tpu.memory_space<vmem>>, vector<1600x128xbf16>
    %cst = arith.constant dense<0.000000e+00> : vector<121x128xf32>
    %2 = tpu.matmul %0, %1, %cst {dimension_numbers = #tpu.dot_dimension_numbers<[1], [0], [0], [1], [0, 0, 1, 1], [], []>} : vector<121x1600xbf16>, vector<1600x128xbf16>, vector<121x128xf32> -> vector<121x128xf32>
    %cst_3 = arith.constant dense<0.000000e+00> : vector<128xf32>
    %3 = vector.multi_reduction <add>, %2, %cst_3 [0] : vector<121x128xf32> to vector<128xf32>
    %4 = vector.shape_cast %3 : vector<128xf32> to vector<1x128xf32>
    %cst_4 = arith.constant 1.210000e+02 : f32
    %5 = vector.broadcast %cst_4 : f32 to vector<1x128xf32>
    %6 = arith.divf %4, %5 : vector<1x128xf32>
    %7 = vector.broadcast %6 : vector<1x128xf32> to vector<121x128xf32>
    %8 = arith.subf %2, %7 : vector<121x128xf32>
    %9 = arith.mulf %8, %8 : vector<121x128xf32>
    %cst_5 = arith.constant dense<0.000000e+00> : vector<128xf32>
    %10 = vector.multi_reduction <add>, %9, %cst_5 [0] : vector<121x128xf32> to vector<128xf32>
    %11 = vector.shape_cast %10 : vector<128xf32> to vector<1x128xf32>
    %cst_6 = arith.constant 1.210000e+02 : f32
    %12 = vector.broadcast %cst_6 : f32 to vector<1x128xf32>
    %13 = arith.divf %11, %12 : vector<1x128xf32>
    %c0_7 = arith.constant 0 : index
    %c0_8 = arith.constant 0 : index
    %14 = vector.load %arg3[%c0_7, %c0_8] : memref<1x128xf32, #tpu.memory_space<vmem>>, vector<1x128xf32>
    %cst_9 = arith.constant 9.99999974E-6 : f32
    %15 = vector.broadcast %cst_9 : f32 to vector<1x128xf32>
    %16 = arith.addf %13, %15 : vector<1x128xf32>
    %17 = math.rsqrt %16 : vector<1x128xf32>
    %18 = arith.mulf %14, %17 : vector<1x128xf32>
    %c0_10 = arith.constant 0 : index
    %c0_11 = arith.constant 0 : index
    %19 = vector.load %arg4[%c0_10, %c0_11] : memref<1x128xf32, #tpu.memory_space<vmem>>, vector<1x128xf32>
    %20 = arith.mulf %6, %18 : vector<1x128xf32>
    %21 = arith.subf %19, %20 : vector<1x128xf32>
    %22 = vector.broadcast %18 : vector<1x128xf32> to vector<121x128xf32>
    %23 = arith.mulf %2, %22 : vector<121x128xf32>
    %24 = vector.broadcast %21 : vector<1x128xf32> to vector<121x128xf32>
    %25 = arith.addf %23, %24 : vector<121x128xf32>
    %cst_12 = arith.constant 0.000000e+00 : f32
    %26 = vector.broadcast %cst_12 : f32 to vector<121x128xf32>
    %27 = arith.cmpf oge, %25, %26 : vector<121x128xf32>
    %cst_13 = arith.constant 0.00999999977 : f32
    %28 = vector.broadcast %cst_13 : f32 to vector<121x128xf32>
    %29 = arith.mulf %28, %25 : vector<121x128xf32>
    %30 = arith.select %27, %25, %29 : vector<121x128xi1>, vector<121x128xf32>
    %31 = arith.truncf %30 : vector<121x128xf32> to vector<121x128xbf16>
    %c0_14 = arith.constant 0 : index
    %c0_15 = arith.constant 0 : index
    %32 = vector.load %arg5[%c0_14, %c0_15] : memref<121x128xbf16, #tpu.memory_space<vmem>>, vector<121x128xbf16>
    tpu.vector_store %arg5[%c0_14, %c0_15], %31 {strides = array<i32>} : memref<121x128xbf16, #tpu.memory_space<vmem>>, vector<121x128xbf16>,
    return
  }
  func.func @transform_0(%arg0: i32) -> (i32, i32) {
    %c0_i32 = arith.constant 0 : i32
    %c0_i32_0 = arith.constant 0 : i32
    %c0_i32_1 = arith.constant 0 : i32
    return %c0_i32, %c0_i32_0 : i32, i32
  }
  func.func @transform_1(%arg0: i32) -> (i32, i32) {
    %c0_i32 = arith.constant 0 : i32
    %c0_i32_0 = arith.constant 0 : i32
    %c0_i32_1 = arith.constant 0 : i32
    return %c0_i32, %c0_i32_0 : i32, i32
  }
  func.func @transform_2(%arg0: i32) -> (i32, i32) {
    %c0_i32 = arith.constant 0 : i32
    %c0_i32_0 = arith.constant 0 : i32
    %c0_i32_1 = arith.constant 0 : i32
    return %c0_i32, %c0_i32_0 : i32, i32
  }
  func.func @transform_3(%arg0: i32) -> (i32, i32) {
    %c0_i32 = arith.constant 0 : i32
    %c0_i32_0 = arith.constant 0 : i32
    %c0_i32_1 = arith.constant 0 : i32
    return %c0_i32, %c0_i32_0 : i32, i32
  }
  func.func @transform_4(%arg0: i32) -> (i32, i32) {
    %c0_i32 = arith.constant 0 : i32
    %c0_i32_0 = arith.constant 0 : i32
    %c0_i32_1 = arith.constant 0 : i32
    return %c0_i32, %c0_i32_0 : i32, i32
  }
}

module attributes {stable_mosaic.version = 11 : i64} {
  func.func @_conv3_spp_fc_kernel(%arg0: i32, %arg1: memref<16x3200xbf16, #tpu.memory_space<vmem>>, %arg2: memref<3200x256xbf16, #tpu.memory_space<vmem>>, %arg3: memref<42x256xf32, #tpu.memory_space<vmem>>, %arg4: memref<2x1xf32, #tpu.memory_space<vmem>>, %arg5: memref<2x1xf32, #tpu.memory_space<vmem>>) attributes {dimension_semantics = [#tpu.dimension_semantics<arbitrary>], iteration_bounds = array<i64: 1>, scalar_prefetch = 0 : i64, scratch_operands = 0 : i64, tpu.core_type = #tpu.core_type<tc>, window_params = [{pipeline_mode = #tpu.pipeline_mode<synchronous>, transform_indices = @transform_0, window_bounds = array<i64: 16, 3200>}, {pipeline_mode = #tpu.pipeline_mode<synchronous>, transform_indices = @transform_1, window_bounds = array<i64: 3200, 256>}, {pipeline_mode = #tpu.pipeline_mode<synchronous>, transform_indices = @transform_2, window_bounds = array<i64: 42, 256>}, {pipeline_mode = #tpu.pipeline_mode<synchronous>, transform_indices = @transform_3, window_bounds = array<i64: 2, 1>}, {pipeline_mode = #tpu.pipeline_mode<synchronous>, transform_indices = @transform_4, window_bounds = array<i64: 2, 1>}]} {
    %c0 = arith.constant 0 : index
    %c0_0 = arith.constant 0 : index
    %0 = vector.load %arg1[%c0, %c0_0] : memref<16x3200xbf16, #tpu.memory_space<vmem>>, vector<16x3200xbf16>
    %c0_1 = arith.constant 0 : index
    %c0_2 = arith.constant 0 : index
    %1 = vector.load %arg2[%c0_1, %c0_2] : memref<3200x256xbf16, #tpu.memory_space<vmem>>, vector<3200x256xbf16>
    %cst = arith.constant dense<0.000000e+00> : vector<16x256xf32>
    %2 = tpu.matmul %0, %1, %cst {dimension_numbers = #tpu.dot_dimension_numbers<[1], [0], [0], [1], [0, 0, 1, 1], [], []>} : vector<16x3200xbf16>, vector<3200x256xbf16>, vector<16x256xf32> -> vector<16x256xf32>
    %3 = vector.extract_strided_slice %2 {offsets = [0, 0], sizes = [2, 256], strides = [1, 1]} : vector<16x256xf32> to vector<2x256xf32>
    %cst_3 = arith.constant dense<0xFF800000> : vector<256xf32>
    %4 = vector.multi_reduction <maximumf>, %3, %cst_3 [0] : vector<2x256xf32> to vector<256xf32>
    %5 = vector.shape_cast %4 : vector<256xf32> to vector<1x256xf32>
    %6 = vector.extract_strided_slice %2 {offsets = [4, 0], sizes = [2, 256], strides = [1, 1]} : vector<16x256xf32> to vector<2x256xf32>
    %cst_4 = arith.constant dense<0xFF800000> : vector<256xf32>
    %7 = vector.multi_reduction <maximumf>, %6, %cst_4 [0] : vector<2x256xf32> to vector<256xf32>
    %8 = vector.shape_cast %7 : vector<256xf32> to vector<1x256xf32>
    %9 = arith.maximumf %5, %8 : vector<1x256xf32>
    %10 = vector.extract_strided_slice %2 {offsets = [2, 0], sizes = [2, 256], strides = [1, 1]} : vector<16x256xf32> to vector<2x256xf32>
    %cst_5 = arith.constant dense<0xFF800000> : vector<256xf32>
    %11 = vector.multi_reduction <maximumf>, %10, %cst_5 [0] : vector<2x256xf32> to vector<256xf32>
    %12 = vector.shape_cast %11 : vector<256xf32> to vector<1x256xf32>
    %13 = vector.extract_strided_slice %2 {offsets = [6, 0], sizes = [2, 256], strides = [1, 1]} : vector<16x256xf32> to vector<2x256xf32>
    %cst_6 = arith.constant dense<0xFF800000> : vector<256xf32>
    %14 = vector.multi_reduction <maximumf>, %13, %cst_6 [0] : vector<2x256xf32> to vector<256xf32>
    %15 = vector.shape_cast %14 : vector<256xf32> to vector<1x256xf32>
    %16 = arith.maximumf %12, %15 : vector<1x256xf32>
    %17 = vector.extract_strided_slice %2 {offsets = [8, 0], sizes = [2, 256], strides = [1, 1]} : vector<16x256xf32> to vector<2x256xf32>
    %cst_7 = arith.constant dense<0xFF800000> : vector<256xf32>
    %18 = vector.multi_reduction <maximumf>, %17, %cst_7 [0] : vector<2x256xf32> to vector<256xf32>
    %19 = vector.shape_cast %18 : vector<256xf32> to vector<1x256xf32>
    %20 = vector.extract_strided_slice %2 {offsets = [12, 0], sizes = [2, 256], strides = [1, 1]} : vector<16x256xf32> to vector<2x256xf32>
    %cst_8 = arith.constant dense<0xFF800000> : vector<256xf32>
    %21 = vector.multi_reduction <maximumf>, %20, %cst_8 [0] : vector<2x256xf32> to vector<256xf32>
    %22 = vector.shape_cast %21 : vector<256xf32> to vector<1x256xf32>
    %23 = arith.maximumf %19, %22 : vector<1x256xf32>
    %24 = vector.extract_strided_slice %2 {offsets = [10, 0], sizes = [2, 256], strides = [1, 1]} : vector<16x256xf32> to vector<2x256xf32>
    %cst_9 = arith.constant dense<0xFF800000> : vector<256xf32>
    %25 = vector.multi_reduction <maximumf>, %24, %cst_9 [0] : vector<2x256xf32> to vector<256xf32>
    %26 = vector.shape_cast %25 : vector<256xf32> to vector<1x256xf32>
    %27 = vector.extract_strided_slice %2 {offsets = [14, 0], sizes = [2, 256], strides = [1, 1]} : vector<16x256xf32> to vector<2x256xf32>
    %cst_10 = arith.constant dense<0xFF800000> : vector<256xf32>
    %28 = vector.multi_reduction <maximumf>, %27, %cst_10 [0] : vector<2x256xf32> to vector<256xf32>
    %29 = vector.shape_cast %28 : vector<256xf32> to vector<1x256xf32>
    %30 = arith.maximumf %26, %29 : vector<1x256xf32>
    %31 = tpu.concatenate %9, %16, %23, %30 in 0 : vector<1x256xf32>, vector<1x256xf32>, vector<1x256xf32>, vector<1x256xf32> -> vector<4x256xf32>
    %cst_11 = arith.constant dense<0xFF800000> : vector<256xf32>
    %32 = vector.multi_reduction <maximumf>, %2, %cst_11 [0] : vector<16x256xf32> to vector<256xf32>
    %33 = vector.shape_cast %32 : vector<256xf32> to vector<1x256xf32>
    %34 = tpu.concatenate %2, %31, %33 in 0 : vector<16x256xf32>, vector<4x256xf32>, vector<1x256xf32> -> vector<21x256xf32>
    %c0_12 = arith.constant 0 : index
    %c0_13 = arith.constant 0 : index
    %35 = vector.load %arg3[%c0_12, %c0_13] : memref<42x256xf32, #tpu.memory_space<vmem>>, vector<42x256xf32>
    %36 = vector.extract_strided_slice %35 {offsets = [0, 0], sizes = [21, 256], strides = [1, 1]} : vector<42x256xf32> to vector<21x256xf32>
    %37 = arith.mulf %34, %36 : vector<21x256xf32>
    %cst_14 = arith.constant dense<0.000000e+00> : vector<256xf32>
    %38 = vector.multi_reduction <add>, %37, %cst_14 [0] : vector<21x256xf32> to vector<256xf32>
    %39 = vector.shape_cast %38 : vector<256xf32> to vector<1x256xf32>
    %40 = vector.extract_strided_slice %35 {offsets = [21, 0], sizes = [21, 256], strides = [1, 1]} : vector<42x256xf32> to vector<21x256xf32>
    %41 = arith.mulf %34, %40 : vector<21x256xf32>
    %cst_15 = arith.constant dense<0.000000e+00> : vector<256xf32>
    %42 = vector.multi_reduction <add>, %41, %cst_15 [0] : vector<21x256xf32> to vector<256xf32>
    %43 = vector.shape_cast %42 : vector<256xf32> to vector<1x256xf32>
    %44 = tpu.concatenate %39, %43 in 0 : vector<1x256xf32>, vector<1x256xf32> -> vector<2x256xf32>
    %cst_16 = arith.constant dense<0.000000e+00> : vector<2xf32>
    %45 = vector.multi_reduction <add>, %44, %cst_16 [1] : vector<2x256xf32> to vector<2xf32>
    %46 = vector.shape_cast %45 : vector<2xf32> to vector<2x1xf32>
    %c0_17 = arith.constant 0 : index
    %c0_18 = arith.constant 0 : index
    %47 = vector.load %arg4[%c0_17, %c0_18] : memref<2x1xf32, #tpu.memory_space<vmem>>, vector<2x1xf32>
    %48 = arith.addf %46, %47 : vector<2x1xf32>
    %49 = arith.negf %48 : vector<2x1xf32>
    %50 = math.exp %49 : vector<2x1xf32>
    %cst_19 = arith.constant 1.000000e+00 : f32
    %51 = vector.broadcast %cst_19 : f32 to vector<2x1xf32>
    %52 = arith.addf %51, %50 : vector<2x1xf32>
    %53 = arith.divf %51, %52 : vector<2x1xf32>
    %c0_20 = arith.constant 0 : index
    %c0_21 = arith.constant 0 : index
    %54 = vector.load %arg5[%c0_20, %c0_21] : memref<2x1xf32, #tpu.memory_space<vmem>>, vector<2x1xf32>
    tpu.vector_store %arg5[%c0_20, %c0_21], %53 {strides = array<i32>} : memref<2x1xf32, #tpu.memory_space<vmem>>, vector<2x1xf32>,
    return
  }
  func.func @transform_0(%arg0: i32) -> (i32, i32) {
    %c0_i32 = arith.constant 0 : i32
    %c0_i32_0 = arith.constant 0 : i32
    %c0_i32_1 = arith.constant 0 : i32
    return %c0_i32, %c0_i32_0 : i32, i32
  }
  func.func @transform_1(%arg0: i32) -> (i32, i32) {
    %c0_i32 = arith.constant 0 : i32
    %c0_i32_0 = arith.constant 0 : i32
    %c0_i32_1 = arith.constant 0 : i32
    return %c0_i32, %c0_i32_0 : i32, i32
  }
  func.func @transform_2(%arg0: i32) -> (i32, i32) {
    %c0_i32 = arith.constant 0 : i32
    %c0_i32_0 = arith.constant 0 : i32
    %c0_i32_1 = arith.constant 0 : i32
    return %c0_i32, %c0_i32_0 : i32, i32
  }
  func.func @transform_3(%arg0: i32) -> (i32, i32) {
    %c0_i32 = arith.constant 0 : i32
    %c0_i32_0 = arith.constant 0 : i32
    %c0_i32_1 = arith.constant 0 : i32
    return %c0_i32, %c0_i32_0 : i32, i32
  }
  func.func @transform_4(%arg0: i32) -> (i32, i32) {
    %c0_i32 = arith.constant 0 : i32
    %c0_i32_0 = arith.constant 0 : i32
    %c0_i32_1 = arith.constant 0 : i32
    return %c0_i32, %c0_i32_0 : i32, i32
  }
}

</mosaic_0001>

<bundles_post_ra>
// kernel: combine_forward.3
= control target key start
LH: loop header
LB: loop body
LE: loop exit
PB: predicated region body
PF: predicated region fallthrough
CT: control target
= control target key end

     0   :  { %s1777_s9 = smov 0   ;;  %s1779_s10 = smov 0   ;;  %s2106_s0 = inlined_call_operand.vmem [shape: bf16[625,100], index: 0, kind: input, shape index: {}]   ;;  %s2107_s1 = inlined_call_operand.vmem [shape: bf16[100,64], index: 1, kind: input, shape index: {}]   ;;  %s2108_s2 = inlined_call_operand.vmem [shape: bf16[625,64], index: 2, kind: output, shape index: {}]  }
   0x1   :  { %s1781_s11 = smov 0  }
   0x2 LB: > { %s1790_s12 = sadd.s32 4294967295, %s1728_s11   ;;  %s1792_s13 = sadd.s32 1, %s1728_s11   ;;  %s1728_s11 = sphi %s1781_s11, %s2115_s11   ;;  %s1724_s10 = sphi %s1779_s10, %s2114_s10   ;;  %s1720_s9 = sphi %s1777_s9, %s2113_s9  }
   0x3   : > { %s63_s14 = ssub.s32 %s1728_s11, %s1792_s13  ;;  %s66_s15 = sadd.s32 1, %s1724_s10 }
   0x4   : > { %p64_p0 = scmp.eq.s32.totalorder %s63_s14, 0  ;;  %p76_p1 = scmp.ne.s32.totalorder %s1724_s10, %s1720_s9 }
   0x5   : > { %p77_p2 = scmp.eq.s32.totalorder %s1790_s12, 1  ;;  %p1314_p3 = scmp.ge.s32.totalorder %s1728_s11, 1 }
   0x6   : > { %s1800_s16 = scalar_select %p64_p0, %s1724_s10, %s66_s15  }
   0x7   : > { %p1802_p4 = por %p77_p2, %p76_p1  ;;  %p121_p5 = scmp.lt.s32.totalorder %s1728_s11, 3 }
   0x9   : > { %p122_p6 = pnand %p1314_p3, %p121_p5 }
   0xa   : > { %s1813_s22 = smul.u32 (!%p122_p6), 40, %s1790_s12  ;;  %s143_s14 = sand.u32 (!%p122_p6), 1, %s1720_s9  }
   0xb   : > { %125 = sbr.rel (%p122_p6) target bundleno = 363 (0x16b), region = 28 }
   0xc   : > { %p151_p7 = scmp.lt.s32.totalorder (!%p122_p6), %s1813_s22, 78  ;;  %s1553_s15 = smul.u32 (!%p122_p6), 160, %s143_s14 }
   0xe   : > { %s1878_s9 = scalar_lea.vmem (!%p122_p6), [#allocation2], %s1553_s15  }
  0x10   : > { %v1643_v0 = vld [vmem:[%s2107_s1 + $0x30] ss:$0 sps:$4 sm:$0x33]   ;;  %vm419_vm0 = vcmask 1041408   ;;  %v1644_v1 = vld [vmem:[%s2107_s1 + $0x28] sm:$0xff]   ;;  %v1645_v3 = vld [vmem:[%s2107_s1 + $0x20] sm:$0xff]  }
  0x11   : > { %1551 = vmatprep.subr.msk.bf16.mxu0 %vm419_vm0, %v1643_v0  ;;  %1552 = vmatprep.subr.msk.bf16.mxu1 %vm419_vm0, %v1643_v0  ;;  %v421_v2 = vsel %vm419_vm0, %v1643_v0, 0  ;;  %s152_s25 = scalar_select %p151_p7, %s1813_s22, 78  ;;  %v1646_v4 = vld [vmem:[%s2107_s1 + $0x18] sm:$0xff]   ;;  %vm358_vm1 = vcmask 818176   ;;  %v1647_v7 = vld [vmem:[%s2107_s1 + $0x10] sm:$0xff]   ;;  %v1648_v8 = vld [vmem:[%s2107_s1 + $0x8] sm:$0xff]  }
  0x12   : > { %1484 = vmatpush3.bf16.msra.mxu0 %v421_v2  ;;  %1544 = vmatpush3.bf16.msra.mxu1 %v421_v2  ;;  %v1649_v9 = vld [vmem:[%s2107_s1] sm:$0xff]   ;;  %vm896_vm4 = vcmask 519168   ;;  %s945_s18 = ssub.s32 (%p1802_p4), 79, %s1813_s22  ;;  %s1455_s19 = smul.u32 (%p1802_p4), 160, %s1790_s12 }
  0x13   : > { %1485 = vmatprep.subr.bf16.mxu0 %v1644_v1  ;;  %1538 = vmatprep.subr.bf16.mxu1 %v1644_v1  ;;  %s1315_s26 = sshll.u32 %s152_s25, 2  ;;  %p946_p8 = scmp.lt.s32.totalorder (%p1802_p4), %s945_s18, 40 }
  0x14   : > { %s1826_s3 = scalar_lea.vmem %s2106_s0, %s1315_s26  ;;  %s1967_s23 = scalar_lea.vmem (%p1802_p4), %s2108_s2, %s1455_s19  }
  0x15   : > { %v1650_v5 = vld [vmem:[%s1826_s3] sm:$0xff]   ;;  %v1651_v6 = vld [vmem:[%s1826_s3 + $0x50] sm:$0xff]   ;;  %v1652_v10 = vld [vmem:[%s1826_s3 + $0x8] sm:$0xff]  }
  0x16   : > { %1486 = vmatpush3.bf16.msra.mxu0 %v1644_v1  ;;  %1545 = vmatpush3.bf16.msra.mxu1 %v1644_v1  ;;  %v1653_v11 = vld [vmem:[%s1826_s3 + $0x58] sm:$0xff]   ;;  %v1654_v12 = vld [vmem:[%s1826_s3 + $0x10] sm:$0xff]   ;;  %v1655_v13 = vld [vmem:[%s1826_s3 + $0x60] sm:$0xff]  }
  0x17   : > { %1487 = vmatprep.subr.bf16.mxu0 %v1645_v3  ;;  %1539 = vmatprep.subr.bf16.mxu1 %v1645_v3  ;;  %v1656_v14 = vld [vmem:[%s1826_s3 + $0x18] sm:$0xff]   ;;  %v1657_v15 = vld [vmem:[%s1826_s3 + $0x68] sm:$0xff]   ;;  %v1658_v16 = vld [vmem:[%s1826_s3 + $0x20] sm:$0xff]  }
  0x18   : > { %1497 = vmatprep.mubr.msk.bf16.mxu0 %vm358_vm1, %v1650_v5  ;;  %1517 = vmatprep.mubr.msk.bf16.mxu1 %vm358_vm1, %v1651_v6  ;;  %v1659_v17 = vld [vmem:[%s1826_s3 + $0x70] sm:$0xff]   ;;  %v1660_v18 = vld [vmem:[%s1826_s3 + $0x28] sm:$0xff]   ;;  %v1661_v19 = vld [vmem:[%s1826_s3 + $0x78] sm:$0xff]  }
  0x19   : > { %v1662_v20 = vld [vmem:[%s1826_s3 + $0x30] sm:$0xff]   ;;  %v1663_v21 = vld [vmem:[%s1826_s3 + $0x80] sm:$0xff]   ;;  %v1664_v22 = vld [vmem:[%s1826_s3 + $0x38] sm:$0xff]  }
  0x1a   : > { %1488 = vmatpush3.bf16.msra.mxu0 %v1645_v3  ;;  %1546 = vmatpush3.bf16.msra.mxu1 %v1645_v3  ;;  %v1665_v23 = vld [vmem:[%s1826_s3 + $0x88] sm:$0xff]   ;;  %v1666_v24 = vld [vmem:[%s1826_s3 + $0x40] sm:$0xff]   ;;  %v1667_v25 = vld [vmem:[%s1826_s3 + $0x90] sm:$0xff]  }
  0x1b   : > { %1489 = vmatprep.subr.bf16.mxu0 %v1646_v4  ;;  %1540 = vmatprep.subr.bf16.mxu1 %v1646_v4  ;;  %v1668_v26 = vld [vmem:[%s1826_s3 + $0x48] sm:$0xff]   ;;  %v1669_v27 = vld [vmem:[%s1826_s3 + $0x98] sm:$0xff]  }
  0x1e   : > { %1490 = vmatpush3.bf16.msra.mxu0 %v1646_v4  ;;  %1547 = vmatpush3.bf16.msra.mxu1 %v1646_v4 }
  0x1f   : > { %1491 = vmatprep.subr.bf16.mxu0 %v1647_v7  ;;  %1541 = vmatprep.subr.bf16.mxu1 %v1647_v7 }
  0x22   : > { %1492 = vmatpush3.bf16.msra.mxu0 %v1647_v7  ;;  %1548 = vmatpush3.bf16.msra.mxu1 %v1647_v7 }
  0x23   : > { %1493 = vmatprep.subr.bf16.mxu0 %v1648_v8  ;;  %1542 = vmatprep.subr.bf16.mxu1 %v1648_v8 }
  0x26   : > { %1494 = vmatpush3.bf16.msra.mxu0 %v1648_v8  ;;  %1549 = vmatpush3.bf16.msra.mxu1 %v1648_v8 }
  0x27   : > { %1495 = vmatprep.subr.bf16.mxu0 %v1649_v9  ;;  %1543 = vmatprep.subr.bf16.mxu1 %v1649_v9 }
  0x2a   : > { %1496 = vmatpush3.bf16.msra.mxu0 %v1649_v9  ;;  %1550 = vmatpush3.bf16.msra.mxu1 %v1649_v9 }
  0x2d   : > { %1498 = vmatmul.mubr.msk.bf16.vlgmr.msra.gmra.mxu0 %vm358_vm1, %v1652_v10  ;;  %1518 = vmatmul.mubr.msk.bf16.vlgmr.msra.gmra.mxu1 %vm358_vm1, %v1653_v11 }
  0x2e   : > { %1501 = vmatprep.mubr.msk.bf16.mxu0 %vm358_vm1, %v1654_v12  ;;  %1521 = vmatprep.mubr.msk.bf16.mxu1 %vm358_vm1, %v1655_v13 }
  0x35   : > { %1502 = vmatmul.mubr.msk.bf16.gmra.mxu0 %vm358_vm1, %v1656_v14  ;;  %1522 = vmatmul.mubr.msk.bf16.gmra.mxu1 %vm358_vm1, %v1657_v15 }
  0x36   : > { %1505 = vmatprep.mubr.msk.bf16.mxu0 %vm358_vm1, %v1658_v16  ;;  %1525 = vmatprep.mubr.msk.bf16.mxu1 %vm358_vm1, %v1659_v17 }
  0x3d   : > { %1506 = vmatmul.mubr.msk.bf16.gmra.mxu0 %vm358_vm1, %v1660_v18  ;;  %1526 = vmatmul.mubr.msk.bf16.gmra.mxu1 %vm358_vm1, %v1661_v19 }
  0x3e   : > { %1509 = vmatprep.mubr.msk.bf16.mxu0 %vm358_vm1, %v1662_v20  ;;  %1529 = vmatprep.mubr.msk.bf16.mxu1 %vm358_vm1, %v1663_v21 }
  0x45   : > { %1510 = vmatmul.mubr.msk.bf16.gmra.mxu0 %vm358_vm1, %v1664_v22  ;;  %1530 = vmatmul.mubr.msk.bf16.gmra.mxu1 %vm358_vm1, %v1665_v23 }
  0x46   : > { %1513 = vmatprep.mubr.msk.bf16.mxu0 %vm358_vm1, %v1666_v24  ;;  %1533 = vmatprep.mubr.msk.bf16.mxu1 %vm358_vm1, %v1667_v25 }
  0x4d   : > { %1514 = vmatmul.mubr.msk.bf16.gmra.mxu0 %vm358_vm1, %v1668_v26  ;;  %1534 = vmatmul.mubr.msk.bf16.gmra.mxu1 %vm358_vm1, %v1669_v27 }
  0xed   : > { %v1499_v28 = vpop.f32.mrf.mxu0  ;;  %v1519_v29 = vpop.f32.mrf.mxu1 }
  0xee   : > { %vm618_vm2 = vcmp.ge.f32.partialorder %v1499_v28, 0.0  ;;  %v658_v30 = vmul.f32 0.01, %v1499_v28  ;;  %vm638_vm3 = vcmp.ge.f32.partialorder %v1519_v29, 0.0  ;;  %v678_v31 = vmul.f32 0.01, %v1519_v29 }
  0xef   : > { %v457_v32 = vpop.f32.mrf.mxu0  ;;  %v537_v33 = vpop.f32.mrf.mxu1 }
  0xf0   : > { %v698_v34 = vsel %vm618_vm2, %v1499_v28, %v658_v30  ;;  %v718_v35 = vsel %vm638_vm3, %v1519_v29, %v678_v31  ;;  %vm616_vm5 = vcmp.ge.f32.partialorder %v457_v32, 0.0  ;;  %v656_v36 = vmul.f32 0.01, %v457_v32 }
  0xf1   : > { %v1417_v37 = vpack.c.bf16 %v698_v34, %v698_v34  ;;  %v1437_v38 = vpack.c.bf16 %v718_v35, %v718_v35  ;;  %vm636_vm6 = vcmp.ge.f32.partialorder %v537_v33, 0.0  ;;  %v676_v39 = vmul.f32 0.01, %v537_v33  ;;  %v1500_v40 = vpop.f32.mrf.mxu0  ;;  %v1520_v41 = vpop.f32.mrf.mxu1 }
  0xf2   : > { %v696_v42 = vsel %vm616_vm5, %v457_v32, %v656_v36  ;;  %vm619_vm7 = vcmp.ge.f32.partialorder %v1500_v40, 0.0  ;;  %v659_v43 = vmul.f32 0.01, %v1500_v40  ;;  %vm639_vm8 = vcmp.ge.f32.partialorder %v1520_v41, 0.0 }
  0xf3   : > { %899 = vst.msk [vmem:[%s1878_s9 + $0x8] sm:$0xf] %vm896_vm4, %v1417_v37  ;;  %919 = vst.msk [vmem:[%s1878_s9 + $0x58] sm:$0xf] %vm896_vm4, %v1437_v38  ;;  %v1415_v44 = vpack.c.bf16 %v696_v42, %v696_v42  ;;  %v716_v45 = vsel %vm636_vm6, %v537_v33, %v676_v39  ;;  %v679_v46 = vmul.f32 0.01, %v1520_v41  ;;  %v460_v47 = vpop.f32.mrf.mxu0  ;;  %v540_v48 = vpop.f32.mrf.mxu1 }
  0xf4   : > { %v1435_v49 = vpack.c.bf16 %v716_v45, %v716_v45  ;;  %v699_v50 = vsel %vm619_vm7, %v1500_v40, %v659_v43  ;;  %vm617_vm9 = vcmp.ge.f32.partialorder %v460_v47, 0.0  ;;  %v657_v51 = vmul.f32 0.01, %v460_v47 }
  0xf5   : > { %897 = vst.msk [vmem:[%s1878_s9] sm:$0xf] %vm896_vm4, %v1415_v44  ;;  %v1418_v52 = vpack.c.bf16 %v699_v50, %v699_v50  ;;  %v719_v53 = vsel %vm639_vm8, %v1520_v41, %v679_v46  ;;  %vm637_vm10 = vcmp.ge.f32.partialorder %v540_v48, 0.0  ;;  %v677_v54 = vmul.f32 0.01, %v540_v48  ;;  %v1503_v55 = vpop.f32.mrf.mxu0  ;;  %v1523_v56 = vpop.f32.mrf.mxu1 }
  0xf6   : > { %917 = vst.msk [vmem:[%s1878_s9 + $0x50] sm:$0xf] %vm896_vm4, %v1435_v49  ;;  %v1438_v57 = vpack.c.bf16 %v719_v53, %v719_v53  ;;  %v697_v58 = vsel %vm617_vm9, %v460_v47, %v657_v51  ;;  %vm622_vm11 = vcmp.ge.f32.partialorder %v1503_v55, 0.0  ;;  %v662_v59 = vmul.f32 0.01, %v1503_v55 }
  0xf7   : > { %900 = vst.msk [vmem:[%s1878_s9 + $0xc] sm:$0xf] %vm896_vm4, %v1418_v52  ;;  %v1416_v60 = vpack.c.bf16 %v697_v58, %v697_v58  ;;  %v717_v61 = vsel %vm637_vm10, %v540_v48, %v677_v54  ;;  %vm642_vm12 = vcmp.ge.f32.partialorder %v1523_v56, 0.0  ;;  %v682_v62 = vmul.f32 0.01, %v1523_v56  ;;  %v473_v63 = vpop.f32.mrf.mxu0  ;;  %v553_v0 = vpop.f32.mrf.mxu1 }
  0xf8   : > { %920 = vst.msk [vmem:[%s1878_s9 + $0x5c] sm:$0xf] %vm896_vm4, %v1438_v57  ;;  %v1436_v1 = vpack.c.bf16 %v717_v61, %v717_v61  ;;  %v702_v2 = vsel %vm622_vm11, %v1503_v55, %v662_v59  ;;  %vm620_vm13 = vcmp.ge.f32.partialorder %v473_v63, 0.0  ;;  %v660_v3 = vmul.f32 0.01, %v473_v63 }
  0xf9   : > { %898 = vst.msk [vmem:[%s1878_s9 + $0x4] sm:$0xf] %vm896_vm4, %v1416_v60  ;;  %v1421_v4 = vpack.c.bf16 %v702_v2, %v702_v2  ;;  %v722_v5 = vsel %vm642_vm12, %v1523_v56, %v682_v62  ;;  %vm640_vm14 = vcmp.ge.f32.partialorder %v553_v0, 0.0  ;;  %v680_v6 = vmul.f32 0.01, %v553_v0  ;;  %v1504_v7 = vpop.f32.mrf.mxu0  ;;  %v1524_v8 = vpop.f32.mrf.mxu1 }
  0xfa   : > { %918 = vst.msk [vmem:[%s1878_s9 + $0x54] sm:$0xf] %vm896_vm4, %v1436_v1  ;;  %v1441_v9 = vpack.c.bf16 %v722_v5, %v722_v5  ;;  %v700_v10 = vsel %vm620_vm13, %v473_v63, %v660_v3  ;;  %vm623_vm15 = vcmp.ge.f32.partialorder %v1504_v7, 0.0  ;;  %v663_v11 = vmul.f32 0.01, %v1504_v7 }
  0xfb   : > { %903 = vst.msk [vmem:[%s1878_s9 + $0x18] sm:$0xf] %vm896_vm4, %v1421_v4  ;;  %v1419_v12 = vpack.c.bf16 %v700_v10, %v700_v10  ;;  %v720_v13 = vsel %vm640_vm14, %v553_v0, %v680_v6  ;;  %vm643_vm0 = vcmp.ge.f32.partialorder %v1524_v8, 0.0  ;;  %v683_v14 = vmul.f32 0.01, %v1524_v8  ;;  %v476_v15 = vpop.f32.mrf.mxu0  ;;  %v556_v16 = vpop.f32.mrf.mxu1 }
  0xfc   : > { %923 = vst.msk [vmem:[%s1878_s9 + $0x68] sm:$0xf] %vm896_vm4, %v1441_v9  ;;  %v1439_v17 = vpack.c.bf16 %v720_v13, %v720_v13  ;;  %v703_v18 = vsel %vm623_vm15, %v1504_v7, %v663_v11  ;;  %vm621_vm1 = vcmp.ge.f32.partialorder %v476_v15, 0.0  ;;  %v661_v19 = vmul.f32 0.01, %v476_v15 }
  0xfd   : > { %901 = vst.msk [vmem:[%s1878_s9 + $0x10] sm:$0xf] %vm896_vm4, %v1419_v12  ;;  %v1422_v20 = vpack.c.bf16 %v703_v18, %v703_v18  ;;  %v723_v21 = vsel %vm643_vm0, %v1524_v8, %v683_v14  ;;  %vm641_vm2 = vcmp.ge.f32.partialorder %v556_v16, 0.0  ;;  %v681_v22 = vmul.f32 0.01, %v556_v16  ;;  %v1507_v23 = vpop.f32.mrf.mxu0  ;;  %v1527_v24 = vpop.f32.mrf.mxu1 }
  0xfe   : > { %921 = vst.msk [vmem:[%s1878_s9 + $0x60] sm:$0xf] %vm896_vm4, %v1439_v17  ;;  %v1442_v25 = vpack.c.bf16 %v723_v21, %v723_v21  ;;  %v701_v26 = vsel %vm621_vm1, %v476_v15, %v661_v19  ;;  %vm626_vm3 = vcmp.ge.f32.partialorder %v1507_v23, 0.0  ;;  %v666_v27 = vmul.f32 0.01, %v1507_v23 }
  0xff   : > { %904 = vst.msk [vmem:[%s1878_s9 + $0x1c] sm:$0xf] %vm896_vm4, %v1422_v20  ;;  %v1420_v28 = vpack.c.bf16 %v701_v26, %v701_v26  ;;  %v721_v29 = vsel %vm641_vm2, %v556_v16, %v681_v22  ;;  %vm646_vm5 = vcmp.ge.f32.partialorder %v1527_v24, 0.0  ;;  %v686_v30 = vmul.f32 0.01, %v1527_v24  ;;  %v489_v31 = vpop.f32.mrf.mxu0  ;;  %v569_v32 = vpop.f32.mrf.mxu1 }
 0x100   : > { %924 = vst.msk [vmem:[%s1878_s9 + $0x6c] sm:$0xf] %vm896_vm4, %v1442_v25  ;;  %v1440_v33 = vpack.c.bf16 %v721_v29, %v721_v29  ;;  %v706_v34 = vsel %vm626_vm3, %v1507_v23, %v666_v27  ;;  %vm624_vm6 = vcmp.ge.f32.partialorder %v489_v31, 0.0  ;;  %v664_v35 = vmul.f32 0.01, %v489_v31 }
 0x101   : > { %902 = vst.msk [vmem:[%s1878_s9 + $0x14] sm:$0xf] %vm896_vm4, %v1420_v28  ;;  %v1425_v36 = vpack.c.bf16 %v706_v34, %v706_v34  ;;  %v726_v37 = vsel %vm646_vm5, %v1527_v24, %v686_v30  ;;  %vm644_vm7 = vcmp.ge.f32.partialorder %v569_v32, 0.0  ;;  %v684_v38 = vmul.f32 0.01, %v569_v32  ;;  %v1508_v39 = vpop.f32.mrf.mxu0  ;;  %v1528_v40 = vpop.f32.mrf.mxu1 }
 0x102   : > { %922 = vst.msk [vmem:[%s1878_s9 + $0x64] sm:$0xf] %vm896_vm4, %v1440_v33  ;;  %v1445_v41 = vpack.c.bf16 %v726_v37, %v726_v37  ;;  %v704_v42 = vsel %vm624_vm6, %v489_v31, %v664_v35  ;;  %vm627_vm8 = vcmp.ge.f32.partialorder %v1508_v39, 0.0  ;;  %v667_v43 = vmul.f32 0.01, %v1508_v39 }
 0x103   : > { %907 = vst.msk [vmem:[%s1878_s9 + $0x28] sm:$0xf] %vm896_vm4, %v1425_v36  ;;  %v1423_v44 = vpack.c.bf16 %v704_v42, %v704_v42  ;;  %v724_v45 = vsel %vm644_vm7, %v569_v32, %v684_v38  ;;  %vm647_vm9 = vcmp.ge.f32.partialorder %v1528_v40, 0.0  ;;  %v687_v46 = vmul.f32 0.01, %v1528_v40  ;;  %v492_v47 = vpop.f32.mrf.mxu0  ;;  %v572_v48 = vpop.f32.mrf.mxu1 }
 0x104   : > { %927 = vst.msk [vmem:[%s1878_s9 + $0x78] sm:$0xf] %vm896_vm4, %v1445_v41  ;;  %v1443_v49 = vpack.c.bf16 %v724_v45, %v724_v45  ;;  %v707_v50 = vsel %vm627_vm8, %v1508_v39, %v667_v43  ;;  %vm625_vm10 = vcmp.ge.f32.partialorder %v492_v47, 0.0  ;;  %v665_v51 = vmul.f32 0.01, %v492_v47 }
 0x105   : > { %905 = vst.msk [vmem:[%s1878_s9 + $0x20] sm:$0xf] %vm896_vm4, %v1423_v44  ;;  %v1426_v52 = vpack.c.bf16 %v707_v50, %v707_v50  ;;  %v727_v53 = vsel %vm647_vm9, %v1528_v40, %v687_v46  ;;  %vm645_vm11 = vcmp.ge.f32.partialorder %v572_v48, 0.0  ;;  %v685_v54 = vmul.f32 0.01, %v572_v48  ;;  %v1511_v55 = vpop.f32.mrf.mxu0  ;;  %v1531_v56 = vpop.f32.mrf.mxu1 }
 0x106   : > { %925 = vst.msk [vmem:[%s1878_s9 + $0x70] sm:$0xf] %vm896_vm4, %v1443_v49  ;;  %v1446_v57 = vpack.c.bf16 %v727_v53, %v727_v53  ;;  %v705_v58 = vsel %vm625_vm10, %v492_v47, %v665_v51  ;;  %vm630_vm12 = vcmp.ge.f32.partialorder %v1511_v55, 0.0  ;;  %v670_v59 = vmul.f32 0.01, %v1511_v55 }
 0x107   : > { %908 = vst.msk [vmem:[%s1878_s9 + $0x2c] sm:$0xf] %vm896_vm4, %v1426_v52  ;;  %v1424_v60 = vpack.c.bf16 %v705_v58, %v705_v58  ;;  %v725_v61 = vsel %vm645_vm11, %v572_v48, %v685_v54  ;;  %vm650_vm13 = vcmp.ge.f32.partialorder %v1531_v56, 0.0  ;;  %v690_v62 = vmul.f32 0.01, %v1531_v56  ;;  %v505_v63 = vpop.f32.mrf.mxu0  ;;  %v585_v0 = vpop.f32.mrf.mxu1 }
 0x108   : > { %928 = vst.msk [vmem:[%s1878_s9 + $0x7c] sm:$0xf] %vm896_vm4, %v1446_v57  ;;  %v1444_v1 = vpack.c.bf16 %v725_v61, %v725_v61  ;;  %v710_v2 = vsel %vm630_vm12, %v1511_v55, %v670_v59  ;;  %vm628_vm14 = vcmp.ge.f32.partialorder %v505_v63, 0.0  ;;  %v668_v3 = vmul.f32 0.01, %v505_v63 }
 0x109   : > { %906 = vst.msk [vmem:[%s1878_s9 + $0x24] sm:$0xf] %vm896_vm4, %v1424_v60  ;;  %v1429_v4 = vpack.c.bf16 %v710_v2, %v710_v2  ;;  %v730_v5 = vsel %vm650_vm13, %v1531_v56, %v690_v62  ;;  %vm648_vm15 = vcmp.ge.f32.partialorder %v585_v0, 0.0  ;;  %v688_v6 = vmul.f32 0.01, %v585_v0  ;;  %v1512_v7 = vpop.f32.mrf.mxu0  ;;  %v1532_v8 = vpop.f32.mrf.mxu1 }
 0x10a   : > { %926 = vst.msk [vmem:[%s1878_s9 + $0x74] sm:$0xf] %vm896_vm4, %v1444_v1  ;;  %v1449_v9 = vpack.c.bf16 %v730_v5, %v730_v5  ;;  %v708_v10 = vsel %vm628_vm14, %v505_v63, %v668_v3  ;;  %vm631_vm0 = vcmp.ge.f32.partialorder %v1512_v7, 0.0  ;;  %v671_v11 = vmul.f32 0.01, %v1512_v7 }
 0x10b   : > { %911 = vst.msk [vmem:[%s1878_s9 + $0x38] sm:$0xf] %vm896_vm4, %v1429_v4  ;;  %v1427_v12 = vpack.c.bf16 %v708_v10, %v708_v10  ;;  %v728_v13 = vsel %vm648_vm15, %v585_v0, %v688_v6  ;;  %vm651_vm1 = vcmp.ge.f32.partialorder %v1532_v8, 0.0  ;;  %v691_v14 = vmul.f32 0.01, %v1532_v8  ;;  %v508_v15 = vpop.f32.mrf.mxu0  ;;  %v588_v16 = vpop.f32.mrf.mxu1 }
 0x10c   : > { %931 = vst.msk [vmem:[%s1878_s9 + $0x88] sm:$0xf] %vm896_vm4, %v1449_v9  ;;  %v1447_v17 = vpack.c.bf16 %v728_v13, %v728_v13  ;;  %v711_v18 = vsel %vm631_vm0, %v1512_v7, %v671_v11  ;;  %vm629_vm2 = vcmp.ge.f32.partialorder %v508_v15, 0.0  ;;  %v669_v19 = vmul.f32 0.01, %v508_v15 }
 0x10d   : > { %909 = vst.msk [vmem:[%s1878_s9 + $0x30] sm:$0xf] %vm896_vm4, %v1427_v12  ;;  %v1430_v20 = vpack.c.bf16 %v711_v18, %v711_v18  ;;  %v731_v21 = vsel %vm651_vm1, %v1532_v8, %v691_v14  ;;  %vm649_vm3 = vcmp.ge.f32.partialorder %v588_v16, 0.0  ;;  %v689_v22 = vmul.f32 0.01, %v588_v16  ;;  %v1515_v23 = vpop.f32.mrf.mxu0  ;;  %v1535_v24 = vpop.f32.mrf.mxu1 }
 0x10e   : > { %929 = vst.msk [vmem:[%s1878_s9 + $0x80] sm:$0xf] %vm896_vm4, %v1447_v17  ;;  %v1450_v25 = vpack.c.bf16 %v731_v21, %v731_v21  ;;  %v709_v26 = vsel %vm629_vm2, %v508_v15, %v669_v19  ;;  %vm634_vm5 = vcmp.ge.f32.partialorder %v1515_v23, 0.0  ;;  %v674_v27 = vmul.f32 0.01, %v1515_v23 }
 0x10f   : > { %912 = vst.msk [vmem:[%s1878_s9 + $0x3c] sm:$0xf] %vm896_vm4, %v1430_v20  ;;  %v1428_v28 = vpack.c.bf16 %v709_v26, %v709_v26  ;;  %v729_v29 = vsel %vm649_vm3, %v588_v16, %v689_v22  ;;  %vm654_vm6 = vcmp.ge.f32.partialorder %v1535_v24, 0.0  ;;  %v694_v30 = vmul.f32 0.01, %v1535_v24  ;;  %v521_v31 = vpop.f32.mrf.mxu0  ;;  %v601_v32 = vpop.f32.mrf.mxu1 }
 0x110   : > { %932 = vst.msk [vmem:[%s1878_s9 + $0x8c] sm:$0xf] %vm896_vm4, %v1450_v25  ;;  %v1448_v33 = vpack.c.bf16 %v729_v29, %v729_v29  ;;  %v714_v34 = vsel %vm634_vm5, %v1515_v23, %v674_v27  ;;  %vm632_vm7 = vcmp.ge.f32.partialorder %v521_v31, 0.0  ;;  %v672_v35 = vmul.f32 0.01, %v521_v31 }
 0x111   : > { %910 = vst.msk [vmem:[%s1878_s9 + $0x34] sm:$0xf] %vm896_vm4, %v1428_v28  ;;  %v1433_v36 = vpack.c.bf16 %v714_v34, %v714_v34  ;;  %v734_v37 = vsel %vm654_vm6, %v1535_v24, %v694_v30  ;;  %vm652_vm8 = vcmp.ge.f32.partialorder %v601_v32, 0.0  ;;  %v692_v38 = vmul.f32 0.01, %v601_v32  ;;  %v1516_v39 = vpop.f32.mrf.mxu0  ;;  %v1536_v40 = vpop.f32.mrf.mxu1 }
 0x112   : > { %930 = vst.msk [vmem:[%s1878_s9 + $0x84] sm:$0xf] %vm896_vm4, %v1448_v33  ;;  %v1453_v41 = vpack.c.bf16 %v734_v37, %v734_v37  ;;  %v712_v42 = vsel %vm632_vm7, %v521_v31, %v672_v35  ;;  %vm635_vm9 = vcmp.ge.f32.partialorder %v1516_v39, 0.0  ;;  %v675_v43 = vmul.f32 0.01, %v1516_v39 }
 0x113   : > { %915 = vst.msk [vmem:[%s1878_s9 + $0x48] sm:$0xf] %vm896_vm4, %v1433_v36  ;;  %v1431_v44 = vpack.c.bf16 %v712_v42, %v712_v42  ;;  %v732_v45 = vsel %vm652_vm8, %v601_v32, %v692_v38  ;;  %vm655_vm10 = vcmp.ge.f32.partialorder %v1536_v40, 0.0  ;;  %v695_v46 = vmul.f32 0.01, %v1536_v40  ;;  %v524_v47 = vpop.f32.mrf.mxu0  ;;  %v604_v48 = vpop.f32.mrf.mxu1 }
 0x114   : > { %935 = vst.msk [vmem:[%s1878_s9 + $0x98] sm:$0xf] %vm896_vm4, %v1453_v41  ;;  %v1451_v49 = vpack.c.bf16 %v732_v45, %v732_v45  ;;  %v715_v50 = vsel %vm635_vm9, %v1516_v39, %v675_v43  ;;  %vm633_vm11 = vcmp.ge.f32.partialorder %v524_v47, 0.0  ;;  %v673_v51 = vmul.f32 0.01, %v524_v47 }
 0x115   : > { %913 = vst.msk [vmem:[%s1878_s9 + $0x40] sm:$0xf] %vm896_vm4, %v1431_v44  ;;  %v1434_v52 = vpack.c.bf16 %v715_v50, %v715_v50  ;;  %v735_v53 = vsel %vm655_vm10, %v1536_v40, %v695_v46  ;;  %vm653_vm12 = vcmp.ge.f32.partialorder %v604_v48, 0.0  ;;  %v693_v54 = vmul.f32 0.01, %v604_v48 }
 0x116   : > { %933 = vst.msk [vmem:[%s1878_s9 + $0x90] sm:$0xf] %vm896_vm4, %v1451_v49  ;;  %v1454_v55 = vpack.c.bf16 %v735_v53, %v735_v53  ;;  %v713_v56 = vsel %vm633_vm11, %v524_v47, %v673_v51  ;;  %943 = sbr.rel (!%p1802_p4) target bundleno = 363 (0x16b), region = 32 }
 0x117   : > { %916 = vst.msk [vmem:[%s1878_s9 + $0x4c] sm:$0xf] %vm896_vm4, %v1434_v52  ;;  %v1432_v57 = vpack.c.bf16 %v713_v56, %v713_v56  ;;  %v733_v58 = vsel %vm653_vm12, %v604_v48, %v693_v54 }
 0x118   : > { %936 = vst.msk [vmem:[%s1878_s9 + $0x9c] sm:$0xf] %vm896_vm4, %v1454_v55  ;;  %v1452_v59 = vpack.c.bf16 %v733_v58, %v733_v58 }
 0x119   : > { %914 = vst.msk [vmem:[%s1878_s9 + $0x44] sm:$0xf] %vm896_vm4, %v1432_v57 }
 0x11a   : > { %934 = vst.msk [vmem:[%s1878_s9 + $0x94] sm:$0xf] %vm896_vm4, %v1452_v59 }
 0x11b   : > { %s2117_s18 = smov (!%p946_p8, %s945_s18), 40 }
 0x11c   : > { %s1403_s24 = sshll.u32 %s2117_s18, 6 }
 0x11d   : > { %p1406_p9 = scmp.eq.s32.totalorder %s1403_s24, 0 }
 0x11e   : > { %1670 = sdivrem.u32 (!%p1406_p9), %s2117_s18, 40 }
 0x11f   : > { %954 = sbr.rel (%p1406_p9) target bundleno = 363 (0x16b), region = 36 }
 0x127   : > { %s1973_s17 = spop.drf %1670 }
 0x128   : > { %p1407_p10 = scmp.le.s32.totalorder %s1973_s17, 0 }
 0x129   : > { %s2110_s12 = smov (!%p1407_p10), %s1967_s23  ;;  %s2111_s22 = smov (!%p1407_p10), %s1878_s9 }
 0x12a   : > { %1267 = sbr.rel (%p1407_p10) target bundleno = 338 (0x152), region = 108  ;;  %s1982_s25 = smov (!%p1407_p10), 0  }
 0x12b   : > { %s1984_s26 = smov (!%p1407_p10), 0  }
 0x12f LB: >> { %v972_v60 = vld [vmem:[%s1736_s22] sm:$0xf]  ;;  %v974_v61 = vld [vmem:[%s1736_s22 + $0x4] sm:$0xf]  ;;  %v976_v62 = vld [vmem:[%s1736_s22 + $0x8] sm:$0xf]  ;;  %s1744_s26 = sphi %s1984_s26, %s966_s26   ;;  %s1740_s25 = sphi %s1982_s25, %s2112_s25   ;;  %s1736_s22 = sphi %s2111_s22, %s1057_s22   ;;  %s1732_s12 = sphi %s2110_s12, %s1058_s12  }
 0x130   : >> { %973 = vst [vmem:[%s1732_s12] sm:$0xf] %v972_v60  ;;  %975 = vst [vmem:[%s1732_s12 + $0x4] sm:$0xf] %v974_v61  ;;  %v978_v63 = vld [vmem:[%s1736_s22 + $0xc] sm:$0xf]  ;;  %s1052_s27 = sadd.s32 1, %s1740_s25 }
 0x131   : >> { %977 = vst [vmem:[%s1732_s12 + $0x8] sm:$0xf] %v976_v62  ;;  %v980_v0 = vld [vmem:[%s1736_s22 + $0x10] sm:$0xf]  ;;  %v982_v1 = vld [vmem:[%s1736_s22 + $0x14] sm:$0xf]  ;;  %p1053_p11 = scmp.ge.s32.totalorder %s1052_s27, %s1973_s17 }
 0x132   : >> { %979 = vst [vmem:[%s1732_s12 + $0xc] sm:$0xf] %v978_v63  ;;  %981 = vst [vmem:[%s1732_s12 + $0x10] sm:$0xf] %v980_v0  ;;  %v984_v2 = vld [vmem:[%s1736_s22 + $0x18] sm:$0xf] }
 0x133   : >> { %983 = vst [vmem:[%s1732_s12 + $0x14] sm:$0xf] %v982_v1  ;;  %v986_v3 = vld [vmem:[%s1736_s22 + $0x1c] sm:$0xf]  ;;  %v988_v4 = vld [vmem:[%s1736_s22 + $0x20] sm:$0xf] }
 0x134   : >> { %985 = vst [vmem:[%s1732_s12 + $0x18] sm:$0xf] %v984_v2  ;;  %987 = vst [vmem:[%s1732_s12 + $0x1c] sm:$0xf] %v986_v3  ;;  %v990_v5 = vld [vmem:[%s1736_s22 + $0x24] sm:$0xf] }
 0x135   : >> { %989 = vst [vmem:[%s1732_s12 + $0x20] sm:$0xf] %v988_v4  ;;  %v992_v6 = vld [vmem:[%s1736_s22 + $0x28] sm:$0xf]  ;;  %v994_v7 = vld [vmem:[%s1736_s22 + $0x2c] sm:$0xf] }
 0x136   : >> { %991 = vst [vmem:[%s1732_s12 + $0x24] sm:$0xf] %v990_v5  ;;  %993 = vst [vmem:[%s1732_s12 + $0x28] sm:$0xf] %v992_v6  ;;  %v996_v8 = vld [vmem:[%s1736_s22 + $0x30] sm:$0xf] }
 0x137   : >> { %995 = vst [vmem:[%s1732_s12 + $0x2c] sm:$0xf] %v994_v7  ;;  %v998_v9 = vld [vmem:[%s1736_s22 + $0x34] sm:$0xf]  ;;  %v1000_v10 = vld [vmem:[%s1736_s22 + $0x38] sm:$0xf] }
 0x138   : >> { %997 = vst [vmem:[%s1732_s12 + $0x30] sm:$0xf] %v996_v8  ;;  %999 = vst [vmem:[%s1732_s12 + $0x34] sm:$0xf] %v998_v9  ;;  %v1002_v11 = vld [vmem:[%s1736_s22 + $0x3c] sm:$0xf] }
 0x139   : >> { %1001 = vst [vmem:[%s1732_s12 + $0x38] sm:$0xf] %v1000_v10  ;;  %v1004_v12 = vld [vmem:[%s1736_s22 + $0x40] sm:$0xf]  ;;  %v1006_v13 = vld [vmem:[%s1736_s22 + $0x44] sm:$0xf] }
 0x13a   : >> { %1003 = vst [vmem:[%s1732_s12 + $0x3c] sm:$0xf] %v1002_v11  ;;  %1005 = vst [vmem:[%s1732_s12 + $0x40] sm:$0xf] %v1004_v12  ;;  %v1008_v14 = vld [vmem:[%s1736_s22 + $0x48] sm:$0xf] }
 0x13b   : >> { %1007 = vst [vmem:[%s1732_s12 + $0x44] sm:$0xf] %v1006_v13  ;;  %v1010_v15 = vld [vmem:[%s1736_s22 + $0x4c] sm:$0xf]  ;;  %v1012_v16 = vld [vmem:[%s1736_s22 + $0x50] sm:$0xf] }
 0x13c   : >> { %1009 = vst [vmem:[%s1732_s12 + $0x48] sm:$0xf] %v1008_v14  ;;  %1011 = vst [vmem:[%s1732_s12 + $0x4c] sm:$0xf] %v1010_v15  ;;  %v1014_v17 = vld [vmem:[%s1736_s22 + $0x54] sm:$0xf] }
 0x13d   : >> { %1013 = vst [vmem:[%s1732_s12 + $0x50] sm:$0xf] %v1012_v16  ;;  %v1016_v18 = vld [vmem:[%s1736_s22 + $0x58] sm:$0xf]  ;;  %v1018_v19 = vld [vmem:[%s1736_s22 + $0x5c] sm:$0xf] }
 0x13e   : >> { %1015 = vst [vmem:[%s1732_s12 + $0x54] sm:$0xf] %v1014_v17  ;;  %1017 = vst [vmem:[%s1732_s12 + $0x58] sm:$0xf] %v1016_v18  ;;  %v1020_v20 = vld [vmem:[%s1736_s22 + $0x60] sm:$0xf] }
 0x13f   : >> { %1019 = vst [vmem:[%s1732_s12 + $0x5c] sm:$0xf] %v1018_v19  ;;  %v1022_v21 = vld [vmem:[%s1736_s22 + $0x64] sm:$0xf]  ;;  %v1024_v22 = vld [vmem:[%s1736_s22 + $0x68] sm:$0xf] }
 0x140   : >> { %1021 = vst [vmem:[%s1732_s12 + $0x60] sm:$0xf] %v1020_v20  ;;  %1023 = vst [vmem:[%s1732_s12 + $0x64] sm:$0xf] %v1022_v21  ;;  %v1026_v23 = vld [vmem:[%s1736_s22 + $0x6c] sm:$0xf] }
 0x141   : >> { %1025 = vst [vmem:[%s1732_s12 + $0x68] sm:$0xf] %v1024_v22  ;;  %v1028_v24 = vld [vmem:[%s1736_s22 + $0x70] sm:$0xf]  ;;  %v1030_v25 = vld [vmem:[%s1736_s22 + $0x74] sm:$0xf] }
 0x142   : >> { %1027 = vst [vmem:[%s1732_s12 + $0x6c] sm:$0xf] %v1026_v23  ;;  %1029 = vst [vmem:[%s1732_s12 + $0x70] sm:$0xf] %v1028_v24  ;;  %v1032_v26 = vld [vmem:[%s1736_s22 + $0x78] sm:$0xf] }
 0x143   : >> { %1031 = vst [vmem:[%s1732_s12 + $0x74] sm:$0xf] %v1030_v25  ;;  %v1034_v27 = vld [vmem:[%s1736_s22 + $0x7c] sm:$0xf]  ;;  %v1036_v28 = vld [vmem:[%s1736_s22 + $0x80] sm:$0xf] }
 0x144   : >> { %1033 = vst [vmem:[%s1732_s12 + $0x78] sm:$0xf] %v1032_v26  ;;  %1035 = vst [vmem:[%s1732_s12 + $0x7c] sm:$0xf] %v1034_v27  ;;  %v1038_v29 = vld [vmem:[%s1736_s22 + $0x84] sm:$0xf] }
 0x145   : >> { %1037 = vst [vmem:[%s1732_s12 + $0x80] sm:$0xf] %v1036_v28  ;;  %v1040_v30 = vld [vmem:[%s1736_s22 + $0x88] sm:$0xf]  ;;  %v1042_v31 = vld [vmem:[%s1736_s22 + $0x8c] sm:$0xf] }
 0x146   : >> { %1039 = vst [vmem:[%s1732_s12 + $0x84] sm:$0xf] %v1038_v29  ;;  %1041 = vst [vmem:[%s1732_s12 + $0x88] sm:$0xf] %v1040_v30  ;;  %v1044_v32 = vld [vmem:[%s1736_s22 + $0x90] sm:$0xf] }
 0x147   : >> { %1043 = vst [vmem:[%s1732_s12 + $0x8c] sm:$0xf] %v1042_v31  ;;  %v1046_v33 = vld [vmem:[%s1736_s22 + $0x94] sm:$0xf]  ;;  %v1048_v34 = vld [vmem:[%s1736_s22 + $0x98] sm:$0xf] }
 0x148   : >> { %1045 = vst [vmem:[%s1732_s12 + $0x90] sm:$0xf] %v1044_v32  ;;  %1047 = vst [vmem:[%s1732_s12 + $0x94] sm:$0xf] %v1046_v33  ;;  %v1050_v35 = vld [vmem:[%s1736_s22 + $0x9c] sm:$0xf] }
 0x149   : >> { %1049 = vst [vmem:[%s1732_s12 + $0x98] sm:$0xf] %v1048_v34  ;;  %1051 = vst [vmem:[%s1732_s12 + $0x9c] sm:$0xf] %v1050_v35  ;;  %s2119_s27 = smov (%p1053_p11, %s1052_s27), 0  ;;  %s966_s26 = sadd.s32 1, %s1744_s26  }
 0x14a   : >> { %s1055_s28 = smul.u32 160, %s2119_s27  ;;  %p965_p12 = scmp.ge.s32.totalorder %s966_s26, %s1973_s17 }
 0x14b   : >> { %s2112_s25 = smov %s2119_s27 }
 0x14c   : >> { %s1057_s22 = scalar_lea.vmem %s1878_s9, %s1055_s28 [#allocation2]   ;;  %s1058_s12 = scalar_lea.vmem %s1967_s23, %s1055_s28  }
 0x14d   : > { %968 = sbr.rel (!%p965_p12) target bundleno = 303 (0x12f), region = 114 }
 0x152 PF: > { %1672 = sdivrem.u32 %s2117_s18, 40 }
 0x153   : > { %s1408_s29 = smul.u32 160, %s1973_s17 }
 0x155   : > { %s1063_s30 = scalar_lea.vmem %s1878_s9, %s1408_s29 [#allocation2]   ;;  %s1065_s3 = scalar_lea.vmem %s1967_s23, %s1408_s29  }
 0x15b   : > { %s1673_s4 = spop.drf %1672 }
 0x15c   : > { %p1410_p13 = scmp.le.s32.totalorder %s1673_s4, 0 }
 0x15d   : > { %s1746_s5 = smov (!%p1410_p13), %s1065_s3   ;;  %s1750_s6 = smov (!%p1410_p13), %s1063_s30  }
 0x15e   : > { %1281 = sbr.rel (%p1410_p13) target bundleno = 363 (0x16b), region = 119  ;;  %s1754_s7 = smov (!%p1410_p13), 0  }
 0x15f   : > { %s1758_s8 = smov (!%p1410_p13), 0  }
 0x163 LB: >> { %v1075_v36 = vld [vmem:[%s1752_s6] sm:$0xf]  ;;  %s1077_s11 = sadd.s32 1, %s1756_s7  ;;  %s1069_s8 = sadd.s32 1, %s1760_s8   ;;  %s1760_s8 = sphi %s1758_s8, %s1069_s8   ;;  %s1756_s7 = sphi %s1754_s7, %s1755_s7   ;;  %s1752_s6 = sphi %s1750_s6, %s1082_s6   ;;  %s1748_s5 = sphi %s1746_s5, %s1083_s5  }
 0x164   : >> { %1076 = vst [vmem:[%s1748_s5] sm:$0xf] %v1075_v36  ;;  %p1078_p0 = scmp.ge.s32.totalorder %s1077_s11, %s1673_s4  ;;  %p1068_p1 = scmp.ge.s32.totalorder %s1069_s8, %s1673_s4 }
 0x166   : >> { %s2121_s11 = smov (%p1078_p0, %s1077_s11), 0  ;;  %1071 = sbr.rel (!%p1068_p1) target bundleno = 355 (0x163), region = 125 }
 0x167   : >> { %s1411_s14 = sshll.u32 %s2121_s11, 2  ;;  %s1755_s7 = smov %s2121_s11  }
 0x168   : >> { %s1082_s6 = scalar_lea.vmem %s1063_s30, %s1411_s14 [#allocation2]   ;;  %s1083_s5 = scalar_lea.vmem %s1065_s3, %s1411_s14  }
 0x16b PF: > { %p9_p2 = scmp.ge.s32.totalorder %s1792_s13, 4   ;;  %s2113_s9 = smov %s1724_s10 }
 0x16c   : > { %s2114_s10 = smov %s1800_s16  ;;  %s2115_s11 = smov %s1792_s13 }
 0x16d   :  { %11 = sbr.rel (!%p9_p2) target bundleno = 2 (0x2), region = 136 }

// kernel: combine_forward.4
= control target key start
LH: loop header
LB: loop body
LE: loop exit
PB: predicated region body
PF: predicated region fallthrough
CT: control target
= control target key end

     0   :  { %vm1450_vm0 = vcmask 523264   ;;  %vm4446_vm1 = vcmask 1040384   ;;  %s4441_s1 = inlined_call_operand.vmem [shape: bf16[1600,128], index: 1, kind: input, shape index: {}]   ;;  %s4442_s0 = inlined_call_operand.vmem [shape: bf16[121,1600], index: 0, kind: input, shape index: {}]   ;;  %s4443_s2 = inlined_call_operand.vmem [shape: f32[1,128], index: 2, kind: input, shape index: {}]   ;;  %s4444_s3 = inlined_call_operand.vmem [shape: f32[1,128], index: 3, kind: input, shape index: {}]   ;;  %s4445_s4 = inlined_call_operand.vmem [shape: bf16[121,128], index: 4, kind: output, shape index: {}]  }
   0x1   :  { %v3135_v0 = vld [vmem:[%s4441_s1 + $0x78] sm:$0xff]   ;;  %v3139_v4 = vld [vmem:[%s4441_s1 + $0x70] sm:$0xff]   ;;  %v3143_v8 = vld [vmem:[%s4441_s1 + $0x68] sm:$0xff]  }
   0x2   :  { %v3136_v1 = vld [vmem:[%s4441_s1 + $0xf8] sm:$0xff]   ;;  %2707 = vmatprep.subr.bf16.mxu0 %v3135_v0  ;;  %v3140_v5 = vld [vmem:[%s4441_s1 + $0xf0] sm:$0xff]   ;;  %v3144_v9 = vld [vmem:[%s4441_s1 + $0xe8] sm:$0xff]  }
   0x3   :  { %v3137_v2 = vld [vmem:[%s4441_s1 + $0x38] sm:$0xff]   ;;  %2771 = vmatprep.subr.bf16.mxu1 %v3136_v1  ;;  %v3141_v6 = vld [vmem:[%s4441_s1 + $0x30] sm:$0xff]   ;;  %v3145_v10 = vld [vmem:[%s4441_s1 + $0x28] sm:$0xff]  }
   0x4   :  { %v3138_v3 = vld [vmem:[%s4441_s1 + $0xb8] sm:$0xff]   ;;  %2708 = vmatpush3.bf16.msra.mxu0 %v3137_v2  ;;  %v3142_v7 = vld [vmem:[%s4441_s1 + $0xb0] sm:$0xff]   ;;  %v3146_v11 = vld [vmem:[%s4441_s1 + $0xa8] sm:$0xff]  }
   0x5   :  { %2772 = vmatpush3.bf16.msra.mxu1 %v3138_v3  ;;  %2709 = vmatprep.subr.bf16.mxu0 %v3139_v4  ;;  %v3147_v12 = vld [vmem:[%s4441_s1 + $0x60] sm:$0xff]   ;;  %v3151_v16 = vld [vmem:[%s4441_s1 + $0x58] sm:$0xff]   ;;  %v3155_v20 = vld [vmem:[%s4441_s1 + $0x50] sm:$0xff]  }
   0x6   :  { %2773 = vmatprep.subr.bf16.mxu1 %v3140_v5  ;;  %v3148_v13 = vld [vmem:[%s4441_s1 + $0xe0] sm:$0xff]   ;;  %v3152_v17 = vld [vmem:[%s4441_s1 + $0xd8] sm:$0xff]   ;;  %v3156_v21 = vld [vmem:[%s4441_s1 + $0xd0] sm:$0xff]  }
   0x7   :  { %v3149_v14 = vld [vmem:[%s4441_s1 + $0x20] sm:$0xff]   ;;  %v3153_v18 = vld [vmem:[%s4441_s1 + $0x18] sm:$0xff]   ;;  %v3157_v22 = vld [vmem:[%s4441_s1 + $0x10] sm:$0xff]  }
   0x8   :  { %2710 = vmatpush3.bf16.msra.mxu0 %v3141_v6  ;;  %v3150_v15 = vld [vmem:[%s4441_s1 + $0xa0] sm:$0xff]   ;;  %v3154_v19 = vld [vmem:[%s4441_s1 + $0x98] sm:$0xff]   ;;  %v3158_v23 = vld [vmem:[%s4441_s1 + $0x90] sm:$0xff]  }
   0x9   :  { %2774 = vmatpush3.bf16.msra.mxu1 %v3142_v7  ;;  %2711 = vmatprep.subr.bf16.mxu0 %v3143_v8  ;;  %v3159_v24 = vld [vmem:[%s4441_s1 + $0x48] sm:$0xff]   ;;  %v3163_v28 = vld [vmem:[%s4441_s1 + $0x40] sm:$0xff]   ;;  %v3173_v36 = vld [vmem:[%s4441_s1 + $0x178] sm:$0xff]  }
   0xa   :  { %2775 = vmatprep.subr.bf16.mxu1 %v3144_v9  ;;  %v3160_v25 = vld [vmem:[%s4441_s1 + $0xc8] sm:$0xff]   ;;  %v3164_v29 = vld [vmem:[%s4441_s1 + $0xc0] sm:$0xff]   ;;  %v3174_v37 = vld [vmem:[%s4441_s1 + $0x138] sm:$0xff]  }
   0xb   :  { %v3161_v26 = vld [vmem:[%s4441_s1 + $0x8] sm:$0xff]   ;;  %v3165_v30 = vld [vmem:[%s4441_s1] sm:$0xff]   ;;  %v3181_v42 = vld [vmem:[%s4441_s1 + $0x170] sm:$0xff]  }
   0xc   :  { %2712 = vmatpush3.bf16.msra.mxu0 %v3145_v10  ;;  %v3162_v27 = vld [vmem:[%s4441_s1 + $0x88] sm:$0xff]   ;;  %v3166_v31 = vld [vmem:[%s4441_s1 + $0x80] sm:$0xff]   ;;  %v3182_v43 = vld [vmem:[%s4441_s1 + $0x130] sm:$0xff]  }
   0xd   :  { %2776 = vmatpush3.bf16.msra.mxu1 %v3146_v11  ;;  %2713 = vmatprep.subr.bf16.mxu0 %v3147_v12  ;;  %v3167_v32 = vld [vmem:[%s4442_s0] ss:$52 sps:$4 sm:$0xff]   ;;  %v3169_v33 = vld [vmem:[%s4442_s0 + $0x4] ss:$52 sps:$4 sm:$0xff]   ;;  %v3170_v34 = vld [vmem:[%s4442_s0 + $0x8] ss:$52 sps:$4 sm:$0xff]  }
   0xe   :  { %2777 = vmatprep.subr.bf16.mxu1 %v3148_v13  ;;  %v3172_v35 = vld [vmem:[%s4442_s0 + $0xc] ss:$52 sps:$4 sm:$0xff]   ;;  %1507 = vmatprep.mubr.bf16.mxu0 %v3169_v33  ;;  %v3177_v39 = vld [vmem:[%s4442_s0 + $0x74] ss:$52 sps:$4 sm:$0xff]   ;;  %v3180_v41 = vld [vmem:[%s4442_s0 + $0x70] ss:$52 sps:$4 sm:$0xff]  }
   0xf   :  { %1604 = vmatprep.mubr.bf16.mxu1 %v3172_v35  ;;  %v3175_v38 = vld [vmem:[%s4442_s0 + $0x6c] ss:$52 sps:$4 sm:$0xff]   ;;  %v3179_v40 = vld [vmem:[%s4442_s0 + $0x68] ss:$52 sps:$4 sm:$0xff]   ;;  %v3187_v48 = vld [vmem:[%s4442_s0 + $0xd0] ss:$52 sps:$4 sm:$0xff]  }
  0x10   :  { %2714 = vmatpush3.bf16.msra.mxu0 %v3149_v14  ;;  %v3183_v44 = vld [vmem:[%s4442_s0 + $0xd4] ss:$52 sps:$4 sm:$0xff]   ;;  %v3185_v45 = vld [vmem:[%s4442_s0 + $0xdc] ss:$52 sps:$4 sm:$0xff]   ;;  %v3188_v51 = vld [vmem:[%s4442_s0 + $0xd8] ss:$52 sps:$4 sm:$0xff]  }
  0x11   :  { %2778 = vmatpush3.bf16.msra.mxu1 %v3150_v15  ;;  %2715 = vmatprep.subr.bf16.mxu0 %v3151_v16  ;;  %v3189_v46 = vld [vmem:[%s4441_s1 + $0x168] sm:$0xff]   ;;  %v3190_v47 = vld [vmem:[%s4441_s1 + $0x1f8] sm:$0xff]   ;;  %v3199_v54 = vld [vmem:[%s4441_s1 + $0x160] sm:$0xff]  }
  0x12   :  { %2779 = vmatprep.subr.bf16.mxu1 %v3152_v17  ;;  %v3191_v49 = vld [vmem:[%s4441_s1 + $0x128] sm:$0xff]   ;;  %v3192_v50 = vld [vmem:[%s4441_s1 + $0x1b8] sm:$0xff]   ;;  %v3200_v55 = vld [vmem:[%s4441_s1 + $0x1f0] sm:$0xff]  }
  0x13   :  { %v3193_v52 = vld [vmem:[%s4442_s0 + $0x13c] ss:$52 sps:$4 sm:$0xff]   ;;  %v3195_v53 = vld [vmem:[%s4442_s0 + $0x144] ss:$52 sps:$4 sm:$0xff]   ;;  %v3198_v59 = vld [vmem:[%s4442_s0 + $0x140] ss:$52 sps:$4 sm:$0xff]  }
  0x14   :  { %2716 = vmatpush3.bf16.msra.mxu0 %v3153_v18  ;;  %v3201_v56 = vld [vmem:[%s4441_s1 + $0x120] sm:$0xff]   ;;  %v3202_v57 = vld [vmem:[%s4441_s1 + $0x1b0] sm:$0xff]   ;;  %v3197_v58 = vld [vmem:[%s4442_s0 + $0x138] ss:$52 sps:$4 sm:$0xff]  }
  0x15   :  { %2780 = vmatpush3.bf16.msra.mxu1 %v3154_v19  ;;  %2717 = vmatprep.subr.bf16.mxu0 %v3155_v20  ;;  %v3203_v60 = vld [vmem:[%s4442_s0 + $0x1a4] ss:$52 sps:$4 sm:$0xff]   ;;  %v3205_v61 = vld [vmem:[%s4442_s0 + $0x1ac] ss:$52 sps:$4 sm:$0xff]   ;;  %v3208_v3 = vld [vmem:[%s4442_s0 + $0x1a8] ss:$52 sps:$4 sm:$0xff]  }
  0x16   :  { %2781 = vmatprep.subr.bf16.mxu1 %v3156_v21  ;;  %v3209_v62 = vld [vmem:[%s4441_s1 + $0x158] sm:$0xff]   ;;  %v3210_v63 = vld [vmem:[%s4441_s1 + $0x1e8] sm:$0xff]   ;;  %v3207_v2 = vld [vmem:[%s4442_s0 + $0x1a0] ss:$52 sps:$4 sm:$0xff]  }
  0x17   :  { %v3211_v0 = vld [vmem:[%s4441_s1 + $0x118] sm:$0xff]   ;;  %v3212_v1 = vld [vmem:[%s4441_s1 + $0x1a8] sm:$0xff]   ;;  %v3219_v6 = vld [vmem:[%s4441_s1 + $0x150] sm:$0xff]  }
  0x18   :  { %2718 = vmatpush3.bf16.msra.mxu0 %v3157_v22  ;;  %v3213_v4 = vld [vmem:[%s4442_s0 + $0x20c] ss:$52 sps:$4 sm:$0xff]   ;;  %v3215_v5 = vld [vmem:[%s4442_s0 + $0x214] ss:$52 sps:$4 sm:$0xff]   ;;  %v3218_v11 = vld [vmem:[%s4442_s0 + $0x210] ss:$52 sps:$4 sm:$0xff]  }
  0x19   :  { %2782 = vmatpush3.bf16.msra.mxu1 %v3158_v23  ;;  %2719 = vmatprep.subr.bf16.mxu0 %v3159_v24  ;;  %v3220_v7 = vld [vmem:[%s4441_s1 + $0x1e0] sm:$0xff]   ;;  %v3221_v8 = vld [vmem:[%s4441_s1 + $0x110] sm:$0xff]   ;;  %v3217_v10 = vld [vmem:[%s4442_s0 + $0x208] ss:$52 sps:$4 sm:$0xff]  }
  0x1a   :  { %2783 = vmatprep.subr.bf16.mxu1 %v3160_v25  ;;  %v3222_v9 = vld [vmem:[%s4441_s1 + $0x1a0] sm:$0xff]   ;;  %v3223_v12 = vld [vmem:[%s4442_s0 + $0x274] ss:$52 sps:$4 sm:$0xff]   ;;  %v3225_v14 = vld [vmem:[%s4442_s0 + $0x27c] ss:$52 sps:$4 sm:$0xff]  }
  0x1b   :  { %v3229_v13 = vld [vmem:[%s4441_s1 + $0x148] sm:$0xff]   ;;  %v3230_v15 = vld [vmem:[%s4441_s1 + $0x1d8] sm:$0xff]   ;;  %v3233_v18 = vld [vmem:[%s4441_s1 + $0x1d0] sm:$0xff]  }
  0x1c   :  { %2720 = vmatpush3.bf16.msra.mxu0 %v3161_v26  ;;  %v3231_v16 = vld [vmem:[%s4441_s1 + $0x108] sm:$0xff]   ;;  %v3232_v17 = vld [vmem:[%s4441_s1 + $0x198] sm:$0xff]   ;;  %v3234_v19 = vld [vmem:[%s4441_s1 + $0x190] sm:$0xff]  }
  0x1d   :  { %2784 = vmatpush3.bf16.msra.mxu1 %v3162_v27  ;;  %2721 = vmatprep.subr.bf16.mxu0 %v3163_v28  ;;  %v3227_v20 = vld [vmem:[%s4442_s0 + $0x270] ss:$52 sps:$4 sm:$0xff]   ;;  %v3228_v22 = vld [vmem:[%s4442_s0 + $0x278] ss:$52 sps:$4 sm:$0xff]  }
  0x1e   :  { %2785 = vmatprep.subr.bf16.mxu1 %v3164_v29  ;;  %v3241_v21 = vld [vmem:[%s4441_s1 + $0x140] sm:$0xff]   ;;  %v3235_v23 = vld [vmem:[%s4442_s0 + $0x2dc] ss:$52 sps:$4 sm:$0x1f]   ;;  %v3242_v25 = vld [vmem:[%s4441_s1 + $0x1c8] sm:$0xff]  }
  0x1f   :  { %v3237_v24 = vld [vmem:[%s4442_s0 + $0x2e4] ss:$52 sps:$4 sm:$0x1f]   ;;  %v3244_v27 = vld [vmem:[%s4441_s1 + $0x188] sm:$0xff]  }
  0x20   :  { %2722 = vmatpush3.bf16.msra.mxu0 %v3165_v30  ;;  %v3243_v26 = vld [vmem:[%s4441_s1 + $0x100] sm:$0xff]   ;;  %v3239_v29 = vld [vmem:[%s4442_s0 + $0x2d8] ss:$52 sps:$4 sm:$0x1f]  }
  0x21   :  { %2786 = vmatpush3.bf16.msra.mxu1 %v3166_v31  ;;  %2835 = vmatprep.subr.bf16.mxu0 %v3173_v36  ;;  %v3245_v28 = vld [vmem:[%s4441_s1 + $0x1c0] sm:$0xff]   ;;  %v3253_v33 = vld [vmem:[%s4441_s1 + $0x278] sm:$0xff]  }
  0x22   :  { %2899 = vmatprep.subr.bf16.mxu1 %v3190_v47  ;;  %v3240_v30 = vld [vmem:[%s4442_s0 + $0x2e0] ss:$52 sps:$4 sm:$0x1f]   ;;  %v3247_v35 = vld [vmem:[%s4442_s0 + $0x10] ss:$52 sps:$4 sm:$0xff]  }
  0x23   :  { %1508 = vmatmul.mubr.bf16.vlgmr.msra.gmra.mxu0 %v3167_v32  ;;  %v3246_v31 = vld [vmem:[%s4441_s1 + $0x180] sm:$0xff]   ;;  %v3249_v32 = vld [vmem:[%s4442_s0 + $0x14] ss:$52 sps:$4 sm:$0xff]   ;;  %v3250_v36 = vld [vmem:[%s4442_s0 + $0x18] ss:$52 sps:$4 sm:$0xff]  }
  0x24   :  { %1605 = vmatmul.mubr.bf16.vlgmr.msra.gmra.mxu1 %v3170_v34  ;;  %2836 = vmatpush3.bf16.msra.mxu0 %v3174_v37  ;;  %v3252_v34 = vld [vmem:[%s4442_s0 + $0x1c] ss:$52 sps:$4 sm:$0xff]   ;;  %v3263_v47 = vld [vmem:[%s4442_s0 + $0xe4] ss:$52 sps:$4 sm:$0xff]  }
  0x25   :  { %1515 = vmatprep.mubr.bf16.mxu0 %v3175_v38  ;;  %1612 = vmatprep.mubr.bf16.mxu1 %v3177_v39  ;;  %v3254_v37 = vld [vmem:[%s4441_s1 + $0x238] sm:$0xff]  }
  0x26   :  { %2837 = vmatprep.subr.bf16.mxu0 %v3181_v42  ;;  %2900 = vmatpush3.bf16.msra.mxu1 %v3192_v50  ;;  %v3255_v38 = vld [vmem:[%s4442_s0 + $0x7c] ss:$52 sps:$4 sm:$0xff]   ;;  %v3257_v39 = vld [vmem:[%s4442_s0 + $0x84] ss:$52 sps:$4 sm:$0xff]  }
  0x27   :  { %2901 = vmatprep.subr.bf16.mxu1 %v3200_v55  ;;  %v3262_v42 = vld [vmem:[%s4441_s1 + $0x230] sm:$0xff]   ;;  %v3268_v55 = vld [vmem:[%s4442_s0 + $0xe8] ss:$52 sps:$4 sm:$0xff]  }
  0x28   :  { %2838 = vmatpush3.bf16.msra.mxu0 %v3182_v43  ;;  %v3272_v43 = vld [vmem:[%s4441_s1 + $0x2b8] sm:$0xff]   ;;  %v3280_v50 = vld [vmem:[%s4441_s1 + $0x2f0] sm:$0xff]  }
  0x29   :  { %2839 = vmatprep.subr.bf16.mxu0 %v3189_v46  ;;  %v3260_v46 = vld [vmem:[%s4442_s0 + $0x80] ss:$52 sps:$4 sm:$0xff]  }
  0x2a   :  { %2902 = vmatpush3.bf16.msra.mxu1 %v3202_v57  ;;  %v3289_v57 = vld [vmem:[%s4441_s1 + $0x258] sm:$0xff]  }
  0x2b   :  { %1516 = vmatmul.mubr.bf16.gmra.mxu0 %v3179_v40  ;;  %2903 = vmatprep.subr.bf16.mxu1 %v3210_v63  ;;  %v3261_v40 = vld [vmem:[%s4441_s1 + $0x270] sm:$0xff]  }
  0x2c   :  { %1613 = vmatmul.mubr.bf16.gmra.mxu1 %v3180_v41  ;;  %1523 = vmatprep.mubr.bf16.mxu0 %v3183_v44  ;;  %v3270_v41 = vld [vmem:[%s4441_s1 + $0x2f8] sm:$0xff]   ;;  %v3299_v63 = vld [vmem:[%s4441_s1 + $0x250] sm:$0xff]  }
  0x2d   :  { %1620 = vmatprep.mubr.bf16.mxu1 %v3185_v45  ;;  %2840 = vmatpush3.bf16.msra.mxu0 %v3191_v49  ;;  %v3259_v44 = vld [vmem:[%s4442_s0 + $0x78] ss:$52 sps:$4 sm:$0xff]  }
  0x2e   :  { %2841 = vmatprep.subr.bf16.mxu0 %v3199_v54  ;;  %2904 = vmatpush3.bf16.msra.mxu1 %v3212_v1  ;;  %v3269_v45 = vld [vmem:[%s4441_s1 + $0x268] sm:$0xff]   ;;  %v3281_v54 = vld [vmem:[%s4441_s1 + $0x220] sm:$0xff]  }
  0x2f   :  { %2905 = vmatprep.subr.bf16.mxu1 %v3220_v7  ;;  %v3271_v49 = vld [vmem:[%s4441_s1 + $0x228] sm:$0xff]   ;;  %v3287_v7 = vld [vmem:[%s4442_s0 + $0x1b0] ss:$52 sps:$4 sm:$0xff]  }
  0x30   :  { %v3283_v1 = vld [vmem:[%s4442_s0 + $0x1b4] ss:$52 sps:$4 sm:$0xff]  }
  0x31   :  { %2842 = vmatpush3.bf16.msra.mxu0 %v3201_v56  ;;  %v3273_v56 = vld [vmem:[%s4442_s0 + $0x14c] ss:$52 sps:$4 sm:$0xff]  }
  0x32   :  { %2843 = vmatprep.subr.bf16.mxu0 %v3209_v62  ;;  %2906 = vmatpush3.bf16.msra.mxu1 %v3222_v9  ;;  %v3277_v62 = vld [vmem:[%s4442_s0 + $0x148] ss:$52 sps:$4 sm:$0xff]   ;;  %v3288_v9 = vld [vmem:[%s4442_s0 + $0x1b8] ss:$52 sps:$4 sm:$0xff]  }
  0x33   :  { %1524 = vmatmul.mubr.bf16.gmra.mxu0 %v3187_v48  ;;  %2907 = vmatprep.subr.bf16.mxu1 %v3230_v15  ;;  %v3265_v48 = vld [vmem:[%s4442_s0 + $0xec] ss:$52 sps:$4 sm:$0xff]   ;;  %v3314_v15 = vld [vmem:[%s4441_s1 + $0x290] sm:$0xff]  }
  0x34   :  { %1621 = vmatmul.mubr.bf16.gmra.mxu1 %v3188_v51  ;;  %1531 = vmatprep.mubr.bf16.mxu0 %v3193_v52  ;;  %v3279_v51 = vld [vmem:[%s4441_s1 + $0x260] sm:$0xff]   ;;  %v3282_v52 = vld [vmem:[%s4441_s1 + $0x2b0] sm:$0xff]  }
  0x35   :  { %1628 = vmatprep.mubr.bf16.mxu1 %v3195_v53  ;;  %2844 = vmatpush3.bf16.msra.mxu0 %v3211_v0  ;;  %v3267_v53 = vld [vmem:[%s4442_s0 + $0xe0] ss:$52 sps:$4 sm:$0xff]   ;;  %v3278_v0 = vld [vmem:[%s4442_s0 + $0x150] ss:$52 sps:$4 sm:$0xff]  }
  0x36   :  { %2845 = vmatprep.subr.bf16.mxu0 %v3219_v6  ;;  %2908 = vmatpush3.bf16.msra.mxu1 %v3232_v17  ;;  %v3309_v6 = vld [vmem:[%s4441_s1 + $0x248] sm:$0xff]  }
  0x37   :  { %2909 = vmatprep.subr.bf16.mxu1 %v3233_v18  ;;  %v3297_v17 = vld [vmem:[%s4442_s0 + $0x218] ss:$52 sps:$4 sm:$0xff]   ;;  %v3298_v18 = vld [vmem:[%s4442_s0 + $0x220] ss:$52 sps:$4 sm:$0xff]  }
  0x39   :  { %2846 = vmatpush3.bf16.msra.mxu0 %v3221_v8  ;;  %v3310_v8 = vld [vmem:[%s4441_s1 + $0x2d8] sm:$0xff]  }
  0x3a   :  { %2847 = vmatprep.subr.bf16.mxu0 %v3229_v13  ;;  %2910 = vmatpush3.bf16.msra.mxu1 %v3234_v19  ;;  %v3312_v13 = vld [vmem:[%s4441_s1 + $0x298] sm:$0xff]  }
  0x3b   :  { %1532 = vmatmul.mubr.bf16.gmra.mxu0 %v3197_v58  ;;  %2911 = vmatprep.subr.bf16.mxu1 %v3242_v25  ;;  %v3275_v58 = vld [vmem:[%s4442_s0 + $0x154] ss:$52 sps:$4 sm:$0xff]   ;;  %v3303_v19 = vld [vmem:[%s4442_s0 + $0x284] ss:$52 sps:$4 sm:$0xff]  }
  0x3c   :  { %1629 = vmatmul.mubr.bf16.gmra.mxu1 %v3198_v59  ;;  %1539 = vmatprep.mubr.bf16.mxu0 %v3203_v60  ;;  %v3290_v59 = vld [vmem:[%s4441_s1 + $0x2e8] sm:$0xff]   ;;  %v3291_v60 = vld [vmem:[%s4441_s1 + $0x218] sm:$0xff]   ;;  %v3326_v25 = vld [vmem:[%s4441_s1 + $0x280] sm:$0xff]  }
  0x3d   :  { %1636 = vmatprep.mubr.bf16.mxu1 %v3205_v61  ;;  %2848 = vmatpush3.bf16.msra.mxu0 %v3231_v16  ;;  %v3292_v61 = vld [vmem:[%s4441_s1 + $0x2a8] sm:$0xff]   ;;  %v3321_v16 = vld [vmem:[%s4441_s1 + $0x240] sm:$0xff]  }
  0x3e   :  { %2849 = vmatprep.subr.bf16.mxu0 %v3241_v21  ;;  %2912 = vmatpush3.bf16.msra.mxu1 %v3244_v27  ;;  %v3305_v21 = vld [vmem:[%s4442_s0 + $0x28c] ss:$52 sps:$4 sm:$0xff]  }
  0x3f   :  { %2913 = vmatprep.subr.bf16.mxu1 %v3245_v28  ;;  %v3307_v27 = vld [vmem:[%s4442_s0 + $0x280] ss:$52 sps:$4 sm:$0xff]   ;;  %v3308_v28 = vld [vmem:[%s4442_s0 + $0x288] ss:$52 sps:$4 sm:$0xff]  }
  0x41   :  { %2850 = vmatpush3.bf16.msra.mxu0 %v3243_v26  ;;  %v3333_v26 = vld [vmem:[%s4441_s1 + $0x318] sm:$0xff]  }
  0x42   :  { %2914 = vmatpush3.bf16.msra.mxu1 %v3246_v31  ;;  %2963 = vmatprep.subr.bf16.mxu0 %v3253_v33  ;;  %v3319_v31 = vld [vmem:[%s4442_s0 + $0x2e8] ss:$52 sps:$4 sm:$0x1f]   ;;  %v3329_v33 = vld [vmem:[%s4442_s0 + $0x24] ss:$52 sps:$4 sm:$0xff]  }
  0x43   :  { %1540 = vmatmul.mubr.bf16.gmra.mxu0 %v3207_v2  ;;  %3027 = vmatprep.subr.bf16.mxu1 %v3270_v41  ;;  %v3300_v2 = vld [vmem:[%s4441_s1 + $0x2e0] sm:$0xff]   ;;  %v3338_v41 = vld [vmem:[%s4442_s0 + $0x88] ss:$52 sps:$4 sm:$0xff]  }
  0x44   :  { %1637 = vmatmul.mubr.bf16.gmra.mxu1 %v3208_v3  ;;  %1547 = vmatprep.mubr.bf16.mxu0 %v3213_v4  ;;  %v3301_v3 = vld [vmem:[%s4441_s1 + $0x210] sm:$0xff]   ;;  %v3302_v4 = vld [vmem:[%s4441_s1 + $0x2a0] sm:$0xff]  }
  0x45   :  { %1644 = vmatprep.mubr.bf16.mxu1 %v3215_v5  ;;  %v3285_v5 = vld [vmem:[%s4442_s0 + $0x1bc] ss:$52 sps:$4 sm:$0xff]  }
  0x4b   :  { %1548 = vmatmul.mubr.bf16.gmra.mxu0 %v3217_v10  ;;  %v3293_v10 = vld [vmem:[%s4442_s0 + $0x21c] ss:$52 sps:$4 sm:$0xff]  }
  0x4c   :  { %1645 = vmatmul.mubr.bf16.gmra.mxu1 %v3218_v11  ;;  %1555 = vmatprep.mubr.bf16.mxu0 %v3223_v12  ;;  %v3311_v11 = vld [vmem:[%s4441_s1 + $0x208] sm:$0xff]   ;;  %v3295_v12 = vld [vmem:[%s4442_s0 + $0x224] ss:$52 sps:$4 sm:$0xff]  }
  0x4d   :  { %1652 = vmatprep.mubr.bf16.mxu1 %v3225_v14  ;;  %v3313_v14 = vld [vmem:[%s4441_s1 + $0x2d0] sm:$0xff]  }
  0x53   :  { %1556 = vmatmul.mubr.bf16.gmra.mxu0 %v3227_v20  ;;  %v3322_v20 = vld [vmem:[%s4441_s1 + $0x2c8] sm:$0xff]  }
  0x54   :  { %1653 = vmatmul.mubr.bf16.gmra.mxu1 %v3228_v22  ;;  %1563 = vmatprep.mubr.bf16.mxu0 %v3235_v23  ;;  %v3323_v22 = vld [vmem:[%s4441_s1 + $0x200] sm:$0xff]   ;;  %v3324_v23 = vld [vmem:[%s4441_s1 + $0x288] sm:$0xff]  }
  0x55   :  { %1660 = vmatprep.mubr.bf16.mxu1 %v3237_v24  ;;  %v3325_v24 = vld [vmem:[%s4441_s1 + $0x2c0] sm:$0xff]  }
  0x5b   :  { %1564 = vmatmul.mubr.bf16.gmra.mxu0 %v3239_v29  ;;  %v3315_v29 = vld [vmem:[%s4442_s0 + $0x2ec] ss:$52 sps:$4 sm:$0x1f]  }
  0x5c   :  { %1661 = vmatmul.mubr.bf16.gmra.mxu1 %v3240_v30  ;;  %1701 = vmatprep.mubr.bf16.mxu0 %v3249_v32  ;;  %v3317_v30 = vld [vmem:[%s4442_s0 + $0x2f4] ss:$52 sps:$4 sm:$0x1f]   ;;  %v3320_v32 = vld [vmem:[%s4442_s0 + $0x2f0] ss:$52 sps:$4 sm:$0x1f]  }
  0x5d   :  { %1798 = vmatprep.mubr.bf16.mxu1 %v3252_v34  ;;  %v3332_v34 = vld [vmem:[%s4442_s0 + $0x2c] ss:$52 sps:$4 sm:$0xff]  }
  0x63   :  { %1702 = vmatmul.mubr.bf16.vlgmr.msra.gmra.mxu0 %v3247_v35  ;;  %v3327_v35 = vld [vmem:[%s4442_s0 + $0x20] ss:$52 sps:$4 sm:$0xff]  }
  0x64   :  { %1799 = vmatmul.mubr.bf16.vlgmr.msra.gmra.mxu1 %v3250_v36  ;;  %2964 = vmatpush3.bf16.msra.mxu0 %v3254_v37  ;;  %v3330_v36 = vld [vmem:[%s4442_s0 + $0x28] ss:$52 sps:$4 sm:$0xff]   ;;  %v3334_v37 = vld [vmem:[%s4442_s0 + $0x8c] ss:$52 sps:$4 sm:$0xff]  }
  0x65   :  { %1709 = vmatprep.mubr.bf16.mxu0 %v3255_v38  ;;  %1806 = vmatprep.mubr.bf16.mxu1 %v3257_v39  ;;  %v3336_v38 = vld [vmem:[%s4442_s0 + $0x94] ss:$52 sps:$4 sm:$0xff]  }
  0x66   :  { %2965 = vmatprep.subr.bf16.mxu0 %v3261_v40  ;;  %3028 = vmatpush3.bf16.msra.mxu1 %v3272_v43  ;;  %v3346_v39 = vld [vmem:[%s4441_s1 + $0x310] sm:$0xff]   ;;  %v3359_v40 = vld [vmem:[%s4441_s1 + $0x308] sm:$0xff]  }
  0x67   :  { %3029 = vmatprep.subr.bf16.mxu1 %v3280_v50  ;;  %v3340_v43 = vld [vmem:[%s4442_s0 + $0xf4] ss:$52 sps:$4 sm:$0xff]   ;;  %v3351_v50 = vld [vmem:[%s4442_s0 + $0x158] ss:$52 sps:$4 sm:$0xff]  }
  0x68   :  { %2966 = vmatpush3.bf16.msra.mxu0 %v3262_v42  ;;  %v3339_v42 = vld [vmem:[%s4442_s0 + $0x90] ss:$52 sps:$4 sm:$0xff]  }
  0x69   :  { %2967 = vmatprep.subr.bf16.mxu0 %v3269_v45  ;;  %v3372_v45 = vld [vmem:[%s4441_s1 + $0x300] sm:$0xff]  }
  0x6a   :  { %3030 = vmatpush3.bf16.msra.mxu1 %v3282_v52  ;;  %v3353_v52 = vld [vmem:[%s4442_s0 + $0x1c4] ss:$52 sps:$4 sm:$0xff]  }
  0x6b   :  { %1710 = vmatmul.mubr.bf16.gmra.mxu0 %v3259_v44  ;;  %3031 = vmatprep.subr.bf16.mxu1 %v3290_v59  ;;  %v3342_v44 = vld [vmem:[%s4442_s0 + $0xfc] ss:$52 sps:$4 sm:$0xff]  }
  0x6c   :  { %1807 = vmatmul.mubr.bf16.gmra.mxu1 %v3260_v46  ;;  %1717 = vmatprep.mubr.bf16.mxu0 %v3263_v47  ;;  %v3344_v46 = vld [vmem:[%s4442_s0 + $0xf0] ss:$52 sps:$4 sm:$0xff]   ;;  %v3345_v47 = vld [vmem:[%s4442_s0 + $0xf8] ss:$52 sps:$4 sm:$0xff]  }
  0x6d   :  { %1814 = vmatprep.mubr.bf16.mxu1 %v3265_v48  ;;  %2968 = vmatpush3.bf16.msra.mxu0 %v3271_v49  ;;  %v3347_v48 = vld [vmem:[%s4442_s0 + $0x15c] ss:$52 sps:$4 sm:$0xff]   ;;  %v3349_v49 = vld [vmem:[%s4442_s0 + $0x164] ss:$52 sps:$4 sm:$0xff]  }
  0x6e   :  { %2969 = vmatprep.subr.bf16.mxu0 %v3279_v51  ;;  %3032 = vmatpush3.bf16.msra.mxu1 %v3292_v61  ;;  %v3352_v51 = vld [vmem:[%s4442_s0 + $0x160] ss:$52 sps:$4 sm:$0xff]   ;;  %v3365_v59 = vld [vmem:[%s4442_s0 + $0x230] ss:$52 sps:$4 sm:$0xff]  }
  0x6f   :  { %3033 = vmatprep.subr.bf16.mxu1 %v3300_v2  ;;  %v3368_v61 = vld [vmem:[%s4442_s0 + $0x29c] ss:$52 sps:$4 sm:$0xff]   ;;  %v3377_v2 = vld [vmem:[%s4442_s0 + $0x2f8] ss:$52 sps:$4 sm:$0x1f]  }
  0x71   :  { %2970 = vmatpush3.bf16.msra.mxu0 %v3281_v54  ;;  %v3357_v54 = vld [vmem:[%s4442_s0 + $0x1c0] ss:$52 sps:$4 sm:$0xff]  }
  0x72   :  { %2971 = vmatprep.subr.bf16.mxu0 %v3289_v57  ;;  %3034 = vmatpush3.bf16.msra.mxu1 %v3302_v4  ;;  %v3362_v57 = vld [vmem:[%s4442_s0 + $0x234] ss:$52 sps:$4 sm:$0xff]   ;;  %v3379_v4 = vld [vmem:[%s4442_s0 + $0x30] ss:$52 sps:$4 sm:$0xff]  }
  0x73   :  { %1718 = vmatmul.mubr.bf16.gmra.mxu0 %v3267_v53  ;;  %3035 = vmatprep.subr.bf16.mxu1 %v3310_v8  ;;  %v3355_v53 = vld [vmem:[%s4442_s0 + $0x1cc] ss:$52 sps:$4 sm:$0xff]  }
  0x74   :  { %1815 = vmatmul.mubr.bf16.gmra.mxu1 %v3268_v55  ;;  %1725 = vmatprep.mubr.bf16.mxu0 %v3273_v56  ;;  %v3358_v55 = vld [vmem:[%s4442_s0 + $0x1c8] ss:$52 sps:$4 sm:$0xff]   ;;  %v3360_v56 = vld [vmem:[%s4442_s0 + $0x22c] ss:$52 sps:$4 sm:$0xff]  }
  0x75   :  { %1822 = vmatprep.mubr.bf16.mxu1 %v3275_v58  ;;  %2972 = vmatpush3.bf16.msra.mxu0 %v3291_v60  ;;  %v3364_v58 = vld [vmem:[%s4442_s0 + $0x228] ss:$52 sps:$4 sm:$0xff]   ;;  %v3383_v8 = vld [vmem:[%s4442_s0 + $0x100] ss:$52 sps:$4 sm:$0xff]  }
  0x76   :  { %2973 = vmatprep.subr.bf16.mxu0 %v3299_v63  ;;  %3036 = vmatpush3.bf16.msra.mxu1 %v3312_v13  ;;  %v3366_v60 = vld [vmem:[%s4442_s0 + $0x294] ss:$52 sps:$4 sm:$0xff]   ;;  %v3371_v63 = vld [vmem:[%s4442_s0 + $0x298] ss:$52 sps:$4 sm:$0xff]  }
  0x77   :  { %3037 = vmatprep.subr.bf16.mxu1 %v3313_v14 }
  0x79   :  { %2974 = vmatpush3.bf16.msra.mxu0 %v3301_v3  ;;  %v3378_v3 = vld [vmem:[%s4442_s0 + $0x300] ss:$52 sps:$4 sm:$0x1f]  }
  0x7a   :  { %2975 = vmatprep.subr.bf16.mxu0 %v3309_v6  ;;  %3038 = vmatpush3.bf16.msra.mxu1 %v3314_v15  ;;  %v3381_v6 = vld [vmem:[%s4442_s0 + $0x98] ss:$52 sps:$4 sm:$0xff]  }
  0x7b   :  { %1726 = vmatmul.mubr.bf16.gmra.mxu0 %v3277_v62  ;;  %3039 = vmatprep.subr.bf16.mxu1 %v3322_v20  ;;  %v3370_v62 = vld [vmem:[%s4442_s0 + $0x290] ss:$52 sps:$4 sm:$0xff]  }
  0x7c   :  { %1823 = vmatmul.mubr.bf16.gmra.mxu1 %v3278_v0  ;;  %1733 = vmatprep.mubr.bf16.mxu0 %v3283_v1  ;;  %v3373_v0 = vld [vmem:[%s4442_s0 + $0x2fc] ss:$52 sps:$4 sm:$0x1f]   ;;  %v3375_v1 = vld [vmem:[%s4442_s0 + $0x304] ss:$52 sps:$4 sm:$0x1f]  }
  0x7d   :  { %1830 = vmatprep.mubr.bf16.mxu1 %v3285_v5  ;;  %2976 = vmatpush3.bf16.msra.mxu0 %v3311_v11  ;;  %v3380_v5 = vld [vmem:[%s4442_s0 + $0x1d0] ss:$52 sps:$4 sm:$0xff]  }
  0x7e   :  { %2977 = vmatprep.subr.bf16.mxu0 %v3321_v16  ;;  %3040 = vmatpush3.bf16.msra.mxu1 %v3324_v23 }
  0x7f   :  { %3041 = vmatprep.subr.bf16.mxu1 %v3325_v24 }
  0x81   :  { %2978 = vmatpush3.bf16.msra.mxu0 %v3323_v22 }
  0x82   :  { %3042 = vmatpush3.bf16.msra.mxu1 %v3326_v25  ;;  %3103 = vmatprep.subr.bf16.mxu0 %v3333_v26 }
  0x83   :  { %1734 = vmatmul.mubr.bf16.gmra.mxu0 %v3287_v7  ;;  %3127 = vmatprep.subr.bf16.mxu1 %v3333_v26  ;;  %v3382_v7 = vld [vmem:[%s4442_s0 + $0x238] ss:$52 sps:$4 sm:$0xff]  }
  0x84   :  { %1831 = vmatmul.mubr.bf16.gmra.mxu1 %v3288_v9  ;;  %1741 = vmatprep.mubr.bf16.mxu0 %v3293_v10  ;;  %v3384_v9 = vld [vmem:[%s4442_s0 + $0x2a0] ss:$52 sps:$4 sm:$0xff]  }
  0x85   :  { %1838 = vmatprep.mubr.bf16.mxu1 %v3295_v12 }
  0x8b   :  { %1742 = vmatmul.mubr.bf16.gmra.mxu0 %v3297_v17  ;;  %v3385_v17 = vld [vmem:[%s4442_s0 + $0x168] ss:$52 sps:$4 sm:$0xff]  }
  0x8c   :  { %1839 = vmatmul.mubr.bf16.gmra.mxu1 %v3298_v18  ;;  %1749 = vmatprep.mubr.bf16.mxu0 %v3303_v19  ;;  %v3386_v19 = vld [vmem:[%s4442_s0 + $0x308] ss:$52 sps:$4 sm:$0x1f]  }
  0x8d   :  { %1846 = vmatprep.mubr.bf16.mxu1 %v3305_v21 }
  0x93   :  { %1750 = vmatmul.mubr.bf16.gmra.mxu0 %v3307_v27 }
  0x94   :  { %1847 = vmatmul.mubr.bf16.gmra.mxu1 %v3308_v28  ;;  %1757 = vmatprep.mubr.bf16.mxu0 %v3315_v29 }
  0x95   :  { %1854 = vmatprep.mubr.bf16.mxu1 %v3317_v30 }
  0x9b   :  { %1758 = vmatmul.mubr.bf16.gmra.mxu0 %v3319_v31 }
  0x9c   :  { %1855 = vmatmul.mubr.bf16.gmra.mxu1 %v3320_v32  ;;  %1895 = vmatprep.mubr.bf16.mxu0 %v3329_v33 }
  0x9d   :  { %1992 = vmatprep.mubr.bf16.mxu1 %v3332_v34 }
  0xa3   :  { %1896 = vmatmul.mubr.bf16.vlgmr.msra.gmra.mxu0 %v3327_v35 }
  0xa4   :  { %1993 = vmatmul.mubr.bf16.vlgmr.msra.gmra.mxu1 %v3330_v36  ;;  %3104 = vmatpush3.bf16.msra.mxu0 %v3333_v26 }
  0xa5   :  { %1903 = vmatprep.mubr.bf16.mxu0 %v3334_v37  ;;  %2000 = vmatprep.mubr.bf16.mxu1 %v3336_v38 }
  0xa6   :  { %3105 = vmatprep.subr.bf16.mxu0 %v3346_v39  ;;  %3131 = vmatpush3.bf16.msra.mxu1 %v3333_v26 }
  0xa7   :  { %3128 = vmatprep.subr.bf16.mxu1 %v3346_v39 }
  0xa8   :  { %3106 = vmatpush3.bf16.msra.mxu0 %v3346_v39 }
  0xa9   :  { %3107 = vmatprep.subr.bf16.mxu0 %v3359_v40 }
  0xaa   :  { %3132 = vmatpush3.bf16.msra.mxu1 %v3346_v39 }
  0xab   :  { %1904 = vmatmul.mubr.bf16.gmra.mxu0 %v3338_v41  ;;  %3129 = vmatprep.subr.bf16.mxu1 %v3359_v40 }
  0xac   :  { %2001 = vmatmul.mubr.bf16.gmra.mxu1 %v3339_v42  ;;  %1911 = vmatprep.mubr.bf16.mxu0 %v3340_v43 }
  0xad   :  { %2008 = vmatprep.mubr.bf16.mxu1 %v3342_v44  ;;  %3108 = vmatpush3.bf16.msra.mxu0 %v3359_v40 }
  0xae   :  { %3109 = vmatprep.subr.bf16.mxu0 %v3372_v45  ;;  %3133 = vmatpush3.bf16.msra.mxu1 %v3359_v40 }
  0xaf   :  { %3130 = vmatprep.subr.bf16.mxu1 %v3372_v45 }
  0xb1   :  { %3110 = vmatpush3.bf16.msra.mxu0 %v3372_v45 }
  0xb2   :  { %3134 = vmatpush3.bf16.msra.mxu1 %v3372_v45 }
  0xb3   :  { %1912 = vmatmul.mubr.bf16.gmra.mxu0 %v3344_v46 }
  0xb4   :  { %2009 = vmatmul.mubr.bf16.gmra.mxu1 %v3345_v47  ;;  %1919 = vmatprep.mubr.bf16.mxu0 %v3347_v48 }
  0xb5   :  { %2016 = vmatprep.mubr.bf16.mxu1 %v3349_v49 }
  0xbb   :  { %1920 = vmatmul.mubr.bf16.gmra.mxu0 %v3351_v50 }
  0xbc   :  { %2017 = vmatmul.mubr.bf16.gmra.mxu1 %v3352_v51  ;;  %1927 = vmatprep.mubr.bf16.mxu0 %v3353_v52 }
  0xbd   :  { %2024 = vmatprep.mubr.bf16.mxu1 %v3355_v53 }
  0xc3   :  { %1928 = vmatmul.mubr.bf16.gmra.mxu0 %v3357_v54 }
  0xc4   :  { %2025 = vmatmul.mubr.bf16.gmra.mxu1 %v3358_v55  ;;  %1935 = vmatprep.mubr.bf16.mxu0 %v3360_v56 }
  0xc5   :  { %2032 = vmatprep.mubr.bf16.mxu1 %v3362_v57 }
  0xcb   :  { %1936 = vmatmul.mubr.bf16.gmra.mxu0 %v3364_v58 }
  0xcc   :  { %2033 = vmatmul.mubr.bf16.gmra.mxu1 %v3365_v59  ;;  %1943 = vmatprep.mubr.bf16.mxu0 %v3366_v60 }
  0xcd   :  { %2040 = vmatprep.mubr.bf16.mxu1 %v3368_v61 }
  0xd3   :  { %1944 = vmatmul.mubr.bf16.gmra.mxu0 %v3370_v62 }
  0xd4   :  { %2041 = vmatmul.mubr.bf16.gmra.mxu1 %v3371_v63  ;;  %1951 = vmatprep.mubr.bf16.mxu0 %v3373_v0 }
  0xd5   :  { %2048 = vmatprep.mubr.bf16.mxu1 %v3375_v1 }
  0xdb   :  { %1952 = vmatmul.mubr.bf16.gmra.mxu0 %v3377_v2 }
  0xdc   :  { %2049 = vmatmul.mubr.bf16.gmra.mxu1 %v3378_v3  ;;  %3111 = vmatprep.mubr.msk.bf16.mxu0 %vm1450_vm0, %v3379_v4 }
  0xdd   :  { %3119 = vmatprep.mubr.msk.bf16.mxu1 %vm1450_vm0, %v3380_v5 }
  0xe3   :  { %v2723_v10 = vpop.f32.mrf.mxu0  ;;  %3112 = vmatmul.mubr.msk.bf16.vlgmr.msra.gmra.mxu0 %vm1450_vm0, %v3381_v6 }
  0xe4   :  { %v2787_v11 = vpop.f32.mrf.mxu1  ;;  %3120 = vmatmul.mubr.msk.bf16.vlgmr.msra.gmra.mxu1 %vm1450_vm0, %v3382_v7  ;;  %3115 = vmatprep.mubr.msk.bf16.mxu0 %vm1450_vm0, %v3383_v8 }
  0xe5   :  { %v2724_v12 = vpop.f32.mrf.mxu0  ;;  %3123 = vmatprep.mubr.msk.bf16.mxu1 %vm1450_vm0, %v3384_v9 }
  0xe6   :  { %v2725_v13 = vadd.f32 %v2724_v12, %v2723_v10  ;;  %v2788_v14 = vpop.f32.mrf.mxu1 }
  0xe7   :  { %v2789_v15 = vadd.f32 %v2788_v14, %v2787_v11  ;;  %v2726_v16 = vpop.f32.mrf.mxu0 }
  0xe8   :  { %v2790_v18 = vpop.f32.mrf.mxu1 }
  0xe9   :  { %v4032_v20 = vadd.f32 %v2789_v15, %v2725_v13  ;;  %v2727_v21 = vpop.f32.mrf.mxu0 }
  0xea   :  { %v2728_v22 = vadd.f32 %v2727_v21, %v2726_v16  ;;  %v2791_v23 = vpop.f32.mrf.mxu1 }
  0xeb   :  { %v2792_v24 = vadd.f32 %v2791_v23, %v2790_v18  ;;  %v2729_v25 = vpop.f32.mrf.mxu0  ;;  %3116 = vmatmul.mubr.msk.bf16.gmra.mxu0 %vm1450_vm0, %v3385_v17 }
  0xec   :  { %v2793_v26 = vpop.f32.mrf.mxu1  ;;  %3124 = vmatmul.mubr.msk.bf16.gmra.mxu1 %vm1450_vm0, %v3386_v19 }
  0xed   :  { %v4036_v27 = vadd.f32 %v2792_v24, %v2728_v22  ;;  %v2730_v28 = vpop.f32.mrf.mxu0 }
  0xee   :  { %v2731_v29 = vadd.f32 %v2730_v28, %v2729_v25  ;;  %v2794_v30 = vpop.f32.mrf.mxu1 }
  0xef   :  { %v2795_v31 = vadd.f32 %v2794_v30, %v2793_v26  ;;  %v2732_v32 = vpop.f32.mrf.mxu0 }
  0xf0   :  { %v2796_v33 = vpop.f32.mrf.mxu1 }
  0xf1   :  { %v4038_v34 = vadd.f32 %v2795_v31, %v2731_v29  ;;  %v2733_v35 = vpop.f32.mrf.mxu0 }
  0xf2   :  { %v2734_v36 = vadd.f32 %v2733_v35, %v2732_v32  ;;  %v2797_v37 = vpop.f32.mrf.mxu1 }
  0xf3   :  { %v2798_v38 = vadd.f32 %v2797_v37, %v2796_v33  ;;  %v2735_v39 = vpop.f32.mrf.mxu0 }
  0xf4   :  { %v2799_v40 = vpop.f32.mrf.mxu1 }
  0xf5   :  { %v4040_v41 = vadd.f32 %v2798_v38, %v2734_v36  ;;  %v2736_v42 = vpop.f32.mrf.mxu0 }
  0xf6   :  { %v2737_v43 = vadd.f32 %v2736_v42, %v2735_v39  ;;  %v2800_v44 = vpop.f32.mrf.mxu1 }
  0xf7   :  { %v2801_v45 = vadd.f32 %v2800_v44, %v2799_v40  ;;  %v2738_v46 = vpop.f32.mrf.mxu0 }
  0xf8   :  { %v2802_v47 = vpop.f32.mrf.mxu1 }
  0xf9   :  { %v4042_v48 = vadd.f32 %v2801_v45, %v2737_v43  ;;  %v2739_v49 = vpop.f32.mrf.mxu0 }
  0xfa   :  { %v2740_v50 = vadd.f32 %v2739_v49, %v2738_v46  ;;  %v2803_v51 = vpop.f32.mrf.mxu1 }
  0xfb   :  { %v2804_v52 = vadd.f32 %v2803_v51, %v2802_v47  ;;  %v2741_v53 = vpop.f32.mrf.mxu0 }
  0xfc   :  { %v2805_v54 = vpop.f32.mrf.mxu1 }
  0xfd   :  { %v4044_v55 = vadd.f32 %v2804_v52, %v2740_v50  ;;  %v2742_v56 = vpop.f32.mrf.mxu0 }
  0xfe   :  { %v2743_v57 = vadd.f32 %v2742_v56, %v2741_v53  ;;  %v2806_v58 = vpop.f32.mrf.mxu1 }
  0xff   :  { %v2807_v59 = vadd.f32 %v2806_v58, %v2805_v54  ;;  %v2744_v60 = vpop.f32.mrf.mxu0 }
 0x100   :  { %v2808_v61 = vpop.f32.mrf.mxu1 }
 0x101   :  { %v4046_v62 = vadd.f32 %v2807_v59, %v2743_v57  ;;  %v2745_v63 = vpop.f32.mrf.mxu0 }
 0x102   :  { %v2746_v0 = vadd.f32 %v2745_v63, %v2744_v60  ;;  %v2809_v1 = vpop.f32.mrf.mxu1 }
 0x103   :  { %v2810_v2 = vadd.f32 %v2809_v1, %v2808_v61  ;;  %v2747_v3 = vpop.f32.mrf.mxu0 }
 0x104   :  { %v2811_v4 = vpop.f32.mrf.mxu1 }
 0x105   :  { %v4048_v5 = vadd.f32 %v2810_v2, %v2746_v0  ;;  %v2748_v6 = vpop.f32.mrf.mxu0 }
 0x106   :  { %v2749_v7 = vadd.f32 %v2748_v6, %v2747_v3  ;;  %v2812_v8 = vpop.f32.mrf.mxu1 }
 0x107   :  { %v2813_v9 = vadd.f32 %v2812_v8, %v2811_v4  ;;  %v2750_v10 = vpop.f32.mrf.mxu0 }
 0x108   :  { %v2814_v11 = vpop.f32.mrf.mxu1 }
 0x109   :  { %v4050_v12 = vadd.f32 %v2813_v9, %v2749_v7  ;;  %v2751_v13 = vpop.f32.mrf.mxu0 }
 0x10a   :  { %v2752_v14 = vadd.f32 %v2751_v13, %v2750_v10  ;;  %v2815_v15 = vpop.f32.mrf.mxu1 }
 0x10b   :  { %v2816_v16 = vadd.f32 %v2815_v15, %v2814_v11  ;;  %v2753_v17 = vpop.f32.mrf.mxu0 }
 0x10c   :  { %v2817_v18 = vpop.f32.mrf.mxu1 }
 0x10d   :  { %v4052_v19 = vadd.f32 %v2816_v16, %v2752_v14  ;;  %v2754_v21 = vpop.f32.mrf.mxu0 }
 0x10e   :  { %v2755_v22 = vadd.f32 %v2754_v21, %v2753_v17  ;;  %v2818_v23 = vpop.f32.mrf.mxu1 }
 0x10f   :  { %v2819_v24 = vadd.f32 %v2818_v23, %v2817_v18  ;;  %v2756_v25 = vpop.f32.mrf.mxu0 }
 0x110   :  { %v2820_v26 = vpop.f32.mrf.mxu1 }
 0x111   :  { %v4054_v28 = vadd.f32 %v2819_v24, %v2755_v22  ;;  %v2757_v29 = vpop.f32.mrf.mxu0 }
 0x112   :  { %v2758_v30 = vadd.f32 %v2757_v29, %v2756_v25  ;;  %v2821_v31 = vpop.f32.mrf.mxu1 }
 0x113   :  { %v2822_v32 = vadd.f32 %v2821_v31, %v2820_v26  ;;  %v2759_v33 = vpop.f32.mrf.mxu0 }
 0x114   :  { %v2823_v35 = vpop.f32.mrf.mxu1 }
 0x115   :  { %v4056_v36 = vadd.f32 %v2822_v32, %v2758_v30  ;;  %v2760_v37 = vpop.f32.mrf.mxu0 }
 0x116   :  { %v2761_v38 = vadd.f32 %v2760_v37, %v2759_v33  ;;  %v2824_v39 = vpop.f32.mrf.mxu1 }
 0x117   :  { %v2825_v40 = vadd.f32 %v2824_v39, %v2823_v35  ;;  %v2762_v42 = vpop.f32.mrf.mxu0 }
 0x118   :  { %v2826_v43 = vpop.f32.mrf.mxu1 }
 0x119   :  { %v4058_v44 = vadd.f32 %v2825_v40, %v2761_v38  ;;  %v2763_v45 = vpop.f32.mrf.mxu0 }
 0x11a   :  { %v2764_v46 = vadd.f32 %v2763_v45, %v2762_v42  ;;  %v2827_v47 = vpop.f32.mrf.mxu1 }
 0x11b   :  { %v2828_v49 = vadd.f32 %v2827_v47, %v2826_v43  ;;  %v2765_v50 = vpop.f32.mrf.mxu0 }
 0x11c   :  { %v2829_v51 = vpop.f32.mrf.mxu1 }
 0x11d   :  { %v4060_v52 = vadd.f32 %v2828_v49, %v2764_v46  ;;  %v2766_v53 = vpop.f32.mrf.mxu0 }
 0x11e   :  { %v2767_v54 = vadd.f32 %v2766_v53, %v2765_v50  ;;  %v2830_v56 = vpop.f32.mrf.mxu1 }
 0x11f   :  { %v2831_v57 = vadd.f32 %v2830_v56, %v2829_v51  ;;  %v2768_v58 = vpop.f32.mrf.mxu0 }
 0x120   :  { %v2832_v59 = vpop.f32.mrf.mxu1 }
 0x121   :  { %v4062_v60 = vadd.f32 %v2831_v57, %v2767_v54  ;;  %v2769_v61 = vpop.f32.mrf.mxu0 }
 0x122   :  { %v2770_v63 = vadd.f32 %v2769_v61, %v2768_v58  ;;  %v2833_v0 = vpop.f32.mrf.mxu1 }
 0x123   :  { %v2834_v1 = vadd.f32 %v2833_v0, %v2832_v59  ;;  %v2851_v2 = vpop.f32.mrf.mxu0 }
 0x124   :  { %v2915_v3 = vpop.f32.mrf.mxu1 }
 0x125   :  { %v4064_v4 = vadd.f32 %v2834_v1, %v2770_v63  ;;  %v2852_v6 = vpop.f32.mrf.mxu0 }
 0x126   :  { %v2853_v7 = vadd.f32 %v2852_v6, %v2851_v2  ;;  %v2916_v8 = vpop.f32.mrf.mxu1 }
 0x127   :  { %v2917_v9 = vadd.f32 %v2916_v8, %v2915_v3  ;;  %v2854_v10 = vpop.f32.mrf.mxu0 }
 0x128   :  { %v1704_v11 = vadd.f32 %v2853_v7, %v4032_v20  ;;  %v2918_v13 = vpop.f32.mrf.mxu1 }
 0x129   :  { %v2855_v14 = vpop.f32.mrf.mxu0 }
 0x12a   :  { %v4067_v15 = vadd.f32 %v2917_v9, %v1704_v11  ;;  %v2856_v16 = vadd.f32 %v2855_v14, %v2854_v10  ;;  %v2919_v17 = vpop.f32.mrf.mxu1 }
 0x12b   :  { %v2920_v18 = vadd.f32 %v2919_v17, %v2918_v13  ;;  %v2857_v21 = vpop.f32.mrf.mxu0 }
 0x12c   :  { %v1707_v22 = vadd.f32 %v2856_v16, %v4036_v27  ;;  %v2921_v23 = vpop.f32.mrf.mxu1 }
 0x12d   :  { %v2858_v24 = vpop.f32.mrf.mxu0 }
 0x12e   :  { %v4070_v25 = vadd.f32 %v2920_v18, %v1707_v22  ;;  %v2859_v26 = vadd.f32 %v2858_v24, %v2857_v21  ;;  %v2922_v29 = vpop.f32.mrf.mxu1 }
 0x12f   :  { %v2923_v30 = vadd.f32 %v2922_v29, %v2921_v23  ;;  %v2860_v31 = vpop.f32.mrf.mxu0 }
 0x130   :  { %v1712_v20 = vadd.f32 %v2859_v26, %v4038_v34  ;;  %v2924_v32 = vpop.f32.mrf.mxu1 }
 0x131   :  { %v2861_v33 = vpop.f32.mrf.mxu0 }
 0x132   :  { %v4073_v35 = vadd.f32 %v2923_v30, %v1712_v20  ;;  %v2862_v37 = vadd.f32 %v2861_v33, %v2860_v31  ;;  %v2925_v38 = vpop.f32.mrf.mxu1 }
 0x133   :  { %v2926_v39 = vadd.f32 %v2925_v38, %v2924_v32  ;;  %v2863_v40 = vpop.f32.mrf.mxu0 }
 0x134   :  { %v1715_v27 = vadd.f32 %v2862_v37, %v4040_v41  ;;  %v2927_v42 = vpop.f32.mrf.mxu1 }
 0x135   :  { %v2864_v43 = vpop.f32.mrf.mxu0 }
 0x136   :  { %v4076_v45 = vadd.f32 %v2926_v39, %v1715_v27  ;;  %v2865_v46 = vadd.f32 %v2864_v43, %v2863_v40  ;;  %v2928_v47 = vpop.f32.mrf.mxu1 }
 0x137   :  { %v2929_v49 = vadd.f32 %v2928_v47, %v2927_v42  ;;  %v2866_v50 = vpop.f32.mrf.mxu0 }
 0x138   :  { %v1720_v34 = vadd.f32 %v2865_v46, %v4042_v48  ;;  %v2930_v51 = vpop.f32.mrf.mxu1 }
 0x139   :  { %v2867_v53 = vpop.f32.mrf.mxu0 }
 0x13a   :  { %v4079_v54 = vadd.f32 %v2929_v49, %v1720_v34  ;;  %v2868_v56 = vadd.f32 %v2867_v53, %v2866_v50  ;;  %v2931_v57 = vpop.f32.mrf.mxu1 }
 0x13b   :  { %v2932_v58 = vadd.f32 %v2931_v57, %v2930_v51  ;;  %v2869_v59 = vpop.f32.mrf.mxu0 }
 0x13c   :  { %v1723_v41 = vadd.f32 %v2868_v56, %v4044_v55  ;;  %v2933_v61 = vpop.f32.mrf.mxu1 }
 0x13d   :  { %v2870_v63 = vpop.f32.mrf.mxu0 }
 0x13e   :  { %v4082_v0 = vadd.f32 %v2932_v58, %v1723_v41  ;;  %v2871_v1 = vadd.f32 %v2870_v63, %v2869_v59  ;;  %v2934_v2 = vpop.f32.mrf.mxu1 }
 0x13f   :  { %v2935_v3 = vadd.f32 %v2934_v2, %v2933_v61  ;;  %v2872_v6 = vpop.f32.mrf.mxu0 }
 0x140   :  { %v1728_v48 = vadd.f32 %v2871_v1, %v4046_v62  ;;  %v2936_v7 = vpop.f32.mrf.mxu1 }
 0x141   :  { %v2873_v8 = vpop.f32.mrf.mxu0 }
 0x142   :  { %v4085_v9 = vadd.f32 %v2935_v3, %v1728_v48  ;;  %v2874_v10 = vadd.f32 %v2873_v8, %v2872_v6  ;;  %v2937_v11 = vpop.f32.mrf.mxu1 }
 0x143   :  { %v2938_v13 = vadd.f32 %v2937_v11, %v2936_v7  ;;  %v2875_v14 = vpop.f32.mrf.mxu0 }
 0x144   :  { %v1731_v55 = vadd.f32 %v2874_v10, %v4048_v5  ;;  %v2939_v16 = vpop.f32.mrf.mxu1 }
 0x145   :  { %v2876_v17 = vpop.f32.mrf.mxu0 }
 0x146   :  { %v4088_v18 = vadd.f32 %v2938_v13, %v1731_v55  ;;  %v2877_v21 = vadd.f32 %v2876_v17, %v2875_v14  ;;  %v2940_v22 = vpop.f32.mrf.mxu1 }
 0x147   :  { %v2941_v23 = vadd.f32 %v2940_v22, %v2939_v16  ;;  %v2878_v24 = vpop.f32.mrf.mxu0 }
 0x148   :  { %v1736_v62 = vadd.f32 %v2877_v21, %v4050_v12  ;;  %v2942_v26 = vpop.f32.mrf.mxu1 }
 0x149   :  { %v2879_v29 = vpop.f32.mrf.mxu0 }
 0x14a   :  { %v4091_v30 = vadd.f32 %v2941_v23, %v1736_v62  ;;  %v2880_v31 = vadd.f32 %v2879_v29, %v2878_v24  ;;  %v2943_v20 = vpop.f32.mrf.mxu1 }
 0x14b   :  { %v2944_v32 = vadd.f32 %v2943_v20, %v2942_v26  ;;  %v2881_v33 = vpop.f32.mrf.mxu0 }
 0x14c   :  { %v1739_v5 = vadd.f32 %v2880_v31, %v4052_v19  ;;  %v2945_v37 = vpop.f32.mrf.mxu1 }
 0x14d   :  { %v2882_v38 = vpop.f32.mrf.mxu0 }
 0x14e   :  { %v4094_v39 = vadd.f32 %v2944_v32, %v1739_v5  ;;  %v2883_v40 = vadd.f32 %v2882_v38, %v2881_v33  ;;  %v2946_v27 = vpop.f32.mrf.mxu1 }
 0x14f   :  { %v2947_v42 = vadd.f32 %v2946_v27, %v2945_v37  ;;  %v2884_v43 = vpop.f32.mrf.mxu0 }
 0x150   :  { %v1744_v12 = vadd.f32 %v2883_v40, %v4054_v28  ;;  %v2948_v46 = vpop.f32.mrf.mxu1 }
 0x151   :  { %v2885_v47 = vpop.f32.mrf.mxu0 }
 0x152   :  { %v4097_v49 = vadd.f32 %v2947_v42, %v1744_v12  ;;  %v2886_v50 = vadd.f32 %v2885_v47, %v2884_v43  ;;  %v2949_v34 = vpop.f32.mrf.mxu1 }
 0x153   :  { %v2950_v51 = vadd.f32 %v2949_v34, %v2948_v46  ;;  %v2887_v53 = vpop.f32.mrf.mxu0 }
 0x154   :  { %4447 = vst [vmem:[#allocation2_spill] sm:$0xff] %v4097_v49  ;;  %v1747_v19 = vadd.f32 %v2886_v50, %v4056_v36  ;;  %v2951_v56 = vpop.f32.mrf.mxu1 }
 0x155   :  { %v2888_v57 = vpop.f32.mrf.mxu0 }
 0x156   :  { %v4100_v58 = vadd.f32 %v2950_v51, %v1747_v19  ;;  %v2889_v59 = vadd.f32 %v2888_v57, %v2887_v53  ;;  %v2952_v41 = vpop.f32.mrf.mxu1 }
 0x157   :  { %v2953_v61 = vadd.f32 %v2952_v41, %v2951_v56  ;;  %v2890_v63 = vpop.f32.mrf.mxu0 }
 0x158   :  { %4448 = vst [vmem:[#allocation3_spill] sm:$0xff] %v4100_v58  ;;  %v1752_v28 = vadd.f32 %v2889_v59, %v4058_v44  ;;  %v2954_v1 = vpop.f32.mrf.mxu1 }
 0x159   :  { %v2891_v2 = vpop.f32.mrf.mxu0 }
 0x15a   :  { %v4103_v3 = vadd.f32 %v2953_v61, %v1752_v28  ;;  %v2892_v6 = vadd.f32 %v2891_v2, %v2890_v63  ;;  %v2955_v48 = vpop.f32.mrf.mxu1 }
 0x15b   :  { %v2956_v7 = vadd.f32 %v2955_v48, %v2954_v1  ;;  %v2893_v8 = vpop.f32.mrf.mxu0 }
 0x15c   :  { %4449 = vst [vmem:[#allocation4_spill] sm:$0xff] %v4103_v3  ;;  %v1755_v36 = vadd.f32 %v2892_v6, %v4060_v52  ;;  %v2957_v10 = vpop.f32.mrf.mxu1 }
 0x15d   :  { %v2894_v11 = vpop.f32.mrf.mxu0 }
 0x15e   :  { %v4106_v13 = vadd.f32 %v2956_v7, %v1755_v36  ;;  %v2895_v14 = vadd.f32 %v2894_v11, %v2893_v8  ;;  %v2958_v55 = vpop.f32.mrf.mxu1 }
 0x15f   :  { %v2959_v16 = vadd.f32 %v2958_v55, %v2957_v10  ;;  %v2896_v17 = vpop.f32.mrf.mxu0 }
 0x160   :  { %4450 = vst [vmem:[#allocation5_spill] sm:$0xff] %v4106_v13  ;;  %v1760_v44 = vadd.f32 %v2895_v14, %v4062_v60  ;;  %v2960_v21 = vpop.f32.mrf.mxu1 }
 0x161   :  { %v2897_v22 = vpop.f32.mrf.mxu0 }
 0x162   :  { %v4109_v23 = vadd.f32 %v2959_v16, %v1760_v44  ;;  %v2898_v24 = vadd.f32 %v2897_v22, %v2896_v17  ;;  %v2961_v62 = vpop.f32.mrf.mxu1 }
 0x163   :  { %v2962_v26 = vadd.f32 %v2961_v62, %v2960_v21  ;;  %v2979_v29 = vpop.f32.mrf.mxu0 }
 0x164   :  { %4451 = vst [vmem:[#allocation6_spill] sm:$0xff] %v4109_v23  ;;  %v1763_v52 = vadd.f32 %v2898_v24, %v4064_v4  ;;  %v4112_v31 = vpop.f32.mrf.mxu1 }
 0x165   :  { %v2980_v20 = vpop.f32.mrf.mxu0 }
 0x166   :  { %v4114_v32 = vadd.f32 %v2962_v26, %v1763_v52  ;;  %v2981_v33 = vadd.f32 %v2980_v20, %v2979_v29  ;;  %v4116_v5 = vpop.f32.mrf.mxu1 }
 0x167   :  { %v2982_v37 = vpop.f32.mrf.mxu0 }
 0x168   :  { %4452 = vst [vmem:[#allocation7_spill] sm:$0xff] %v4114_v32  ;;  %v4119_v60 = vadd.f32 %v2981_v33, %v4067_v15  ;;  %v4121_v38 = vpop.f32.mrf.mxu1 }
 0x169   :  { %v2983_v40 = vpop.f32.mrf.mxu0 }
 0x16a   :  { %v4123_v27 = vpop.f32.mrf.mxu1 }
 0x16b   :  { %v2985_v42 = vpop.f32.mrf.mxu0 }
 0x16c   :  { %v4125_v43 = vpop.f32.mrf.mxu1 }
 0x16d   :  { %v2986_v4 = vpop.f32.mrf.mxu0 }
 0x16e   :  { %v4127_v12 = vpop.f32.mrf.mxu1 }
 0x16f   :  { %v2988_v46 = vpop.f32.mrf.mxu0 }
 0x170   :  { %v4129_v47 = vpop.f32.mrf.mxu1 }
 0x171   :  { %v2989_v50 = vpop.f32.mrf.mxu0 }
 0x172   :  { %v3053_v34 = vpop.f32.mrf.mxu1 }
 0x173   :  { %v2991_v51 = vpop.f32.mrf.mxu0 }
 0x174   :  { %v4131_v53 = vpop.f32.mrf.mxu1 }
 0x175   :  { %v2992_v15 = vpop.f32.mrf.mxu0 }
 0x176   :  { %v4133_v19 = vpop.f32.mrf.mxu1 }
 0x177   :  { %v2994_v56 = vpop.f32.mrf.mxu0 }
 0x178   :  { %v4135_v57 = vpop.f32.mrf.mxu1 }
 0x179   :  { %v2995_v59 = vpop.f32.mrf.mxu0 }
 0x17a   :  { %v4137_v41 = vpop.f32.mrf.mxu1 }
 0x17b   :  { %v2997_v61 = vpop.f32.mrf.mxu0 }
 0x17c   :  { %v4139_v63 = vpop.f32.mrf.mxu1 }
 0x17d   :  { %v2998_v28 = vpop.f32.mrf.mxu0 }
 0x17e   :  { %v4141_v1 = vpop.f32.mrf.mxu1 }
 0x17f   :  { %v3000_v2 = vpop.f32.mrf.mxu0 }
 0x180   :  { %v4143_v6 = vpop.f32.mrf.mxu1 }
 0x181   :  { %v3001_v48 = vpop.f32.mrf.mxu0 }
 0x182   :  { %v4145_v7 = vpop.f32.mrf.mxu1 }
 0x183   :  { %v4147_v8 = vpop.f32.mrf.mxu0 }
 0x184   :  { %v4149_v36 = vpop.f32.mrf.mxu1 }
 0x185   :  { %v4151_v10 = vpop.f32.mrf.mxu0 }
 0x186   :  { %v4153_v11 = vpop.f32.mrf.mxu1 }
 0x187   :  { %v4155_v14 = vpop.f32.mrf.mxu0 }
 0x188   :  { %v4157_v55 = vpop.f32.mrf.mxu1 }
 0x189   :  { %v4159_v16 = vpop.f32.mrf.mxu0 }
 0x18a   :  { %v4161_v17 = vpop.f32.mrf.mxu1 }
 0x18b   :  { %v4163_v44 = vpop.f32.mrf.mxu0 }
 0x18c   :  { %v4165_v21 = vpop.f32.mrf.mxu1 }
 0x18d   :  { %4453 = vst [vmem:[#allocation8_spill] sm:$0xff] %v4165_v21  ;;  %v4167_v22 = vpop.f32.mrf.mxu0 }
 0x18e   :  { %v4169_v24 = vpop.f32.mrf.mxu1 }
 0x18f   :  { %4454 = vst [vmem:[#allocation9_spill] sm:$0xff] %v4169_v24  ;;  %v4171_v62 = vpop.f32.mrf.mxu0 }
 0x190   :  { %v4173_v26 = vpop.f32.mrf.mxu1 }
 0x191   :  { %4455 = vst [vmem:[#allocation10_spill] sm:$0xff] %v4173_v26  ;;  %v4175_v29 = vpop.f32.mrf.mxu0 }
 0x192   :  { %v4177_v52 = vpop.f32.mrf.mxu1 }
 0x193   :  { %4456 = vst [vmem:[#allocation11_spill] sm:$0xff] %v4177_v52  ;;  %v4179_v20 = vpop.f32.mrf.mxu0 }
 0x194   :  { %4457 = vst [vmem:[#allocation12_spill] sm:$0xff] %v4179_v20  ;;  %v4181_v33 = vpop.f32.mrf.mxu1 }
 0x195   :  { %4458 = vst [vmem:[#allocation13_spill] sm:$0xff] %v4181_v33  ;;  %v4183_v23 = vpop.f32.mrf.mxu0 }
 0x196   :  { %4459 = vst [vmem:[#allocation14_spill] sm:$0xff] %v4183_v23  ;;  %v4185_v32 = vpop.f32.mrf.mxu1  ;;  %v2984_v23 = vadd.f32 %v2983_v40, %v2982_v37  ;;  %v2993_v37 = vadd.f32 %v2992_v15, %v2991_v51 }
 0x197   :  { %4460 = vst [vmem:[#allocation15_spill] sm:$0xff] %v4185_v32  ;;  %v4187_v13 = vpop.f32.mrf.mxu0 }
 0x198   :  { %4461 = vst [vmem:[#allocation16_spill] sm:$0xff] %v4187_v13  ;;  %v4189_v3 = vpop.f32.mrf.mxu1 }
 0x199   :  { %4462 = vst [vmem:[#allocation17_spill] sm:$0xff] %v4189_v3  ;;  %v4191_v58 = vpop.f32.mrf.mxu0  ;;  %v2987_v3 = vadd.f32 %v2986_v4, %v2985_v42  ;;  %v3051_v42 = vadd.f32 %v4127_v12, %v4125_v43 }
 0x19a   :  { %4463 = vst [vmem:[#allocation18_spill] sm:$0xff] %v4191_v58  ;;  %v4193_v24 = vpop.f32.mrf.mxu1  ;;  %v2990_v58 = vadd.f32 %v2989_v50, %v2988_v46  ;;  %v3054_v46 = vadd.f32 %v3053_v34, %v4129_v47 }
 0x19b   :  { %4464 = vst [vmem:[#allocation19_spill] sm:$0xff] %v4193_v24  ;;  %v4195_v26 = vpop.f32.mrf.mxu0 }
 0x19c   :  { %4465 = vst [vmem:[#allocation20_spill] sm:$0xff] %v4195_v26  ;;  %v4197_v21 = vpop.f32.mrf.mxu1  ;;  %v3045_v26 = vadd.f32 %v4116_v5, %v4112_v31  ;;  %v1909_v4 = vadd.f32 %v2990_v58, %v4076_v45  ;;  %v2996_v5 = vadd.f32 %v2995_v59, %v2994_v56  ;;  %v3002_v45 = vadd.f32 %v3001_v48, %v3000_v2 }
 0x19d   :  { %4466 = vst [vmem:[#allocation21_spill] sm:$0xff] %v4197_v21  ;;  %v4199_v52 = vpop.f32.mrf.mxu0  ;;  %v1901_v21 = vadd.f32 %v2984_v23, %v4070_v25  ;;  %v3063_v59 = vadd.f32 %v4141_v1, %v4139_v63  ;;  %v3008_v48 = vadd.f32 %v4159_v16, %v4155_v14  ;;  %v3069_v1 = vadd.f32 %v4153_v11, %v4149_v36 }
 0x19e   :  { %4467 = vst [vmem:[#allocation22_spill] sm:$0xff] %v4199_v52  ;;  %v4201_v49 = vpop.f32.mrf.mxu1  ;;  %v1995_v25 = vadd.f32 %v3045_v26, %v4119_v60  ;;  %v2006_v58 = vadd.f32 %v3054_v46, %v1909_v4  ;;  %v1917_v60 = vadd.f32 %v2996_v5, %v4082_v0  ;;  %v3014_v14 = vadd.f32 %v4175_v29, %v4171_v62  ;;  %v4472_v4 = vld [vmem:[#allocation2_spill] sm:$0xff]  ;;  %v4474_v5 = vld [vmem:[#allocation9_spill] sm:$0xff] }
 0x19f   :  { %4468 = vst [vmem:[#allocation23_spill] sm:$0xff] %v4201_v49  ;;  %v4203_v33 = vpop.f32.mrf.mxu0  ;;  %v3048_v49 = vadd.f32 %v4123_v27, %v4121_v38  ;;  %v1914_v38 = vadd.f32 %v2993_v37, %v4079_v54  ;;  %v3057_v27 = vadd.f32 %v4133_v19, %v4131_v53  ;;  %v3060_v54 = vadd.f32 %v4137_v41, %v4135_v57 }
 0x1a0   :  { %v4205_v32 = vpop.f32.mrf.mxu1  ;;  %v1925_v57 = vadd.f32 %v3002_v45, %v4088_v18  ;;  %v3066_v41 = vadd.f32 %v4145_v7, %v4143_v6  ;;  %v3011_v18 = vadd.f32 %v4167_v22, %v4163_v44  ;;  %v1933_v37 = vadd.f32 %v3008_v48, %v4094_v39  ;;  %v4470_v44 = vld [vmem:[#allocation12_spill] sm:$0xff]  ;;  %v4471_v22 = vld [vmem:[#allocation14_spill] sm:$0xff] }
 0x1a1   :  { %4469 = vst [vmem:[#allocation24_spill] sm:$0xff] %v4205_v32  ;;  %v4207_v13 = vpop.f32.mrf.mxu0  ;;  %v1906_v32 = vadd.f32 %v2987_v3, %v4073_v35  ;;  %v1998_v23 = vadd.f32 %v3048_v49, %v1901_v21  ;;  %v2999_v35 = vadd.f32 %v2998_v28, %v2997_v61  ;;  %v2011_v53 = vadd.f32 %v3057_v27, %v1914_v38 }
 0x1a2   :  { %v4209_v20 = vpop.f32.mrf.mxu1  ;;  %v2022_v26 = vadd.f32 %v3066_v41, %v1925_v57  ;;  %v1938_v46 = vadd.f32 %v3011_v18, %v4472_v4 }
 0x1a3   :  { %v3113_v24 = vpop.f32.mrf.mxu0  ;;  %v2003_v3 = vadd.f32 %v3051_v42, %v1906_v32  ;;  %v3005_v32 = vadd.f32 %v4151_v10, %v4147_v8  ;;  %v1922_v56 = vadd.f32 %v2999_v35, %v4085_v9  ;;  %v2014_v10 = vadd.f32 %v3060_v54, %v1917_v60  ;;  %v4479_v35 = vld [vmem:[#allocation18_spill] sm:$0xff]  ;;  %v4480_v60 = vld [vmem:[#allocation4_spill] sm:$0xff] }
 0x1a4   :  { %v4216_v52 = vpop.f32.mrf.mxu1 }
 0x1a5   :  { %v2091_v40 = vpop.f32.mrf.mxu0  ;;  %v4236_v49 = vadd.f32 %v3113_v24, %v2003_v3  ;;  %v1930_v63 = vadd.f32 %v3005_v32, %v4091_v30  ;;  %v2019_v6 = vadd.f32 %v3063_v59, %v1922_v56  ;;  %v3072_v30 = vadd.f32 %v4161_v17, %v4157_v55  ;;  %v4476_v55 = vld [vmem:[#allocation10_spill] sm:$0xff]  ;;  %v4477_v17 = vld [vmem:[#allocation11_spill] sm:$0xff]  ;;  %v4483_v56 = vld [vmem:[#allocation20_spill] sm:$0xff] }
 0x1a6   :  { %v2123_v50 = vpop.f32.mrf.mxu1  ;;  %v4227_v15 = vadd.f32 %v2091_v40, %v1995_v25  ;;  %v3017_v40 = vadd.f32 %v4471_v22, %v4470_v44  ;;  %v4475_v25 = vld [vmem:[#allocation3_spill] sm:$0xff]  ;;  %v3078_v38 = vadd.f32 %v4477_v17, %v4476_v55  ;;  %v4484_v59 = vld [vmem:[#allocation22_spill] sm:$0xff] }
 0x1a7   :  { %v3114_v31 = vpop.f32.mrf.mxu0  ;;  %v2027_v42 = vadd.f32 %v3069_v1, %v1930_v63  ;;  %v4482_v32 = vld [vmem:[#allocation15_spill] sm:$0xff]  ;;  %v4486_v63 = vld [vmem:[#allocation17_spill] sm:$0xff] }
 0x1a8   :  { %v4231_v12 = vpop.f32.mrf.mxu1  ;;  %v4245_v61 = vadd.f32 %v3114_v31, %v2006_v58  ;;  %v4473_v31 = vld [vmem:[#allocation8_spill] sm:$0xff]  ;;  %v2030_v58 = vadd.f32 %v3072_v30, %v1933_v37  ;;  %v1946_v54 = vadd.f32 %v3017_v40, %v4480_v60  ;;  %v4487_v1 = vld [vmem:[#allocation19_spill] sm:$0xff]  ;;  %v4491_v30 = vld [vmem:[#allocation21_spill] sm:$0xff] }
 0x1a9   :  { %v2094_v51 = vpop.f32.mrf.mxu0  ;;  %v3075_v62 = vadd.f32 %v4474_v5, %v4473_v31  ;;  %v4285_v45 = vadd.f32 %v2123_v50, %v2027_v42 }
 0x1aa   :  { %v4229_v43 = vadd.f32 %v2094_v51, %v1998_v23  ;;  %v2126_v28 = vpop.f32.mrf.mxu1  ;;  %v1941_v23 = vadd.f32 %v3014_v14, %v4475_v25  ;;  %v4478_v51 = vld [vmem:[#allocation16_spill] sm:$0xff] }
 0x1ab   :  { %v3117_v47 = vpop.f32.mrf.mxu0  ;;  %v3020_v3 = vadd.f32 %v4479_v35, %v4478_v51  ;;  %v2035_v57 = vadd.f32 %v3075_v62, %v1938_v46  ;;  %v4295_v41 = vadd.f32 %v2126_v28, %v2030_v58 }
 0x1ac   :  { %v2154_v34 = vadd.f32 %v4229_v43, %v4227_v15  ;;  %v3125_v16 = vpop.f32.mrf.mxu1  ;;  %v4269_v36 = vadd.f32 %v3117_v47, %v2019_v6 }
 0x1ad   :  { %v2107_v19 = vpop.f32.mrf.mxu0  ;;  %v4302_v18 = vadd.f32 %v4216_v52, %v2035_v57 }
 0x1ae   :  { %v2155_v0 = vadd.f32 %v2154_v34, %v4236_v49  ;;  %v4253_v8 = vadd.f32 %v2107_v19, %v2011_v53  ;;  %v2139_v27 = vpop.f32.mrf.mxu1  ;;  %v4481_v34 = vld [vmem:[#allocation13_spill] sm:$0xff]  ;;  %v3026_v19 = vadd.f32 %v4207_v13, %v4203_v33  ;;  %v4488_v33 = vld [vmem:[#allocation7_spill] sm:$0xff] }
 0x1af   :  { %v3118_v2 = vpop.f32.mrf.mxu0  ;;  %v3081_v53 = vadd.f32 %v4482_v32, %v4481_v34 }
 0x1b0   :  { %v2156_v9 = vadd.f32 %v2155_v0, %v4245_v61  ;;  %v4277_v29 = vadd.f32 %v3118_v2, %v2022_v26  ;;  %v3023_v0 = vadd.f32 %v4484_v59, %v4483_v56  ;;  %v2038_v2 = vadd.f32 %v3078_v38, %v1941_v23  ;;  %v3126_v48 = vpop.f32.mrf.mxu1  ;;  %v4490_v26 = vld [vmem:[#allocation6_spill] sm:$0xff] }
 0x1b1   :  { %v2110_v21 = vpop.f32.mrf.mxu0  ;;  %v1957_v6 = vadd.f32 %v3026_v19, %v4488_v33  ;;  %v2043_v14 = vadd.f32 %v3081_v53, %v1946_v54 }
 0x1b2   :  { %v2157_v7 = vadd.f32 %v2156_v9, %v4253_v8  ;;  %v4262_v24 = vadd.f32 %v2110_v21, %v2014_v10  ;;  %v4485_v9 = vld [vmem:[#allocation5_spill] sm:$0xff]  ;;  %v3084_v21 = vadd.f32 %v4487_v1, %v4486_v63  ;;  %v1954_v37 = vadd.f32 %v3023_v0, %v4490_v26  ;;  %v2142_v52 = vpop.f32.mrf.mxu1 }
 0x1b3   :  { %v1949_v10 = vadd.f32 %v3020_v3, %v4485_v9  ;;  %v4312_v22 = vadd.f32 %v4231_v12, %v2038_v2  ;;  %v4315_v42 = vadd.f32 %v2139_v27, %v2043_v14 }
 0x1b4   :  { %v2158_v11 = vadd.f32 %v2157_v7, %v4262_v24  ;;  %v4489_v7 = vld [vmem:[#allocation24_spill] sm:$0xff] }
 0x1b5   :  { %v3090_v28 = vadd.f32 %v4209_v20, %v4489_v7  ;;  %v2046_v4 = vadd.f32 %v3084_v21, %v1949_v10 }
 0x1b6   :  { %v2159_v39 = vadd.f32 %v2158_v11, %v4269_v36  ;;  %v4492_v11 = vld [vmem:[#allocation23_spill] sm:$0xff] }
 0x1b7   :  { %v3087_v44 = vadd.f32 %v4492_v11, %v4491_v30  ;;  %v2054_v31 = vadd.f32 %v3090_v28, %v1957_v6  ;;  %v4318_v20 = vadd.f32 %v2142_v52, %v2046_v4 }
 0x1b8   :  { %v2160_v47 = vadd.f32 %v2159_v39, %v4277_v29 }
 0x1b9   :  { %v2051_v5 = vadd.f32 %v3087_v44, %v1954_v37  ;;  %v4321_v39 = vadd.f32 %v3126_v48, %v2054_v31 }
 0x1ba   :  { %v2161_v50 = vadd.f32 %v2160_v47, %v4285_v45 }
 0x1bb   :  { %v4323_v25 = vadd.f32 %v3125_v16, %v2051_v5  ;;  %v2169_v55 = vsel %vm4446_vm1, %v4321_v39, 0.0 }
 0x1bc   :  { %v2162_v13 = vadd.f32 %v2161_v50, %v4295_v41 }
 0x1be   :  { %v2163_v40 = vadd.f32 %v2162_v13, %v4302_v18 }
 0x1c0   :  { %v2164_v46 = vadd.f32 %v2163_v40, %v4312_v22 }
 0x1c2   :  { %v2165_v62 = vadd.f32 %v2164_v46, %v4315_v42 }
 0x1c4   :  { %v2166_v12 = vadd.f32 %v2165_v62, %v4318_v20 }
 0x1c6   :  { %v2167_v23 = vadd.f32 %v2166_v12, %v4323_v25 }
 0x1c8   :  { %v2170_v17 = vadd.f32 %v2169_v55, %v2167_v23 }
 0x1ca   :  { %v2171_v38 = vrot.slane %v2170_v17, 4 }
 0x1cc   :  { %v2172_v27 = vadd.f32 %v2171_v38, %v2170_v17 }
 0x1ce   :  { %v2173_v51 = vrot.slane %v2172_v27, 2 }
 0x1d0   :  { %v2174_v35 = vadd.f32 %v2173_v51, %v2172_v27 }
 0x1d2   :  { %v2175_v3 = vrot.slane %v2174_v35, 1 }
 0x1d4   :  { %v2176_v58 = vadd.f32 %v2175_v3, %v2174_v35 }
 0x1d6   :  { %v4329_v47 = vmul.f32 0.008264462, %v2176_v58 }
 0x1d8   :  { %v2179_v16 = vsub.f32 %v4227_v15, %v4329_v47  ;;  %v2180_v60 = vsub.f32 %v4229_v43, %v4329_v47  ;;  %v2181_v54 = vsub.f32 %v4236_v49, %v4329_v47  ;;  %v2182_v53 = vsub.f32 %v4245_v61, %v4329_v47 }
 0x1d9   :  { %v2183_v19 = vsub.f32 %v4253_v8, %v4329_v47  ;;  %v2184_v0 = vsub.f32 %v4262_v24, %v4329_v47  ;;  %v2185_v2 = vsub.f32 %v4269_v36, %v4329_v47  ;;  %v2186_v10 = vsub.f32 %v4277_v29, %v4329_v47 }
 0x1da   :  { %v2195_v34 = vmul.f32 %v2179_v16, %v2179_v16  ;;  %v2196_v32 = vmul.f32 %v2180_v60, %v2180_v60  ;;  %v2197_v56 = vmul.f32 %v2181_v54, %v2181_v54  ;;  %v2198_v57 = vmul.f32 %v2182_v53, %v2182_v53 }
 0x1db   :  { %v2199_v48 = vmul.f32 %v2183_v19, %v2183_v19  ;;  %v2200_v63 = vmul.f32 %v2184_v0, %v2184_v0  ;;  %v2187_v21 = vsub.f32 %v4285_v45, %v4329_v47  ;;  %v2201_v13 = vmul.f32 %v2185_v2, %v2185_v2 }
 0x1dc   :  { %v2211_v59 = vadd.f32 %v2196_v32, %v2195_v34  ;;  %v2188_v6 = vsub.f32 %v4295_v41, %v4329_v47  ;;  %v2202_v7 = vmul.f32 %v2186_v10, %v2186_v10  ;;  %v2189_v14 = vsub.f32 %v4302_v18, %v4329_v47  ;;  %v2238_v10 = vld [vmem:[%s4444_s3] sm:$0x1] }
 0x1dd   :  { %v2203_v26 = vmul.f32 %v2187_v21, %v2187_v21  ;;  %v2190_v30 = vsub.f32 %v4312_v22, %v4329_v47  ;;  %v2191_v40 = vsub.f32 %v4315_v42, %v4329_v47  ;;  %v2192_v46 = vsub.f32 %v4318_v20, %v4329_v47 }
 0x1de   :  { %v2212_v50 = vadd.f32 %v2211_v59, %v2197_v56  ;;  %v2204_v11 = vmul.f32 %v2188_v6, %v2188_v6  ;;  %v2205_v52 = vmul.f32 %v2189_v14, %v2189_v14  ;;  %v2194_v62 = vsub.f32 %v4321_v39, %v4329_v47 }
 0x1df   :  { %v2206_v31 = vmul.f32 %v2190_v30, %v2190_v30  ;;  %v2193_v12 = vsub.f32 %v4323_v25, %v4329_v47  ;;  %v2207_v23 = vmul.f32 %v2191_v40, %v2191_v40  ;;  %v2208_v17 = vmul.f32 %v2192_v46, %v2192_v46 }
 0x1e0   :  { %v2213_v9 = vadd.f32 %v2212_v50, %v2198_v57  ;;  %v2210_v27 = vmul.f32 %v2194_v62, %v2194_v62  ;;  %v2242_v0 = vlaneseq  ;;  %v2234_v50 = vld [vmem:[%s4443_s2] sm:$0x1] }
 0x1e1   :  { %v2209_v51 = vmul.f32 %v2193_v12, %v2193_v12 }
 0x1e2   :  { %v2214_v1 = vadd.f32 %v2213_v9, %v2199_v48  ;;  %v2225_v58 = vsel %vm4446_vm1, %v2210_v27, 0.0  ;;  %v2243_v57 = vshrl.u32 %v2242_v0, 7 }
 0x1e4   :  { %v2215_v33 = vadd.f32 %v2214_v1, %v2200_v63  ;;  %v2244_v2 = vsub.s32 0, %v2243_v57 }
 0x1e6   :  { %v2216_v28 = vadd.f32 %v2215_v33, %v2201_v13 }
 0x1e8   :  { %v2217_v37 = vadd.f32 %v2216_v28, %v2202_v7 }
 0x1ea   :  { %v2218_v44 = vadd.f32 %v2217_v37, %v2203_v26 }
 0x1ec   :  { %v2219_v4 = vadd.f32 %v2218_v44, %v2204_v11 }
 0x1ee   :  { %v2220_v5 = vadd.f32 %v2219_v4, %v2205_v52 }
 0x1f0   :  { %v2221_v55 = vadd.f32 %v2220_v5, %v2206_v31 }
 0x1f2   :  { %v2222_v38 = vadd.f32 %v2221_v55, %v2207_v23 }
 0x1f4   :  { %v2223_v35 = vadd.f32 %v2222_v38, %v2208_v17 }
 0x1f6   :  { %v2224_v3 = vadd.f32 %v2223_v35, %v2209_v51 }
 0x1f8   :  { %v2226_v16 = vadd.f32 %v2225_v58, %v2224_v3 }
 0x1fa   :  { %v2227_v60 = vrot.slane %v2226_v16, 4 }
 0x1fc   :  { %v2228_v54 = vadd.f32 %v2227_v60, %v2226_v16 }
 0x1fe   :  { %v2229_v34 = vrot.slane %v2228_v54, 2 }
 0x200   :  { %v2230_v32 = vadd.f32 %v2229_v34, %v2228_v54 }
 0x202   :  { %v2231_v53 = vrot.slane %v2230_v32, 1 }
 0x204   :  { %v2232_v19 = vadd.f32 %v2231_v53, %v2230_v32 }
 0x206   :  { %v2233_v56 = vmul.f32 0.008264462, %v2232_v19 }
 0x208   :  { %v2235_v59 = vadd.f32 1e-05, %v2233_v56 }
 0x20a   :  { %3387 = vrsqrt.f32 %v2235_v59 }
 0x217   :  { %v3388_v48 = vpop.eup %3387 }
 0x218   :  { %v2237_v9 = vmul.f32 %v3388_v48, %v2234_v50 }
 0x21a   :  { %v2239_v63 = vmul.f32 %v2237_v9, %v4329_v47  ;;  %v2245_v1 = vrot.slane %v2237_v9, %v2244_v2 }
 0x21c   :  { %v2240_v21 = vsub.f32 %v2238_v10, %v2239_v63  ;;  %v2247_v13 = vmul.f32 %v2245_v1, %v4227_v15  ;;  %v2248_v33 = vmul.f32 %v2245_v1, %v4229_v43  ;;  %v2249_v6 = vmul.f32 %v2245_v1, %v4236_v49 }
 0x21d   :  { %v2250_v7 = vmul.f32 %v2245_v1, %v4245_v61  ;;  %v2251_v28 = vmul.f32 %v2245_v1, %v4253_v8  ;;  %v2252_v14 = vmul.f32 %v2245_v1, %v4262_v24  ;;  %v2253_v26 = vmul.f32 %v2245_v1, %v4269_v36 }
 0x21e   :  { %v2254_v37 = vmul.f32 %v2245_v1, %v4277_v29  ;;  %v2255_v47 = vmul.f32 %v2245_v1, %v4285_v45  ;;  %v2256_v30 = vmul.f32 %v2245_v1, %v4295_v41  ;;  %v2257_v15 = vmul.f32 %v2245_v1, %v4302_v18 }
 0x21f   :  { %v2258_v43 = vmul.f32 %v2245_v1, %v4312_v22  ;;  %v2267_v11 = vrot.slane %v2240_v21, %v2244_v2  ;;  %v2259_v49 = vmul.f32 %v2245_v1, %v4315_v42  ;;  %v2260_v61 = vmul.f32 %v2245_v1, %v4318_v20 }
 0x220   :  { %v2261_v8 = vmul.f32 %v2245_v1, %v4323_v25  ;;  %v2262_v24 = vmul.f32 %v2245_v1, %v4321_v39 }
 0x221   :  { %v2269_v36 = vadd.f32 %v2267_v11, %v2247_v13  ;;  %v2270_v44 = vadd.f32 %v2267_v11, %v2248_v33  ;;  %v2271_v29 = vadd.f32 %v2267_v11, %v2249_v6  ;;  %v2272_v40 = vadd.f32 %v2267_v11, %v2250_v7 }
 0x222   :  { %v2273_v45 = vadd.f32 %v2267_v11, %v2251_v28  ;;  %v2274_v52 = vadd.f32 %v2267_v11, %v2252_v14  ;;  %v2275_v41 = vadd.f32 %v2267_v11, %v2253_v26  ;;  %v2276_v4 = vadd.f32 %v2267_v11, %v2254_v37  ;;  %v2415_v28 = vld [vmem:[%s4445_s4 + $0x3c] sm:$0x1] }
 0x223   :  { %v2277_v18 = vadd.f32 %v2267_v11, %v2255_v47  ;;  %v2278_v46 = vadd.f32 %v2267_v11, %v2256_v30  ;;  %v2279_v22 = vadd.f32 %v2267_v11, %v2257_v15  ;;  %v2280_v31 = vadd.f32 %v2267_v11, %v2258_v43 }
 0x224   :  { %v2281_v5 = vadd.f32 %v2267_v11, %v2259_v49  ;;  %v2282_v42 = vadd.f32 %v2267_v11, %v2260_v61  ;;  %v2283_v62 = vadd.f32 %v2267_v11, %v2261_v8  ;;  %v2284_v20 = vadd.f32 %v2267_v11, %v2262_v24 }
 0x225   :  { %vm2286_vm3 = vcmp.ge.f32.partialorder %v2270_v44, 0.0  ;;  %vm2287_vm4 = vcmp.ge.f32.partialorder %v2271_v29, 0.0  ;;  %vm2288_vm5 = vcmp.ge.f32.partialorder %v2272_v40, 0.0  ;;  %vm2289_vm7 = vcmp.ge.f32.partialorder %v2273_v45, 0.0 }
 0x226   :  { %vm2290_vm8 = vcmp.ge.f32.partialorder %v2274_v52, 0.0  ;;  %vm2291_vm9 = vcmp.ge.f32.partialorder %v2275_v41, 0.0  ;;  %vm2292_vm10 = vcmp.ge.f32.partialorder %v2276_v4, 0.0  ;;  %vm2293_vm11 = vcmp.ge.f32.partialorder %v2277_v18, 0.0 }
 0x227   :  { %vm2294_vm12 = vcmp.ge.f32.partialorder %v2278_v46, 0.0  ;;  %vm2295_vm13 = vcmp.ge.f32.partialorder %v2279_v22, 0.0  ;;  %vm2296_vm14 = vcmp.ge.f32.partialorder %v2280_v31, 0.0  ;;  %vm2297_vm15 = vcmp.ge.f32.partialorder %v2281_v5, 0.0 }
 0x228   :  { %vm2298_vm0 = vcmp.ge.f32.partialorder %v2282_v42, 0.0  ;;  %vm2299_vm1 = vcmp.ge.f32.partialorder %v2283_v62, 0.0  ;;  %vm2300_vm2 = vcmp.ge.f32.partialorder %v2284_v20, 0.0  ;;  %v2301_v39 = vmul.f32 0.01, %v2269_v36 }
 0x229   :  { %v2302_v25 = vmul.f32 0.01, %v2270_v44  ;;  %v2303_v12 = vmul.f32 0.01, %v2271_v29  ;;  %v2304_v23 = vmul.f32 0.01, %v2272_v40 }
 0x22a   :  { %v2305_v55 = vmul.f32 0.01, %v2273_v45  ;;  %v2306_v17 = vmul.f32 0.01, %v2274_v52  ;;  %v2307_v38 = vmul.f32 0.01, %v2275_v41 }
 0x22b   :  { %v2308_v27 = vmul.f32 0.01, %v2276_v4  ;;  %v2309_v51 = vmul.f32 0.01, %v2277_v18  ;;  %vm4493_vm6 = vcmp.ge.f32.partialorder %v2269_v36, 0.0  ;;  %v2318_v60 = vsel %vm2286_vm3, %v2270_v44, %v2302_v25 }
 0x22c   :  { %v2317_v35 = vsel %vm4493_vm6, %v2269_v36, %v2301_v39  ;;  %v2310_v3 = vmul.f32 0.01, %v2278_v46  ;;  %v2311_v58 = vmul.f32 0.01, %v2279_v22  ;;  %v2312_v16 = vmul.f32 0.01, %v2280_v31 }
 0x22d   :  { %v2313_v54 = vmul.f32 0.01, %v2281_v5  ;;  %v2314_v34 = vmul.f32 0.01, %v2282_v42  ;;  %v2315_v32 = vmul.f32 0.01, %v2283_v62  ;;  %v2319_v53 = vsel %vm2287_vm4, %v2271_v29, %v2303_v12 }
 0x22e   :  { %v2316_v19 = vmul.f32 0.01, %v2284_v20  ;;  %v2320_v56 = vsel %vm2288_vm5, %v2272_v40, %v2304_v23  ;;  %v2321_v59 = vsel %vm2289_vm7, %v2273_v45, %v2305_v55  ;;  %v2322_v0 = vsel %vm2290_vm8, %v2274_v52, %v2306_v17 }
 0x22f   :  { %v2323_v57 = vsel %vm2291_vm9, %v2275_v41, %v2307_v38  ;;  %v2324_v50 = vsel %vm2292_vm10, %v2276_v4, %v2308_v27  ;;  %v2325_v2 = vsel %vm2293_vm11, %v2277_v18, %v2309_v51  ;;  %v2326_v48 = vsel %vm2294_vm12, %v2278_v46, %v2310_v3 }
 0x230   :  { %v2327_v9 = vsel %vm2295_vm13, %v2279_v22, %v2311_v58  ;;  %v2328_v10 = vsel %vm2296_vm14, %v2280_v31, %v2312_v16  ;;  %v2329_v63 = vsel %vm2297_vm15, %v2281_v5, %v2313_v54  ;;  %v2330_v1 = vsel %vm2298_vm0, %v2282_v42, %v2314_v34 }
 0x231   :  { %vm4494_vm3 = vsmask.f32 256  ;;  %vm4495_vm4 = vcmask 1040384   ;;  %v2331_v13 = vsel %vm2299_vm1, %v2283_v62, %v2315_v32  ;;  %v2332_v33 = vsel %vm2300_vm2, %v2284_v20, %v2316_v19 }
 0x232   :  { %vm4403_vm5 = vmand %vm4495_vm4, %vm4494_vm3  ;;  %v2669_v6 = vpack.c.bf16 %v2318_v60, %v2317_v35  ;;  %v2674_v7 = vpack.c.bf16 %v2320_v56, %v2319_v53  ;;  %v2664_v14 = vpack.c.bf16 %v2331_v13, %v2331_v13  ;;  %v2665_v26 = vpack.c.bf16 %v2332_v33, %v2332_v33 }
 0x233   :  { %v2679_v37 = vpack.c.bf16 %v2322_v0, %v2321_v59  ;;  %v2684_v47 = vpack.c.bf16 %v2324_v50, %v2323_v57  ;;  %v2689_v30 = vpack.c.bf16 %v2326_v48, %v2325_v2  ;;  %v2694_v15 = vpack.c.bf16 %v2328_v10, %v2327_v9 }
 0x234   :  { %2670 = vst [vmem:[%s4445_s4] sm:$0xff] %v2669_v6   ;;  %2701 = vst [vmem:[%s4445_s4 + $0x8] sm:$0xff] %v2674_v7   ;;  %v2699_v43 = vpack.c.bf16 %v2330_v1, %v2329_v63  ;;  %v2416_v11 = vsel %vm4403_vm5, %v2665_v26, %v2415_v28 }
 0x235   :  { %2702 = vst [vmem:[%s4445_s4 + $0x10] sm:$0xff] %v2679_v37   ;;  %2703 = vst [vmem:[%s4445_s4 + $0x18] sm:$0xff] %v2684_v47  }
 0x236   :  { %2411 = vst [vmem:[%s4445_s4 + $0x38] sm:$0xf] %v2664_v14  ;;  %2704 = vst [vmem:[%s4445_s4 + $0x20] sm:$0xff] %v2689_v30  }
 0x237   :  { %2705 = vst [vmem:[%s4445_s4 + $0x28] sm:$0xff] %v2694_v15   ;;  %2706 = vst [vmem:[%s4445_s4 + $0x30] sm:$0xff] %v2699_v43  }
 0x238   :  { %2417 = vst [vmem:[%s4445_s4 + $0x3c] sm:$0x1] %v2416_v11 }

// kernel: combine_forward.5
= control target key start
LH: loop header
LB: loop body
LE: loop exit
PB: predicated region body
PF: predicated region fallthrough
CT: control target
= control target key end

     0   :  { %vm3161_vm0 = vcmask 1043458   ;;  %vm3129_vm1 = vcmask 1041408   ;;  %vm3144_vm2 = vcmask 1045508   ;;  %vm3176_vm3 = vcmask 1047558   ;;  %s5926_s1 = inlined_call_operand.vmem [shape: bf16[3200,256], index: 1, kind: input, shape index: {}]   ;;  %s5927_s0 = inlined_call_operand.vmem [shape: bf16[16,3200], index: 0, kind: input, shape index: {}]   ;;  %s5928_s2 = inlined_call_operand.vmem [shape: f32[42,256], index: 2, kind: input, shape index: {}]   ;;  %s5929_s3 = inlined_call_operand.vmem [shape: f32[2,1], index: 3, kind: input, shape index: {}]   ;;  %s5930_s4 = inlined_call_operand.vmem [shape: f32[2,1], index: 4, kind: output, shape index: {}]  }
   0x1   :  { %v3815_v0 = vld [vmem:[%s5926_s1 + $0x74] ss:$8 sps:$4 sm:$0xff]   ;;  %v3819_v2 = vld [vmem:[%s5926_s1 + $0x70] ss:$8 sps:$4 sm:$0xff]   ;;  %v3821_v4 = vld [vmem:[%s5926_s1 + $0x64] ss:$8 sps:$4 sm:$0xff]  }
   0x2   :  { %v3817_v1 = vld [vmem:[%s5926_s1 + $0x174] ss:$8 sps:$4 sm:$0xff]   ;;  %2570 = vmatprep.subr.bf16.mxu0 %v3815_v0  ;;  %v3820_v3 = vld [vmem:[%s5926_s1 + $0x170] ss:$8 sps:$4 sm:$0xff]   ;;  %v3823_v5 = vld [vmem:[%s5926_s1 + $0x164] ss:$8 sps:$4 sm:$0xff]  }
   0x3   :  { %2613 = vmatprep.subr.bf16.mxu1 %v3817_v1  ;;  %2571 = vmatpush1.bf16.msra.mxu0 %v3819_v2  ;;  %v3825_v6 = vld [vmem:[%s5926_s1 + $0x60] ss:$8 sps:$4 sm:$0xff]   ;;  %v3827_v8 = vld [vmem:[%s5926_s1 + $0x54] ss:$8 sps:$4 sm:$0xff]   ;;  %v3831_v10 = vld [vmem:[%s5926_s1 + $0x50] ss:$8 sps:$4 sm:$0xff]  }
   0x4   :  { %2614 = vmatpush1.bf16.msra.mxu1 %v3820_v3  ;;  %2572 = vmatprep.subr.bf16.mxu0 %v3821_v4  ;;  %v3826_v7 = vld [vmem:[%s5926_s1 + $0x160] ss:$8 sps:$4 sm:$0xff]   ;;  %v3829_v9 = vld [vmem:[%s5926_s1 + $0x154] ss:$8 sps:$4 sm:$0xff]   ;;  %v3832_v11 = vld [vmem:[%s5926_s1 + $0x150] ss:$8 sps:$4 sm:$0xff]  }
   0x5   :  { %2615 = vmatprep.subr.bf16.mxu1 %v3823_v5  ;;  %v3833_v12 = vld [vmem:[%s5926_s1 + $0x44] ss:$8 sps:$4 sm:$0xff]   ;;  %v3837_v14 = vld [vmem:[%s5926_s1 + $0x40] ss:$8 sps:$4 sm:$0xff]   ;;  %v3839_v16 = vld [vmem:[%s5926_s1 + $0x34] ss:$8 sps:$4 sm:$0xff]  }
   0x6   :  { %v3835_v13 = vld [vmem:[%s5926_s1 + $0x144] ss:$8 sps:$4 sm:$0xff]   ;;  %v3838_v15 = vld [vmem:[%s5926_s1 + $0x140] ss:$8 sps:$4 sm:$0xff]   ;;  %v3841_v17 = vld [vmem:[%s5926_s1 + $0x134] ss:$8 sps:$4 sm:$0xff]  }
   0x7   :  { %2573 = vmatpush1.bf16.msra.mxu0 %v3825_v6  ;;  %v3843_v18 = vld [vmem:[%s5926_s1 + $0x30] ss:$8 sps:$4 sm:$0xff]   ;;  %v3845_v20 = vld [vmem:[%s5926_s1 + $0x24] ss:$8 sps:$4 sm:$0xff]   ;;  %v3849_v22 = vld [vmem:[%s5926_s1 + $0x20] ss:$8 sps:$4 sm:$0xff]  }
   0x8   :  { %2616 = vmatpush1.bf16.msra.mxu1 %v3826_v7  ;;  %2574 = vmatprep.subr.bf16.mxu0 %v3827_v8  ;;  %v3844_v19 = vld [vmem:[%s5926_s1 + $0x130] ss:$8 sps:$4 sm:$0xff]   ;;  %v3847_v21 = vld [vmem:[%s5926_s1 + $0x124] ss:$8 sps:$4 sm:$0xff]   ;;  %v3850_v23 = vld [vmem:[%s5926_s1 + $0x120] ss:$8 sps:$4 sm:$0xff]  }
   0x9   :  { %2617 = vmatprep.subr.bf16.mxu1 %v3829_v9  ;;  %v3851_v24 = vld [vmem:[%s5926_s1 + $0x14] ss:$8 sps:$4 sm:$0xff]   ;;  %v3855_v26 = vld [vmem:[%s5926_s1 + $0x10] ss:$8 sps:$4 sm:$0xff]   ;;  %v3857_v28 = vld [vmem:[%s5926_s1 + $0x4] ss:$8 sps:$4 sm:$0xff]  }
   0xa   :  { %v3853_v25 = vld [vmem:[%s5926_s1 + $0x114] ss:$8 sps:$4 sm:$0xff]   ;;  %v3856_v27 = vld [vmem:[%s5926_s1 + $0x110] ss:$8 sps:$4 sm:$0xff]   ;;  %v3859_v29 = vld [vmem:[%s5926_s1 + $0x104] ss:$8 sps:$4 sm:$0xff]  }
   0xb   :  { %2575 = vmatpush1.bf16.msra.mxu0 %v3831_v10  ;;  %v3861_v30 = vld [vmem:[%s5926_s1] ss:$8 sps:$4 sm:$0xff]   ;;  %v3863_v32 = vld [vmem:[%s5926_s1 + $0xf4] ss:$8 sps:$4 sm:$0xff]   ;;  %v3867_v34 = vld [vmem:[%s5926_s1 + $0xf0] ss:$8 sps:$4 sm:$0xff]  }
   0xc   :  { %2618 = vmatpush1.bf16.msra.mxu1 %v3832_v11  ;;  %2576 = vmatprep.subr.bf16.mxu0 %v3833_v12  ;;  %v3862_v31 = vld [vmem:[%s5926_s1 + $0x100] ss:$8 sps:$4 sm:$0xff]   ;;  %v3865_v33 = vld [vmem:[%s5926_s1 + $0x1f4] ss:$8 sps:$4 sm:$0xff]   ;;  %v3868_v35 = vld [vmem:[%s5926_s1 + $0x1f0] ss:$8 sps:$4 sm:$0xff]  }
   0xd   :  { %2619 = vmatprep.subr.bf16.mxu1 %v3835_v13  ;;  %v3869_v36 = vld [vmem:[%s5926_s1 + $0xe4] ss:$8 sps:$4 sm:$0xff]   ;;  %v3873_v38 = vld [vmem:[%s5926_s1 + $0xe0] ss:$8 sps:$4 sm:$0xff]   ;;  %v3875_v40 = vld [vmem:[%s5926_s1 + $0xd4] ss:$8 sps:$4 sm:$0xff]  }
   0xe   :  { %v3871_v37 = vld [vmem:[%s5926_s1 + $0x1e4] ss:$8 sps:$4 sm:$0xff]   ;;  %v3874_v39 = vld [vmem:[%s5926_s1 + $0x1e0] ss:$8 sps:$4 sm:$0xff]   ;;  %v3877_v41 = vld [vmem:[%s5926_s1 + $0x1d4] ss:$8 sps:$4 sm:$0xff]  }
   0xf   :  { %2577 = vmatpush1.bf16.msra.mxu0 %v3837_v14  ;;  %v3879_v42 = vld [vmem:[%s5926_s1 + $0xd0] ss:$8 sps:$4 sm:$0xff]   ;;  %v3881_v44 = vld [vmem:[%s5926_s1 + $0xc4] ss:$8 sps:$4 sm:$0xff]   ;;  %v3885_v46 = vld [vmem:[%s5926_s1 + $0xc0] ss:$8 sps:$4 sm:$0xff]  }
  0x10   :  { %2620 = vmatpush1.bf16.msra.mxu1 %v3838_v15  ;;  %2578 = vmatprep.subr.bf16.mxu0 %v3839_v16  ;;  %v3880_v43 = vld [vmem:[%s5926_s1 + $0x1d0] ss:$8 sps:$4 sm:$0xff]   ;;  %v3883_v45 = vld [vmem:[%s5926_s1 + $0x1c4] ss:$8 sps:$4 sm:$0xff]   ;;  %v3886_v47 = vld [vmem:[%s5926_s1 + $0x1c0] ss:$8 sps:$4 sm:$0xff]  }
  0x11   :  { %2621 = vmatprep.subr.bf16.mxu1 %v3841_v17  ;;  %v3887_v48 = vld [vmem:[%s5926_s1 + $0xb4] ss:$8 sps:$4 sm:$0xff]   ;;  %v3913_v49 = vld [vmem:[%s5927_s0 + $0x4] ss:$100 sps:$4 sm:$0xff]   ;;  %v3916_v51 = vld [vmem:[%s5927_s0 + $0xc] ss:$100 sps:$4 sm:$0xff]  }
  0x12   :  { %v3889_v50 = vld [vmem:[%s5926_s1 + $0x1b4] ss:$8 sps:$4 sm:$0xff]   ;;  %2602 = vmatprep.mubr.bf16.mxu0 %v3913_v49  ;;  %v3891_v52 = vld [vmem:[%s5926_s1 + $0xb0] ss:$8 sps:$4 sm:$0xff]   ;;  %2645 = vmatprep.mubr.bf16.mxu1 %v3916_v51  ;;  %v3893_v54 = vld [vmem:[%s5926_s1 + $0xa4] ss:$8 sps:$4 sm:$0xff]  }
  0x13   :  { %2579 = vmatpush1.bf16.msra.mxu0 %v3843_v18  ;;  %v3892_v53 = vld [vmem:[%s5926_s1 + $0x1b0] ss:$8 sps:$4 sm:$0xff]   ;;  %v3895_v55 = vld [vmem:[%s5926_s1 + $0x1a4] ss:$8 sps:$4 sm:$0xff]   ;;  %v3897_v56 = vld [vmem:[%s5926_s1 + $0xa0] ss:$8 sps:$4 sm:$0xff]  }
  0x14   :  { %2622 = vmatpush1.bf16.msra.mxu1 %v3844_v19  ;;  %2580 = vmatprep.subr.bf16.mxu0 %v3845_v20  ;;  %v3898_v57 = vld [vmem:[%s5926_s1 + $0x1a0] ss:$8 sps:$4 sm:$0xff]   ;;  %v3899_v58 = vld [vmem:[%s5926_s1 + $0x94] ss:$8 sps:$4 sm:$0xff]   ;;  %v3903_v60 = vld [vmem:[%s5926_s1 + $0x90] ss:$8 sps:$4 sm:$0xff]  }
  0x15   :  { %2623 = vmatprep.subr.bf16.mxu1 %v3847_v21  ;;  %v3901_v59 = vld [vmem:[%s5926_s1 + $0x194] ss:$8 sps:$4 sm:$0xff]   ;;  %v3904_v61 = vld [vmem:[%s5926_s1 + $0x190] ss:$8 sps:$4 sm:$0xff]   ;;  %v3905_v62 = vld [vmem:[%s5926_s1 + $0x84] ss:$8 sps:$4 sm:$0xff]  }
  0x16   :  { %v3907_v63 = vld [vmem:[%s5926_s1 + $0x184] ss:$8 sps:$4 sm:$0xff]   ;;  %v3909_v0 = vld [vmem:[%s5926_s1 + $0x80] ss:$8 sps:$4 sm:$0xff]   ;;  %v3919_v2 = vld [vmem:[%s5926_s1 + $0x274] ss:$8 sps:$4 sm:$0xff]  }
  0x17   :  { %2581 = vmatpush1.bf16.msra.mxu0 %v3849_v22  ;;  %v3910_v1 = vld [vmem:[%s5926_s1 + $0x180] ss:$8 sps:$4 sm:$0xff]   ;;  %v3922_v3 = vld [vmem:[%s5926_s1 + $0x374] ss:$8 sps:$4 sm:$0xff]   ;;  %v3917_v6 = vld [vmem:[%s5926_s1 + $0x270] ss:$8 sps:$4 sm:$0xff]  }
  0x18   :  { %2624 = vmatpush1.bf16.msra.mxu1 %v3850_v23  ;;  %2582 = vmatprep.subr.bf16.mxu0 %v3851_v24  ;;  %v3911_v4 = vld [vmem:[%s5927_s0] ss:$100 sps:$4 sm:$0xff]   ;;  %v3914_v5 = vld [vmem:[%s5927_s0 + $0x8] ss:$100 sps:$4 sm:$0xff]   ;;  %v3920_v7 = vld [vmem:[%s5926_s1 + $0x370] ss:$8 sps:$4 sm:$0xff]  }
  0x19   :  { %2625 = vmatprep.subr.bf16.mxu1 %v3853_v25  ;;  %v3925_v8 = vld [vmem:[%s5926_s1 + $0x264] ss:$8 sps:$4 sm:$0xff]   ;;  %v3923_v10 = vld [vmem:[%s5926_s1 + $0x260] ss:$8 sps:$4 sm:$0xff]   ;;  %v3931_v12 = vld [vmem:[%s5926_s1 + $0x254] ss:$8 sps:$4 sm:$0xff]  }
  0x1a   :  { %v3928_v9 = vld [vmem:[%s5926_s1 + $0x364] ss:$8 sps:$4 sm:$0xff]   ;;  %v3926_v11 = vld [vmem:[%s5926_s1 + $0x360] ss:$8 sps:$4 sm:$0xff]   ;;  %v3934_v13 = vld [vmem:[%s5926_s1 + $0x354] ss:$8 sps:$4 sm:$0xff]  }
  0x1b   :  { %2583 = vmatpush1.bf16.msra.mxu0 %v3855_v26  ;;  %v3929_v14 = vld [vmem:[%s5926_s1 + $0x250] ss:$8 sps:$4 sm:$0xff]   ;;  %v3937_v16 = vld [vmem:[%s5926_s1 + $0x244] ss:$8 sps:$4 sm:$0xff]   ;;  %v3935_v18 = vld [vmem:[%s5926_s1 + $0x240] ss:$8 sps:$4 sm:$0xff]  }
  0x1c   :  { %2626 = vmatpush1.bf16.msra.mxu1 %v3856_v27  ;;  %2584 = vmatprep.subr.bf16.mxu0 %v3857_v28  ;;  %v3932_v15 = vld [vmem:[%s5926_s1 + $0x350] ss:$8 sps:$4 sm:$0xff]   ;;  %v3940_v17 = vld [vmem:[%s5926_s1 + $0x344] ss:$8 sps:$4 sm:$0xff]   ;;  %v3938_v19 = vld [vmem:[%s5926_s1 + $0x340] ss:$8 sps:$4 sm:$0xff]  }
  0x1d   :  { %2627 = vmatprep.subr.bf16.mxu1 %v3859_v29  ;;  %v3943_v20 = vld [vmem:[%s5926_s1 + $0x234] ss:$8 sps:$4 sm:$0xff]   ;;  %v3941_v22 = vld [vmem:[%s5926_s1 + $0x230] ss:$8 sps:$4 sm:$0xff]   ;;  %v3949_v24 = vld [vmem:[%s5926_s1 + $0x224] ss:$8 sps:$4 sm:$0xff]  }
  0x1e   :  { %v3946_v21 = vld [vmem:[%s5926_s1 + $0x334] ss:$8 sps:$4 sm:$0xff]   ;;  %v3944_v23 = vld [vmem:[%s5926_s1 + $0x330] ss:$8 sps:$4 sm:$0xff]   ;;  %v3952_v25 = vld [vmem:[%s5926_s1 + $0x324] ss:$8 sps:$4 sm:$0xff]  }
  0x1f   :  { %2585 = vmatpush1.bf16.msra.mxu0 %v3861_v30  ;;  %v3947_v26 = vld [vmem:[%s5926_s1 + $0x220] ss:$8 sps:$4 sm:$0xff]   ;;  %v3955_v28 = vld [vmem:[%s5926_s1 + $0x214] ss:$8 sps:$4 sm:$0xff]   ;;  %v3953_v30 = vld [vmem:[%s5926_s1 + $0x210] ss:$8 sps:$4 sm:$0xff]  }
  0x20   :  { %2628 = vmatpush1.bf16.msra.mxu1 %v3862_v31  ;;  %2586 = vmatprep.subr.bf16.mxu0 %v3863_v32  ;;  %v3950_v27 = vld [vmem:[%s5926_s1 + $0x320] ss:$8 sps:$4 sm:$0xff]   ;;  %v3958_v29 = vld [vmem:[%s5926_s1 + $0x314] ss:$8 sps:$4 sm:$0xff]   ;;  %v3956_v31 = vld [vmem:[%s5926_s1 + $0x310] ss:$8 sps:$4 sm:$0xff]  }
  0x21   :  { %2629 = vmatprep.subr.bf16.mxu1 %v3865_v33  ;;  %v3961_v32 = vld [vmem:[%s5926_s1 + $0x204] ss:$8 sps:$4 sm:$0xff]   ;;  %v3980_v49 = vld [vmem:[%s5926_s1 + $0x3d0] ss:$8 sps:$4 sm:$0xff]   ;;  %vm3258_vm4 = vcmask 1042432   ;;  %vm3253_vm5 = vcmask 1040384  }
  0x22   :  { %v3964_v33 = vld [vmem:[%s5926_s1 + $0x304] ss:$8 sps:$4 sm:$0xff]   ;;  %vm3275_vm6 = vcmask 1043456   ;;  %vm3297_vm7 = vcmask 1044480   ;;  %vm3382_vm8 = vcmask 1024  }
  0x23   :  { %2587 = vmatpush2.bf16.msra.mxu0 %v3867_v34  ;;  %v4015_v34 = vld [vmem:[%s5927_s0 + $0x14] ss:$100 sps:$4 sm:$0xff]   ;;  %v3988_v51 = vld [vmem:[%s5926_s1 + $0x3c4] ss:$8 sps:$4 sm:$0xff]  }
  0x24   :  { %2630 = vmatpush2.bf16.msra.mxu1 %v3868_v35  ;;  %2588 = vmatprep.subr.bf16.mxu0 %v3869_v36  ;;  %v3959_v35 = vld [vmem:[%s5926_s1 + $0x200] ss:$8 sps:$4 sm:$0xff]  }
  0x25   :  { %2631 = vmatprep.subr.bf16.mxu1 %v3871_v37  ;;  %v3962_v36 = vld [vmem:[%s5926_s1 + $0x300] ss:$8 sps:$4 sm:$0xff]  }
  0x26   :  { %v4021_v37 = vld [vmem:[%s5927_s0 + $0x1c] ss:$100 sps:$4 sm:$0xff]  }
  0x27   :  { %2589 = vmatpush2.bf16.msra.mxu0 %v3873_v38  ;;  %v3967_v38 = vld [vmem:[%s5926_s1 + $0x2f4] ss:$8 sps:$4 sm:$0xff]  }
  0x28   :  { %2632 = vmatpush2.bf16.msra.mxu1 %v3874_v39  ;;  %2590 = vmatprep.subr.bf16.mxu0 %v3875_v40  ;;  %v3970_v39 = vld [vmem:[%s5926_s1 + $0x3f4] ss:$8 sps:$4 sm:$0xff]   ;;  %v3965_v40 = vld [vmem:[%s5926_s1 + $0x2f0] ss:$8 sps:$4 sm:$0xff]  }
  0x29   :  { %2633 = vmatprep.subr.bf16.mxu1 %v3877_v41  ;;  %v3968_v41 = vld [vmem:[%s5926_s1 + $0x3f0] ss:$8 sps:$4 sm:$0xff]  }
  0x2b   :  { %2591 = vmatpush2.bf16.msra.mxu0 %v3879_v42  ;;  %v3973_v42 = vld [vmem:[%s5926_s1 + $0x2e4] ss:$8 sps:$4 sm:$0xff]  }
  0x2c   :  { %2634 = vmatpush2.bf16.msra.mxu1 %v3880_v43  ;;  %2592 = vmatprep.subr.bf16.mxu0 %v3881_v44  ;;  %v3976_v43 = vld [vmem:[%s5926_s1 + $0x3e4] ss:$8 sps:$4 sm:$0xff]   ;;  %v3971_v44 = vld [vmem:[%s5926_s1 + $0x2e0] ss:$8 sps:$4 sm:$0xff]  }
  0x2d   :  { %2635 = vmatprep.subr.bf16.mxu1 %v3883_v45  ;;  %v3974_v45 = vld [vmem:[%s5926_s1 + $0x3e0] ss:$8 sps:$4 sm:$0xff]  }
  0x2f   :  { %2593 = vmatpush2.bf16.msra.mxu0 %v3885_v46  ;;  %v3979_v46 = vld [vmem:[%s5926_s1 + $0x2d4] ss:$8 sps:$4 sm:$0xff]  }
  0x30   :  { %2636 = vmatpush2.bf16.msra.mxu1 %v3886_v47  ;;  %2594 = vmatprep.subr.bf16.mxu0 %v3887_v48  ;;  %v3982_v47 = vld [vmem:[%s5926_s1 + $0x3d4] ss:$8 sps:$4 sm:$0xff]   ;;  %v3977_v48 = vld [vmem:[%s5926_s1 + $0x2d0] ss:$8 sps:$4 sm:$0xff]  }
  0x31   :  { %2637 = vmatprep.subr.bf16.mxu1 %v3889_v50  ;;  %v3985_v50 = vld [vmem:[%s5926_s1 + $0x2c4] ss:$8 sps:$4 sm:$0xff]  }
  0x33   :  { %2595 = vmatpush2.bf16.msra.mxu0 %v3891_v52  ;;  %v3983_v52 = vld [vmem:[%s5926_s1 + $0x2c0] ss:$8 sps:$4 sm:$0xff]  }
  0x34   :  { %2638 = vmatpush2.bf16.msra.mxu1 %v3892_v53  ;;  %2596 = vmatprep.subr.bf16.mxu0 %v3893_v54  ;;  %v3986_v53 = vld [vmem:[%s5926_s1 + $0x3c0] ss:$8 sps:$4 sm:$0xff]   ;;  %v3991_v54 = vld [vmem:[%s5926_s1 + $0x2b4] ss:$8 sps:$4 sm:$0xff]  }
  0x35   :  { %2639 = vmatprep.subr.bf16.mxu1 %v3895_v55  ;;  %v3994_v55 = vld [vmem:[%s5926_s1 + $0x3b4] ss:$8 sps:$4 sm:$0xff]  }
  0x37   :  { %2597 = vmatpush2.bf16.msra.mxu0 %v3897_v56  ;;  %v3989_v56 = vld [vmem:[%s5926_s1 + $0x2b0] ss:$8 sps:$4 sm:$0xff]  }
  0x38   :  { %2640 = vmatpush2.bf16.msra.mxu1 %v3898_v57  ;;  %2598 = vmatprep.subr.bf16.mxu0 %v3899_v58  ;;  %v3992_v57 = vld [vmem:[%s5926_s1 + $0x3b0] ss:$8 sps:$4 sm:$0xff]   ;;  %v3997_v58 = vld [vmem:[%s5926_s1 + $0x2a4] ss:$8 sps:$4 sm:$0xff]  }
  0x39   :  { %2641 = vmatprep.subr.bf16.mxu1 %v3901_v59  ;;  %v4000_v59 = vld [vmem:[%s5926_s1 + $0x3a4] ss:$8 sps:$4 sm:$0xff]  }
  0x3b   :  { %2599 = vmatpush2.bf16.msra.mxu0 %v3903_v60  ;;  %v3995_v60 = vld [vmem:[%s5926_s1 + $0x2a0] ss:$8 sps:$4 sm:$0xff]  }
  0x3c   :  { %2642 = vmatpush2.bf16.msra.mxu1 %v3904_v61  ;;  %2600 = vmatprep.subr.bf16.mxu0 %v3905_v62  ;;  %v3998_v61 = vld [vmem:[%s5926_s1 + $0x3a0] ss:$8 sps:$4 sm:$0xff]   ;;  %v4003_v62 = vld [vmem:[%s5926_s1 + $0x294] ss:$8 sps:$4 sm:$0xff]  }
  0x3d   :  { %2643 = vmatprep.subr.bf16.mxu1 %v3907_v63  ;;  %v4006_v63 = vld [vmem:[%s5926_s1 + $0x394] ss:$8 sps:$4 sm:$0xff]  }
  0x3f   :  { %2601 = vmatpush2.bf16.msra.mxu0 %v3909_v0  ;;  %v4001_v0 = vld [vmem:[%s5926_s1 + $0x290] ss:$8 sps:$4 sm:$0xff]  }
  0x40   :  { %2644 = vmatpush2.bf16.msra.mxu1 %v3910_v1  ;;  %2656 = vmatprep.subr.bf16.mxu0 %v3919_v2  ;;  %v4004_v1 = vld [vmem:[%s5926_s1 + $0x390] ss:$8 sps:$4 sm:$0xff]   ;;  %v4009_v2 = vld [vmem:[%s5926_s1 + $0x284] ss:$8 sps:$4 sm:$0xff]  }
  0x41   :  { %2699 = vmatprep.subr.bf16.mxu1 %v3922_v3  ;;  %v4012_v3 = vld [vmem:[%s5926_s1 + $0x384] ss:$8 sps:$4 sm:$0xff]  }
  0x42   :  { %2603 = vmatmul.mubr.bf16.vlgmr.msra.gmra.mxu0 %v3911_v4  ;;  %v4007_v4 = vld [vmem:[%s5926_s1 + $0x280] ss:$8 sps:$4 sm:$0xff]  }
  0x43   :  { %2646 = vmatmul.mubr.bf16.vlgmr.msra.gmra.mxu1 %v3914_v5  ;;  %2657 = vmatpush1.bf16.msra.mxu0 %v3917_v6  ;;  %v4010_v5 = vld [vmem:[%s5926_s1 + $0x380] ss:$8 sps:$4 sm:$0xff]   ;;  %v4018_v6 = vld [vmem:[%s5926_s1 + $0x474] ss:$8 sps:$4 sm:$0xff]  }
  0x44   :  { %2700 = vmatpush1.bf16.msra.mxu1 %v3920_v7  ;;  %2658 = vmatprep.subr.bf16.mxu0 %v3925_v8  ;;  %v4024_v7 = vld [vmem:[%s5926_s1 + $0x574] ss:$8 sps:$4 sm:$0xff]  }
  0x45   :  { %2701 = vmatprep.subr.bf16.mxu1 %v3928_v9  ;;  %2688 = vmatprep.mubr.bf16.mxu0 %v4015_v34  ;;  %v4013_v8 = vld [vmem:[%s5927_s0 + $0x10] ss:$100 sps:$4 sm:$0xff]  }
  0x46   :  { %2731 = vmatprep.mubr.bf16.mxu1 %v4021_v37  ;;  %v4016_v9 = vld [vmem:[%s5926_s1 + $0x470] ss:$8 sps:$4 sm:$0xff]   ;;  %v4057_v34 = vld [vmem:[%s5926_s1 + $0x414] ss:$8 sps:$4 sm:$0xff]  }
  0x47   :  { %2659 = vmatpush1.bf16.msra.mxu0 %v3923_v10  ;;  %v4019_v10 = vld [vmem:[%s5927_s0 + $0x18] ss:$100 sps:$4 sm:$0xff]  }
  0x48   :  { %2702 = vmatpush1.bf16.msra.mxu1 %v3926_v11  ;;  %2660 = vmatprep.subr.bf16.mxu0 %v3931_v12  ;;  %v4022_v11 = vld [vmem:[%s5926_s1 + $0x570] ss:$8 sps:$4 sm:$0xff]   ;;  %v4027_v12 = vld [vmem:[%s5926_s1 + $0x464] ss:$8 sps:$4 sm:$0xff]  }
  0x49   :  { %2703 = vmatprep.subr.bf16.mxu1 %v3934_v13  ;;  %v4030_v13 = vld [vmem:[%s5926_s1 + $0x564] ss:$8 sps:$4 sm:$0xff]   ;;  %v4058_v37 = vld [vmem:[%s5926_s1 + $0x510] ss:$8 sps:$4 sm:$0xff]  }
  0x4b   :  { %2661 = vmatpush1.bf16.msra.mxu0 %v3929_v14  ;;  %v4025_v14 = vld [vmem:[%s5926_s1 + $0x460] ss:$8 sps:$4 sm:$0xff]  }
  0x4c   :  { %2704 = vmatpush1.bf16.msra.mxu1 %v3932_v15  ;;  %2662 = vmatprep.subr.bf16.mxu0 %v3937_v16  ;;  %v4028_v15 = vld [vmem:[%s5926_s1 + $0x560] ss:$8 sps:$4 sm:$0xff]   ;;  %v4033_v16 = vld [vmem:[%s5926_s1 + $0x454] ss:$8 sps:$4 sm:$0xff]  }
  0x4d   :  { %2705 = vmatprep.subr.bf16.mxu1 %v3940_v17  ;;  %v4036_v17 = vld [vmem:[%s5926_s1 + $0x554] ss:$8 sps:$4 sm:$0xff]  }
  0x4f   :  { %2663 = vmatpush1.bf16.msra.mxu0 %v3935_v18  ;;  %v4031_v18 = vld [vmem:[%s5926_s1 + $0x450] ss:$8 sps:$4 sm:$0xff]  }
  0x50   :  { %2706 = vmatpush1.bf16.msra.mxu1 %v3938_v19  ;;  %2664 = vmatprep.subr.bf16.mxu0 %v3943_v20  ;;  %v4117_v19 = vld [vmem:[%s5927_s0 + $0x24] ss:$100 sps:$4 sm:$0xff]   ;;  %v4034_v20 = vld [vmem:[%s5926_s1 + $0x550] ss:$8 sps:$4 sm:$0xff]  }
  0x51   :  { %2707 = vmatprep.subr.bf16.mxu1 %v3946_v21  ;;  %v4039_v21 = vld [vmem:[%s5926_s1 + $0x444] ss:$8 sps:$4 sm:$0xff]  }
  0x53   :  { %2665 = vmatpush1.bf16.msra.mxu0 %v3941_v22  ;;  %v4042_v22 = vld [vmem:[%s5926_s1 + $0x544] ss:$8 sps:$4 sm:$0xff]  }
  0x54   :  { %2708 = vmatpush1.bf16.msra.mxu1 %v3944_v23  ;;  %2666 = vmatprep.subr.bf16.mxu0 %v3949_v24  ;;  %v4123_v23 = vld [vmem:[%s5927_s0 + $0x2c] ss:$100 sps:$4 sm:$0xff]   ;;  %v4037_v24 = vld [vmem:[%s5926_s1 + $0x440] ss:$8 sps:$4 sm:$0xff]  }
  0x55   :  { %2709 = vmatprep.subr.bf16.mxu1 %v3952_v25  ;;  %v4040_v25 = vld [vmem:[%s5926_s1 + $0x540] ss:$8 sps:$4 sm:$0xff]  }
  0x57   :  { %2667 = vmatpush1.bf16.msra.mxu0 %v3947_v26  ;;  %v4045_v26 = vld [vmem:[%s5926_s1 + $0x434] ss:$8 sps:$4 sm:$0xff]  }
  0x58   :  { %2710 = vmatpush1.bf16.msra.mxu1 %v3950_v27  ;;  %2668 = vmatprep.subr.bf16.mxu0 %v3955_v28  ;;  %v4048_v27 = vld [vmem:[%s5926_s1 + $0x534] ss:$8 sps:$4 sm:$0xff]   ;;  %v4043_v28 = vld [vmem:[%s5926_s1 + $0x430] ss:$8 sps:$4 sm:$0xff]  }
  0x59   :  { %2711 = vmatprep.subr.bf16.mxu1 %v3958_v29  ;;  %v4046_v29 = vld [vmem:[%s5926_s1 + $0x530] ss:$8 sps:$4 sm:$0xff]  }
  0x5b   :  { %2669 = vmatpush1.bf16.msra.mxu0 %v3953_v30  ;;  %v4051_v30 = vld [vmem:[%s5926_s1 + $0x424] ss:$8 sps:$4 sm:$0xff]  }
  0x5c   :  { %2712 = vmatpush1.bf16.msra.mxu1 %v3956_v31  ;;  %2670 = vmatprep.subr.bf16.mxu0 %v3961_v32  ;;  %v4054_v31 = vld [vmem:[%s5926_s1 + $0x524] ss:$8 sps:$4 sm:$0xff]   ;;  %v4049_v32 = vld [vmem:[%s5926_s1 + $0x420] ss:$8 sps:$4 sm:$0xff]  }
  0x5d   :  { %2713 = vmatprep.subr.bf16.mxu1 %v3964_v33  ;;  %v4052_v33 = vld [vmem:[%s5926_s1 + $0x520] ss:$8 sps:$4 sm:$0xff]  }
  0x5f   :  { %2671 = vmatpush1.bf16.msra.mxu0 %v3959_v35  ;;  %v4060_v35 = vld [vmem:[%s5926_s1 + $0x514] ss:$8 sps:$4 sm:$0xff]  }
  0x60   :  { %2714 = vmatpush1.bf16.msra.mxu1 %v3962_v36  ;;  %2672 = vmatprep.subr.bf16.mxu0 %v3967_v38  ;;  %v4055_v36 = vld [vmem:[%s5926_s1 + $0x410] ss:$8 sps:$4 sm:$0xff]   ;;  %v4063_v38 = vld [vmem:[%s5926_s1 + $0x404] ss:$8 sps:$4 sm:$0xff]  }
  0x61   :  { %2715 = vmatprep.subr.bf16.mxu1 %v3970_v39  ;;  %v4066_v39 = vld [vmem:[%s5926_s1 + $0x504] ss:$8 sps:$4 sm:$0xff]  }
  0x63   :  { %2673 = vmatpush2.bf16.msra.mxu0 %v3965_v40  ;;  %v4061_v40 = vld [vmem:[%s5926_s1 + $0x400] ss:$8 sps:$4 sm:$0xff]  }
  0x64   :  { %2716 = vmatpush2.bf16.msra.mxu1 %v3968_v41  ;;  %2674 = vmatprep.subr.bf16.mxu0 %v3973_v42  ;;  %v4064_v41 = vld [vmem:[%s5926_s1 + $0x500] ss:$8 sps:$4 sm:$0xff]   ;;  %v4069_v42 = vld [vmem:[%s5926_s1 + $0x4f4] ss:$8 sps:$4 sm:$0xff]  }
  0x65   :  { %2717 = vmatprep.subr.bf16.mxu1 %v3976_v43  ;;  %v4072_v43 = vld [vmem:[%s5926_s1 + $0x5f4] ss:$8 sps:$4 sm:$0xff]  }
  0x67   :  { %2675 = vmatpush2.bf16.msra.mxu0 %v3971_v44  ;;  %v4067_v44 = vld [vmem:[%s5926_s1 + $0x4f0] ss:$8 sps:$4 sm:$0xff]  }
  0x68   :  { %2718 = vmatpush2.bf16.msra.mxu1 %v3974_v45  ;;  %2676 = vmatprep.subr.bf16.mxu0 %v3979_v46  ;;  %v4070_v45 = vld [vmem:[%s5926_s1 + $0x5f0] ss:$8 sps:$4 sm:$0xff]   ;;  %v4075_v46 = vld [vmem:[%s5926_s1 + $0x4e4] ss:$8 sps:$4 sm:$0xff]  }
  0x69   :  { %2719 = vmatprep.subr.bf16.mxu1 %v3982_v47  ;;  %v4078_v47 = vld [vmem:[%s5926_s1 + $0x5e4] ss:$8 sps:$4 sm:$0xff]  }
  0x6b   :  { %2677 = vmatpush2.bf16.msra.mxu0 %v3977_v48  ;;  %v4073_v48 = vld [vmem:[%s5926_s1 + $0x4e0] ss:$8 sps:$4 sm:$0xff]  }
  0x6c   :  { %2720 = vmatpush2.bf16.msra.mxu1 %v3980_v49  ;;  %2678 = vmatprep.subr.bf16.mxu0 %v3985_v50  ;;  %v4076_v49 = vld [vmem:[%s5926_s1 + $0x5e0] ss:$8 sps:$4 sm:$0xff]   ;;  %v4081_v50 = vld [vmem:[%s5926_s1 + $0x4d4] ss:$8 sps:$4 sm:$0xff]  }
  0x6d   :  { %2721 = vmatprep.subr.bf16.mxu1 %v3988_v51  ;;  %v4084_v51 = vld [vmem:[%s5926_s1 + $0x5d4] ss:$8 sps:$4 sm:$0xff]  }
  0x6f   :  { %2679 = vmatpush2.bf16.msra.mxu0 %v3983_v52  ;;  %v4079_v52 = vld [vmem:[%s5926_s1 + $0x4d0] ss:$8 sps:$4 sm:$0xff]  }
  0x70   :  { %2722 = vmatpush2.bf16.msra.mxu1 %v3986_v53  ;;  %2680 = vmatprep.subr.bf16.mxu0 %v3991_v54  ;;  %v4082_v53 = vld [vmem:[%s5926_s1 + $0x5d0] ss:$8 sps:$4 sm:$0xff]   ;;  %v4087_v54 = vld [vmem:[%s5926_s1 + $0x4c4] ss:$8 sps:$4 sm:$0xff]  }
  0x71   :  { %2723 = vmatprep.subr.bf16.mxu1 %v3994_v55  ;;  %v4090_v55 = vld [vmem:[%s5926_s1 + $0x5c4] ss:$8 sps:$4 sm:$0xff]  }
  0x73   :  { %2681 = vmatpush2.bf16.msra.mxu0 %v3989_v56  ;;  %v4085_v56 = vld [vmem:[%s5926_s1 + $0x4c0] ss:$8 sps:$4 sm:$0xff]  }
  0x74   :  { %2724 = vmatpush2.bf16.msra.mxu1 %v3992_v57  ;;  %2682 = vmatprep.subr.bf16.mxu0 %v3997_v58  ;;  %v4088_v57 = vld [vmem:[%s5926_s1 + $0x5c0] ss:$8 sps:$4 sm:$0xff]   ;;  %v4093_v58 = vld [vmem:[%s5926_s1 + $0x4b4] ss:$8 sps:$4 sm:$0xff]  }
  0x75   :  { %2725 = vmatprep.subr.bf16.mxu1 %v4000_v59  ;;  %v4096_v59 = vld [vmem:[%s5926_s1 + $0x5b4] ss:$8 sps:$4 sm:$0xff]  }
  0x77   :  { %2683 = vmatpush2.bf16.msra.mxu0 %v3995_v60  ;;  %v4091_v60 = vld [vmem:[%s5926_s1 + $0x4b0] ss:$8 sps:$4 sm:$0xff]  }
  0x78   :  { %2726 = vmatpush2.bf16.msra.mxu1 %v3998_v61  ;;  %2684 = vmatprep.subr.bf16.mxu0 %v4003_v62  ;;  %v4094_v61 = vld [vmem:[%s5926_s1 + $0x5b0] ss:$8 sps:$4 sm:$0xff]   ;;  %v4099_v62 = vld [vmem:[%s5926_s1 + $0x4a4] ss:$8 sps:$4 sm:$0xff]  }
  0x79   :  { %2727 = vmatprep.subr.bf16.mxu1 %v4006_v63  ;;  %v4102_v63 = vld [vmem:[%s5926_s1 + $0x5a4] ss:$8 sps:$4 sm:$0xff]  }
  0x7b   :  { %2685 = vmatpush2.bf16.msra.mxu0 %v4001_v0  ;;  %v4097_v0 = vld [vmem:[%s5926_s1 + $0x4a0] ss:$8 sps:$4 sm:$0xff]  }
  0x7c   :  { %2728 = vmatpush2.bf16.msra.mxu1 %v4004_v1  ;;  %2686 = vmatprep.subr.bf16.mxu0 %v4009_v2  ;;  %v4100_v1 = vld [vmem:[%s5926_s1 + $0x5a0] ss:$8 sps:$4 sm:$0xff]   ;;  %v4105_v2 = vld [vmem:[%s5926_s1 + $0x494] ss:$8 sps:$4 sm:$0xff]  }
  0x7d   :  { %2729 = vmatprep.subr.bf16.mxu1 %v4012_v3  ;;  %v4108_v3 = vld [vmem:[%s5926_s1 + $0x594] ss:$8 sps:$4 sm:$0xff]  }
  0x7f   :  { %2687 = vmatpush2.bf16.msra.mxu0 %v4007_v4  ;;  %v4103_v4 = vld [vmem:[%s5926_s1 + $0x490] ss:$8 sps:$4 sm:$0xff]  }
  0x80   :  { %2730 = vmatpush2.bf16.msra.mxu1 %v4010_v5  ;;  %2742 = vmatprep.subr.bf16.mxu0 %v4018_v6  ;;  %v4106_v5 = vld [vmem:[%s5926_s1 + $0x590] ss:$8 sps:$4 sm:$0xff]   ;;  %v4111_v6 = vld [vmem:[%s5926_s1 + $0x484] ss:$8 sps:$4 sm:$0xff]  }
  0x81   :  { %2785 = vmatprep.subr.bf16.mxu1 %v4024_v7  ;;  %v4114_v7 = vld [vmem:[%s5926_s1 + $0x584] ss:$8 sps:$4 sm:$0xff]  }
  0x82   :  { %2689 = vmatmul.mubr.bf16.vlgmr.msra.gmra.mxu0 %v4013_v8  ;;  %v4109_v8 = vld [vmem:[%s5926_s1 + $0x480] ss:$8 sps:$4 sm:$0xff]  }
  0x83   :  { %2732 = vmatmul.mubr.bf16.vlgmr.msra.gmra.mxu1 %v4019_v10  ;;  %2743 = vmatpush1.bf16.msra.mxu0 %v4016_v9  ;;  %v4112_v9 = vld [vmem:[%s5926_s1 + $0x580] ss:$8 sps:$4 sm:$0xff]   ;;  %v4120_v10 = vld [vmem:[%s5926_s1 + $0x674] ss:$8 sps:$4 sm:$0xff]  }
  0x84   :  { %2786 = vmatpush1.bf16.msra.mxu1 %v4022_v11  ;;  %2744 = vmatprep.subr.bf16.mxu0 %v4027_v12  ;;  %v4126_v11 = vld [vmem:[%s5926_s1 + $0x774] ss:$8 sps:$4 sm:$0xff]   ;;  %v4115_v12 = vld [vmem:[%s5927_s0 + $0x20] ss:$100 sps:$4 sm:$0xff]  }
  0x85   :  { %2787 = vmatprep.subr.bf16.mxu1 %v4030_v13  ;;  %2774 = vmatprep.mubr.bf16.mxu0 %v4117_v19  ;;  %v4118_v13 = vld [vmem:[%s5926_s1 + $0x670] ss:$8 sps:$4 sm:$0xff]   ;;  %v4225_v19 = vld [vmem:[%s5927_s0 + $0x3c] ss:$100 sps:$4 sm:$0xff]  }
  0x86   :  { %2817 = vmatprep.mubr.bf16.mxu1 %v4123_v23  ;;  %v4138_v23 = vld [vmem:[%s5926_s1 + $0x754] ss:$8 sps:$4 sm:$0xff]  }
  0x87   :  { %2745 = vmatpush1.bf16.msra.mxu0 %v4025_v14  ;;  %v4121_v14 = vld [vmem:[%s5927_s0 + $0x28] ss:$100 sps:$4 sm:$0xff]  }
  0x88   :  { %2788 = vmatpush1.bf16.msra.mxu1 %v4028_v15  ;;  %2746 = vmatprep.subr.bf16.mxu0 %v4033_v16  ;;  %v4124_v15 = vld [vmem:[%s5926_s1 + $0x770] ss:$8 sps:$4 sm:$0xff]   ;;  %v4129_v16 = vld [vmem:[%s5926_s1 + $0x664] ss:$8 sps:$4 sm:$0xff]  }
  0x89   :  { %2789 = vmatprep.subr.bf16.mxu1 %v4036_v17  ;;  %v4132_v17 = vld [vmem:[%s5926_s1 + $0x764] ss:$8 sps:$4 sm:$0xff]  }
  0x8b   :  { %2747 = vmatpush1.bf16.msra.mxu0 %v4031_v18  ;;  %v4219_v18 = vld [vmem:[%s5927_s0 + $0x34] ss:$100 sps:$4 sm:$0xff]  }
  0x8c   :  { %2790 = vmatpush1.bf16.msra.mxu1 %v4034_v20  ;;  %2748 = vmatprep.subr.bf16.mxu0 %v4039_v21  ;;  %v4127_v20 = vld [vmem:[%s5926_s1 + $0x660] ss:$8 sps:$4 sm:$0xff]  }
  0x8d   :  { %2791 = vmatprep.subr.bf16.mxu1 %v4042_v22  ;;  %v4130_v21 = vld [vmem:[%s5926_s1 + $0x760] ss:$8 sps:$4 sm:$0xff]   ;;  %v4135_v22 = vld [vmem:[%s5926_s1 + $0x654] ss:$8 sps:$4 sm:$0xff]  }
  0x8f   :  { %2749 = vmatpush1.bf16.msra.mxu0 %v4037_v24  ;;  %v4133_v24 = vld [vmem:[%s5926_s1 + $0x650] ss:$8 sps:$4 sm:$0xff]  }
  0x90   :  { %2792 = vmatpush1.bf16.msra.mxu1 %v4040_v25  ;;  %2750 = vmatprep.subr.bf16.mxu0 %v4045_v26  ;;  %v4136_v25 = vld [vmem:[%s5926_s1 + $0x750] ss:$8 sps:$4 sm:$0xff]   ;;  %v4141_v26 = vld [vmem:[%s5926_s1 + $0x644] ss:$8 sps:$4 sm:$0xff]  }
  0x91   :  { %2793 = vmatprep.subr.bf16.mxu1 %v4048_v27  ;;  %v4144_v27 = vld [vmem:[%s5926_s1 + $0x744] ss:$8 sps:$4 sm:$0xff]  }
  0x93   :  { %2751 = vmatpush1.bf16.msra.mxu0 %v4043_v28  ;;  %v4139_v28 = vld [vmem:[%s5926_s1 + $0x640] ss:$8 sps:$4 sm:$0xff]  }
  0x94   :  { %2794 = vmatpush1.bf16.msra.mxu1 %v4046_v29  ;;  %2752 = vmatprep.subr.bf16.mxu0 %v4051_v30  ;;  %v4142_v29 = vld [vmem:[%s5926_s1 + $0x740] ss:$8 sps:$4 sm:$0xff]   ;;  %v4147_v30 = vld [vmem:[%s5926_s1 + $0x634] ss:$8 sps:$4 sm:$0xff]  }
  0x95   :  { %2795 = vmatprep.subr.bf16.mxu1 %v4054_v31  ;;  %v4150_v31 = vld [vmem:[%s5926_s1 + $0x734] ss:$8 sps:$4 sm:$0xff]  }
  0x97   :  { %2753 = vmatpush1.bf16.msra.mxu0 %v4049_v32  ;;  %v4145_v32 = vld [vmem:[%s5926_s1 + $0x630] ss:$8 sps:$4 sm:$0xff]  }
  0x98   :  { %2796 = vmatpush1.bf16.msra.mxu1 %v4052_v33  ;;  %2754 = vmatprep.subr.bf16.mxu0 %v4057_v34  ;;  %v4148_v33 = vld [vmem:[%s5926_s1 + $0x730] ss:$8 sps:$4 sm:$0xff]   ;;  %v4153_v34 = vld [vmem:[%s5926_s1 + $0x624] ss:$8 sps:$4 sm:$0xff]  }
  0x99   :  { %2797 = vmatprep.subr.bf16.mxu1 %v4060_v35  ;;  %v4156_v35 = vld [vmem:[%s5926_s1 + $0x724] ss:$8 sps:$4 sm:$0xff]  }
  0x9b   :  { %2755 = vmatpush1.bf16.msra.mxu0 %v4055_v36  ;;  %v4151_v36 = vld [vmem:[%s5926_s1 + $0x620] ss:$8 sps:$4 sm:$0xff]  }
  0x9c   :  { %2798 = vmatpush1.bf16.msra.mxu1 %v4058_v37  ;;  %2756 = vmatprep.subr.bf16.mxu0 %v4063_v38  ;;  %v4154_v37 = vld [vmem:[%s5926_s1 + $0x720] ss:$8 sps:$4 sm:$0xff]   ;;  %v4159_v38 = vld [vmem:[%s5926_s1 + $0x614] ss:$8 sps:$4 sm:$0xff]  }
  0x9d   :  { %2799 = vmatprep.subr.bf16.mxu1 %v4066_v39  ;;  %v4162_v39 = vld [vmem:[%s5926_s1 + $0x714] ss:$8 sps:$4 sm:$0xff]  }
  0x9f   :  { %2757 = vmatpush1.bf16.msra.mxu0 %v4061_v40  ;;  %v4157_v40 = vld [vmem:[%s5926_s1 + $0x610] ss:$8 sps:$4 sm:$0xff]  }
  0xa0   :  { %2800 = vmatpush1.bf16.msra.mxu1 %v4064_v41  ;;  %2758 = vmatprep.subr.bf16.mxu0 %v4069_v42  ;;  %v4160_v41 = vld [vmem:[%s5926_s1 + $0x710] ss:$8 sps:$4 sm:$0xff]   ;;  %v4165_v42 = vld [vmem:[%s5926_s1 + $0x604] ss:$8 sps:$4 sm:$0xff]  }
  0xa1   :  { %2801 = vmatprep.subr.bf16.mxu1 %v4072_v43  ;;  %v4168_v43 = vld [vmem:[%s5926_s1 + $0x704] ss:$8 sps:$4 sm:$0xff]  }
  0xa3   :  { %2759 = vmatpush2.bf16.msra.mxu0 %v4067_v44  ;;  %v4163_v44 = vld [vmem:[%s5926_s1 + $0x600] ss:$8 sps:$4 sm:$0xff]  }
  0xa4   :  { %2802 = vmatpush2.bf16.msra.mxu1 %v4070_v45  ;;  %2760 = vmatprep.subr.bf16.mxu0 %v4075_v46  ;;  %v4166_v45 = vld [vmem:[%s5926_s1 + $0x700] ss:$8 sps:$4 sm:$0xff]   ;;  %v4171_v46 = vld [vmem:[%s5926_s1 + $0x6f4] ss:$8 sps:$4 sm:$0xff]  }
  0xa5   :  { %2803 = vmatprep.subr.bf16.mxu1 %v4078_v47  ;;  %v4174_v47 = vld [vmem:[%s5926_s1 + $0x7f4] ss:$8 sps:$4 sm:$0xff]  }
  0xa7   :  { %2761 = vmatpush2.bf16.msra.mxu0 %v4073_v48  ;;  %v4169_v48 = vld [vmem:[%s5926_s1 + $0x6f0] ss:$8 sps:$4 sm:$0xff]  }
  0xa8   :  { %2804 = vmatpush2.bf16.msra.mxu1 %v4076_v49  ;;  %2762 = vmatprep.subr.bf16.mxu0 %v4081_v50  ;;  %v4172_v49 = vld [vmem:[%s5926_s1 + $0x7f0] ss:$8 sps:$4 sm:$0xff]   ;;  %v4177_v50 = vld [vmem:[%s5926_s1 + $0x6e4] ss:$8 sps:$4 sm:$0xff]  }
  0xa9   :  { %2805 = vmatprep.subr.bf16.mxu1 %v4084_v51  ;;  %v4180_v51 = vld [vmem:[%s5926_s1 + $0x7e4] ss:$8 sps:$4 sm:$0xff]  }
  0xab   :  { %2763 = vmatpush2.bf16.msra.mxu0 %v4079_v52  ;;  %v4175_v52 = vld [vmem:[%s5926_s1 + $0x6e0] ss:$8 sps:$4 sm:$0xff]  }
  0xac   :  { %2806 = vmatpush2.bf16.msra.mxu1 %v4082_v53  ;;  %2764 = vmatprep.subr.bf16.mxu0 %v4087_v54  ;;  %v4178_v53 = vld [vmem:[%s5926_s1 + $0x7e0] ss:$8 sps:$4 sm:$0xff]   ;;  %v4183_v54 = vld [vmem:[%s5926_s1 + $0x6d4] ss:$8 sps:$4 sm:$0xff]  }
  0xad   :  { %2807 = vmatprep.subr.bf16.mxu1 %v4090_v55  ;;  %v4186_v55 = vld [vmem:[%s5926_s1 + $0x7d4] ss:$8 sps:$4 sm:$0xff]  }
  0xaf   :  { %2765 = vmatpush2.bf16.msra.mxu0 %v4085_v56  ;;  %v4181_v56 = vld [vmem:[%s5926_s1 + $0x6d0] ss:$8 sps:$4 sm:$0xff]  }
  0xb0   :  { %2808 = vmatpush2.bf16.msra.mxu1 %v4088_v57  ;;  %2766 = vmatprep.subr.bf16.mxu0 %v4093_v58  ;;  %v4184_v57 = vld [vmem:[%s5926_s1 + $0x7d0] ss:$8 sps:$4 sm:$0xff]   ;;  %v4189_v58 = vld [vmem:[%s5926_s1 + $0x6c4] ss:$8 sps:$4 sm:$0xff]  }
  0xb1   :  { %2809 = vmatprep.subr.bf16.mxu1 %v4096_v59  ;;  %v4192_v59 = vld [vmem:[%s5926_s1 + $0x7c4] ss:$8 sps:$4 sm:$0xff]  }
  0xb3   :  { %2767 = vmatpush2.bf16.msra.mxu0 %v4091_v60  ;;  %v4187_v60 = vld [vmem:[%s5926_s1 + $0x6c0] ss:$8 sps:$4 sm:$0xff]  }
  0xb4   :  { %2810 = vmatpush2.bf16.msra.mxu1 %v4094_v61  ;;  %2768 = vmatprep.subr.bf16.mxu0 %v4099_v62  ;;  %v4190_v61 = vld [vmem:[%s5926_s1 + $0x7c0] ss:$8 sps:$4 sm:$0xff]   ;;  %v4195_v62 = vld [vmem:[%s5926_s1 + $0x6b4] ss:$8 sps:$4 sm:$0xff]  }
  0xb5   :  { %2811 = vmatprep.subr.bf16.mxu1 %v4102_v63  ;;  %v4198_v63 = vld [vmem:[%s5926_s1 + $0x7b4] ss:$8 sps:$4 sm:$0xff]  }
  0xb7   :  { %2769 = vmatpush2.bf16.msra.mxu0 %v4097_v0  ;;  %v4193_v0 = vld [vmem:[%s5926_s1 + $0x6b0] ss:$8 sps:$4 sm:$0xff]  }
  0xb8   :  { %2812 = vmatpush2.bf16.msra.mxu1 %v4100_v1  ;;  %2770 = vmatprep.subr.bf16.mxu0 %v4105_v2  ;;  %v4196_v1 = vld [vmem:[%s5926_s1 + $0x7b0] ss:$8 sps:$4 sm:$0xff]   ;;  %v4201_v2 = vld [vmem:[%s5926_s1 + $0x6a4] ss:$8 sps:$4 sm:$0xff]  }
  0xb9   :  { %2813 = vmatprep.subr.bf16.mxu1 %v4108_v3  ;;  %v4204_v3 = vld [vmem:[%s5926_s1 + $0x7a4] ss:$8 sps:$4 sm:$0xff]  }
  0xbb   :  { %2771 = vmatpush2.bf16.msra.mxu0 %v4103_v4  ;;  %v4199_v4 = vld [vmem:[%s5926_s1 + $0x6a0] ss:$8 sps:$4 sm:$0xff]  }
  0xbc   :  { %2814 = vmatpush2.bf16.msra.mxu1 %v4106_v5  ;;  %2772 = vmatprep.subr.bf16.mxu0 %v4111_v6  ;;  %v4202_v5 = vld [vmem:[%s5926_s1 + $0x7a0] ss:$8 sps:$4 sm:$0xff]   ;;  %v4207_v6 = vld [vmem:[%s5926_s1 + $0x694] ss:$8 sps:$4 sm:$0xff]  }
  0xbd   :  { %2815 = vmatprep.subr.bf16.mxu1 %v4114_v7  ;;  %v4210_v7 = vld [vmem:[%s5926_s1 + $0x794] ss:$8 sps:$4 sm:$0xff]  }
  0xbf   :  { %2773 = vmatpush2.bf16.msra.mxu0 %v4109_v8  ;;  %v4205_v8 = vld [vmem:[%s5926_s1 + $0x690] ss:$8 sps:$4 sm:$0xff]  }
  0xc0   :  { %2816 = vmatpush2.bf16.msra.mxu1 %v4112_v9  ;;  %2828 = vmatprep.subr.bf16.mxu0 %v4120_v10  ;;  %v4208_v9 = vld [vmem:[%s5926_s1 + $0x790] ss:$8 sps:$4 sm:$0xff]   ;;  %v4213_v10 = vld [vmem:[%s5926_s1 + $0x684] ss:$8 sps:$4 sm:$0xff]  }
  0xc1   :  { %2871 = vmatprep.subr.bf16.mxu1 %v4126_v11  ;;  %v4216_v11 = vld [vmem:[%s5926_s1 + $0x784] ss:$8 sps:$4 sm:$0xff]  }
  0xc2   :  { %2775 = vmatmul.mubr.bf16.vlgmr.msra.gmra.mxu0 %v4115_v12  ;;  %v4211_v12 = vld [vmem:[%s5926_s1 + $0x680] ss:$8 sps:$4 sm:$0xff]  }
  0xc3   :  { %2818 = vmatmul.mubr.bf16.vlgmr.msra.gmra.mxu1 %v4121_v14  ;;  %2829 = vmatpush1.bf16.msra.mxu0 %v4118_v13  ;;  %v4214_v13 = vld [vmem:[%s5926_s1 + $0x780] ss:$8 sps:$4 sm:$0xff]   ;;  %v4222_v14 = vld [vmem:[%s5926_s1 + $0x874] ss:$8 sps:$4 sm:$0xff]  }
  0xc4   :  { %2872 = vmatpush1.bf16.msra.mxu1 %v4124_v15  ;;  %2830 = vmatprep.subr.bf16.mxu0 %v4129_v16  ;;  %v4228_v15 = vld [vmem:[%s5926_s1 + $0x974] ss:$8 sps:$4 sm:$0xff]  }
  0xc5   :  { %2873 = vmatprep.subr.bf16.mxu1 %v4132_v17  ;;  %2860 = vmatprep.mubr.bf16.mxu0 %v4219_v18  ;;  %v4217_v16 = vld [vmem:[%s5927_s0 + $0x30] ss:$100 sps:$4 sm:$0xff]   ;;  %v4223_v18 = vld [vmem:[%s5927_s0 + $0x38] ss:$100 sps:$4 sm:$0xff]  }
  0xc6   :  { %2903 = vmatprep.mubr.bf16.mxu1 %v4225_v19  ;;  %v4220_v17 = vld [vmem:[%s5926_s1 + $0x870] ss:$8 sps:$4 sm:$0xff]  }
  0xc7   :  { %2831 = vmatpush1.bf16.msra.mxu0 %v4127_v20  ;;  %v4226_v19 = vld [vmem:[%s5926_s1 + $0x970] ss:$8 sps:$4 sm:$0xff]   ;;  %v4231_v20 = vld [vmem:[%s5926_s1 + $0x864] ss:$8 sps:$4 sm:$0xff]  }
  0xc8   :  { %2874 = vmatpush1.bf16.msra.mxu1 %v4130_v21  ;;  %2832 = vmatprep.subr.bf16.mxu0 %v4135_v22  ;;  %v4234_v21 = vld [vmem:[%s5926_s1 + $0x964] ss:$8 sps:$4 sm:$0xff]  }
  0xc9   :  { %2875 = vmatprep.subr.bf16.mxu1 %v4138_v23  ;;  %v4321_v22 = vld [vmem:[%s5927_s0 + $0x44] ss:$100 sps:$4 sm:$0xff]   ;;  %v4327_v23 = vld [vmem:[%s5927_s0 + $0x4c] ss:$100 sps:$4 sm:$0xff]  }
  0xcb   :  { %2833 = vmatpush1.bf16.msra.mxu0 %v4133_v24  ;;  %v4229_v24 = vld [vmem:[%s5926_s1 + $0x860] ss:$8 sps:$4 sm:$0xff]  }
  0xcc   :  { %2876 = vmatpush1.bf16.msra.mxu1 %v4136_v25  ;;  %2834 = vmatprep.subr.bf16.mxu0 %v4141_v26  ;;  %v4232_v25 = vld [vmem:[%s5926_s1 + $0x960] ss:$8 sps:$4 sm:$0xff]   ;;  %v4237_v26 = vld [vmem:[%s5926_s1 + $0x854] ss:$8 sps:$4 sm:$0xff]  }
  0xcd   :  { %2877 = vmatprep.subr.bf16.mxu1 %v4144_v27  ;;  %v4240_v27 = vld [vmem:[%s5926_s1 + $0x954] ss:$8 sps:$4 sm:$0xff]  }
  0xcf   :  { %2835 = vmatpush1.bf16.msra.mxu0 %v4139_v28  ;;  %v4235_v28 = vld [vmem:[%s5926_s1 + $0x850] ss:$8 sps:$4 sm:$0xff]  }
  0xd0   :  { %2878 = vmatpush1.bf16.msra.mxu1 %v4142_v29  ;;  %2836 = vmatprep.subr.bf16.mxu0 %v4147_v30  ;;  %v4238_v29 = vld [vmem:[%s5926_s1 + $0x950] ss:$8 sps:$4 sm:$0xff]   ;;  %v4243_v30 = vld [vmem:[%s5926_s1 + $0x844] ss:$8 sps:$4 sm:$0xff]  }
  0xd1   :  { %2879 = vmatprep.subr.bf16.mxu1 %v4150_v31  ;;  %v4246_v31 = vld [vmem:[%s5926_s1 + $0x944] ss:$8 sps:$4 sm:$0xff]  }
  0xd3   :  { %2837 = vmatpush1.bf16.msra.mxu0 %v4145_v32  ;;  %v4241_v32 = vld [vmem:[%s5926_s1 + $0x840] ss:$8 sps:$4 sm:$0xff]  }
  0xd4   :  { %2880 = vmatpush1.bf16.msra.mxu1 %v4148_v33  ;;  %2838 = vmatprep.subr.bf16.mxu0 %v4153_v34  ;;  %v4244_v33 = vld [vmem:[%s5926_s1 + $0x940] ss:$8 sps:$4 sm:$0xff]   ;;  %v4249_v34 = vld [vmem:[%s5926_s1 + $0x834] ss:$8 sps:$4 sm:$0xff]  }
  0xd5   :  { %2881 = vmatprep.subr.bf16.mxu1 %v4156_v35  ;;  %v4252_v35 = vld [vmem:[%s5926_s1 + $0x934] ss:$8 sps:$4 sm:$0xff]  }
  0xd7   :  { %2839 = vmatpush1.bf16.msra.mxu0 %v4151_v36  ;;  %v4247_v36 = vld [vmem:[%s5926_s1 + $0x830] ss:$8 sps:$4 sm:$0xff]  }
  0xd8   :  { %2882 = vmatpush1.bf16.msra.mxu1 %v4154_v37  ;;  %2840 = vmatprep.subr.bf16.mxu0 %v4159_v38  ;;  %v4250_v37 = vld [vmem:[%s5926_s1 + $0x930] ss:$8 sps:$4 sm:$0xff]   ;;  %v4255_v38 = vld [vmem:[%s5926_s1 + $0x824] ss:$8 sps:$4 sm:$0xff]  }
  0xd9   :  { %2883 = vmatprep.subr.bf16.mxu1 %v4162_v39  ;;  %v4258_v39 = vld [vmem:[%s5926_s1 + $0x924] ss:$8 sps:$4 sm:$0xff]  }
  0xdb   :  { %2841 = vmatpush1.bf16.msra.mxu0 %v4157_v40  ;;  %v4253_v40 = vld [vmem:[%s5926_s1 + $0x820] ss:$8 sps:$4 sm:$0xff]  }
  0xdc   :  { %2884 = vmatpush1.bf16.msra.mxu1 %v4160_v41  ;;  %2842 = vmatprep.subr.bf16.mxu0 %v4165_v42  ;;  %v4256_v41 = vld [vmem:[%s5926_s1 + $0x920] ss:$8 sps:$4 sm:$0xff]   ;;  %v4261_v42 = vld [vmem:[%s5926_s1 + $0x814] ss:$8 sps:$4 sm:$0xff]  }
  0xdd   :  { %2885 = vmatprep.subr.bf16.mxu1 %v4168_v43  ;;  %v4264_v43 = vld [vmem:[%s5926_s1 + $0x914] ss:$8 sps:$4 sm:$0xff]  }
  0xdf   :  { %2843 = vmatpush1.bf16.msra.mxu0 %v4163_v44  ;;  %v4259_v44 = vld [vmem:[%s5926_s1 + $0x810] ss:$8 sps:$4 sm:$0xff]  }
  0xe0   :  { %2886 = vmatpush1.bf16.msra.mxu1 %v4166_v45  ;;  %2844 = vmatprep.subr.bf16.mxu0 %v4171_v46  ;;  %v4262_v45 = vld [vmem:[%s5926_s1 + $0x910] ss:$8 sps:$4 sm:$0xff]   ;;  %v4267_v46 = vld [vmem:[%s5926_s1 + $0x804] ss:$8 sps:$4 sm:$0xff]  }
  0xe1   :  { %2887 = vmatprep.subr.bf16.mxu1 %v4174_v47  ;;  %v4270_v47 = vld [vmem:[%s5926_s1 + $0x904] ss:$8 sps:$4 sm:$0xff]  }
  0xe3   :  { %2845 = vmatpush2.bf16.msra.mxu0 %v4169_v48  ;;  %v4265_v48 = vld [vmem:[%s5926_s1 + $0x800] ss:$8 sps:$4 sm:$0xff]  }
  0xe4   :  { %2888 = vmatpush2.bf16.msra.mxu1 %v4172_v49  ;;  %2846 = vmatprep.subr.bf16.mxu0 %v4177_v50  ;;  %v4268_v49 = vld [vmem:[%s5926_s1 + $0x900] ss:$8 sps:$4 sm:$0xff]   ;;  %v4273_v50 = vld [vmem:[%s5926_s1 + $0x8f4] ss:$8 sps:$4 sm:$0xff]  }
  0xe5   :  { %2889 = vmatprep.subr.bf16.mxu1 %v4180_v51  ;;  %v4276_v51 = vld [vmem:[%s5926_s1 + $0x9f4] ss:$8 sps:$4 sm:$0xff]  }
  0xe7   :  { %2847 = vmatpush2.bf16.msra.mxu0 %v4175_v52  ;;  %v4271_v52 = vld [vmem:[%s5926_s1 + $0x8f0] ss:$8 sps:$4 sm:$0xff]  }
  0xe8   :  { %2890 = vmatpush2.bf16.msra.mxu1 %v4178_v53  ;;  %2848 = vmatprep.subr.bf16.mxu0 %v4183_v54  ;;  %v4274_v53 = vld [vmem:[%s5926_s1 + $0x9f0] ss:$8 sps:$4 sm:$0xff]   ;;  %v4279_v54 = vld [vmem:[%s5926_s1 + $0x8e4] ss:$8 sps:$4 sm:$0xff]  }
  0xe9   :  { %2891 = vmatprep.subr.bf16.mxu1 %v4186_v55  ;;  %v4282_v55 = vld [vmem:[%s5926_s1 + $0x9e4] ss:$8 sps:$4 sm:$0xff]  }
  0xeb   :  { %2849 = vmatpush2.bf16.msra.mxu0 %v4181_v56  ;;  %v4277_v56 = vld [vmem:[%s5926_s1 + $0x8e0] ss:$8 sps:$4 sm:$0xff]  }
  0xec   :  { %2892 = vmatpush2.bf16.msra.mxu1 %v4184_v57  ;;  %2850 = vmatprep.subr.bf16.mxu0 %v4189_v58  ;;  %v4280_v57 = vld [vmem:[%s5926_s1 + $0x9e0] ss:$8 sps:$4 sm:$0xff]   ;;  %v4285_v58 = vld [vmem:[%s5926_s1 + $0x8d4] ss:$8 sps:$4 sm:$0xff]  }
  0xed   :  { %2893 = vmatprep.subr.bf16.mxu1 %v4192_v59  ;;  %v4288_v59 = vld [vmem:[%s5926_s1 + $0x9d4] ss:$8 sps:$4 sm:$0xff]  }
  0xef   :  { %2851 = vmatpush2.bf16.msra.mxu0 %v4187_v60  ;;  %v4283_v60 = vld [vmem:[%s5926_s1 + $0x8d0] ss:$8 sps:$4 sm:$0xff]  }
  0xf0   :  { %2894 = vmatpush2.bf16.msra.mxu1 %v4190_v61  ;;  %2852 = vmatprep.subr.bf16.mxu0 %v4195_v62  ;;  %v4286_v61 = vld [vmem:[%s5926_s1 + $0x9d0] ss:$8 sps:$4 sm:$0xff]   ;;  %v4291_v62 = vld [vmem:[%s5926_s1 + $0x8c4] ss:$8 sps:$4 sm:$0xff]  }
  0xf1   :  { %2895 = vmatprep.subr.bf16.mxu1 %v4198_v63  ;;  %v4294_v63 = vld [vmem:[%s5926_s1 + $0x9c4] ss:$8 sps:$4 sm:$0xff]  }
  0xf3   :  { %2853 = vmatpush2.bf16.msra.mxu0 %v4193_v0  ;;  %v4289_v0 = vld [vmem:[%s5926_s1 + $0x8c0] ss:$8 sps:$4 sm:$0xff]  }
  0xf4   :  { %2896 = vmatpush2.bf16.msra.mxu1 %v4196_v1  ;;  %2854 = vmatprep.subr.bf16.mxu0 %v4201_v2  ;;  %v4292_v1 = vld [vmem:[%s5926_s1 + $0x9c0] ss:$8 sps:$4 sm:$0xff]   ;;  %v4297_v2 = vld [vmem:[%s5926_s1 + $0x8b4] ss:$8 sps:$4 sm:$0xff]  }
  0xf5   :  { %2897 = vmatprep.subr.bf16.mxu1 %v4204_v3  ;;  %v4300_v3 = vld [vmem:[%s5926_s1 + $0x9b4] ss:$8 sps:$4 sm:$0xff]  }
  0xf7   :  { %2855 = vmatpush2.bf16.msra.mxu0 %v4199_v4  ;;  %v4295_v4 = vld [vmem:[%s5926_s1 + $0x8b0] ss:$8 sps:$4 sm:$0xff]  }
  0xf8   :  { %2898 = vmatpush2.bf16.msra.mxu1 %v4202_v5  ;;  %2856 = vmatprep.subr.bf16.mxu0 %v4207_v6  ;;  %v4298_v5 = vld [vmem:[%s5926_s1 + $0x9b0] ss:$8 sps:$4 sm:$0xff]   ;;  %v4303_v6 = vld [vmem:[%s5926_s1 + $0x8a4] ss:$8 sps:$4 sm:$0xff]  }
  0xf9   :  { %2899 = vmatprep.subr.bf16.mxu1 %v4210_v7  ;;  %v4306_v7 = vld [vmem:[%s5926_s1 + $0x9a4] ss:$8 sps:$4 sm:$0xff]  }
  0xfb   :  { %2857 = vmatpush2.bf16.msra.mxu0 %v4205_v8  ;;  %v4301_v8 = vld [vmem:[%s5926_s1 + $0x8a0] ss:$8 sps:$4 sm:$0xff]  }
  0xfc   :  { %2900 = vmatpush2.bf16.msra.mxu1 %v4208_v9  ;;  %2858 = vmatprep.subr.bf16.mxu0 %v4213_v10  ;;  %v4304_v9 = vld [vmem:[%s5926_s1 + $0x9a0] ss:$8 sps:$4 sm:$0xff]   ;;  %v4309_v10 = vld [vmem:[%s5926_s1 + $0x894] ss:$8 sps:$4 sm:$0xff]  }
  0xfd   :  { %2901 = vmatprep.subr.bf16.mxu1 %v4216_v11  ;;  %v4312_v11 = vld [vmem:[%s5926_s1 + $0x994] ss:$8 sps:$4 sm:$0xff]  }
  0xff   :  { %2859 = vmatpush2.bf16.msra.mxu0 %v4211_v12  ;;  %v4307_v12 = vld [vmem:[%s5926_s1 + $0x890] ss:$8 sps:$4 sm:$0xff]  }
 0x100   :  { %2902 = vmatpush2.bf16.msra.mxu1 %v4214_v13  ;;  %2914 = vmatprep.subr.bf16.mxu0 %v4222_v14  ;;  %v4310_v13 = vld [vmem:[%s5926_s1 + $0x990] ss:$8 sps:$4 sm:$0xff]   ;;  %v4315_v14 = vld [vmem:[%s5926_s1 + $0x884] ss:$8 sps:$4 sm:$0xff]  }
 0x101   :  { %2957 = vmatprep.subr.bf16.mxu1 %v4228_v15  ;;  %v4318_v15 = vld [vmem:[%s5926_s1 + $0x984] ss:$8 sps:$4 sm:$0xff]  }
 0x102   :  { %2861 = vmatmul.mubr.bf16.vlgmr.msra.gmra.mxu0 %v4217_v16  ;;  %v4313_v16 = vld [vmem:[%s5926_s1 + $0x880] ss:$8 sps:$4 sm:$0xff]  }
 0x103   :  { %2904 = vmatmul.mubr.bf16.vlgmr.msra.gmra.mxu1 %v4223_v18  ;;  %2915 = vmatpush1.bf16.msra.mxu0 %v4220_v17  ;;  %v4316_v17 = vld [vmem:[%s5926_s1 + $0x980] ss:$8 sps:$4 sm:$0xff]   ;;  %v4324_v18 = vld [vmem:[%s5926_s1 + $0xa74] ss:$8 sps:$4 sm:$0xff]  }
 0x104   :  { %2958 = vmatpush1.bf16.msra.mxu1 %v4226_v19  ;;  %2916 = vmatprep.subr.bf16.mxu0 %v4231_v20  ;;  %v4330_v19 = vld [vmem:[%s5926_s1 + $0xb74] ss:$8 sps:$4 sm:$0xff]   ;;  %v4319_v20 = vld [vmem:[%s5927_s0 + $0x40] ss:$100 sps:$4 sm:$0xff]  }
 0x105   :  { %2959 = vmatprep.subr.bf16.mxu1 %v4234_v21  ;;  %2946 = vmatprep.mubr.bf16.mxu0 %v4321_v22  ;;  %v4325_v21 = vld [vmem:[%s5927_s0 + $0x48] ss:$100 sps:$4 sm:$0xff]   ;;  %v4322_v22 = vld [vmem:[%s5926_s1 + $0xa70] ss:$8 sps:$4 sm:$0xff]  }
 0x106   :  { %2989 = vmatprep.mubr.bf16.mxu1 %v4327_v23  ;;  %v4328_v23 = vld [vmem:[%s5926_s1 + $0xb70] ss:$8 sps:$4 sm:$0xff]  }
 0x107   :  { %2917 = vmatpush1.bf16.msra.mxu0 %v4229_v24  ;;  %v4333_v24 = vld [vmem:[%s5926_s1 + $0xa64] ss:$8 sps:$4 sm:$0xff]  }
 0x108   :  { %2960 = vmatpush1.bf16.msra.mxu1 %v4232_v25  ;;  %2918 = vmatprep.subr.bf16.mxu0 %v4237_v26  ;;  %v4336_v25 = vld [vmem:[%s5926_s1 + $0xb64] ss:$8 sps:$4 sm:$0xff]   ;;  %v4423_v26 = vld [vmem:[%s5927_s0 + $0x54] ss:$100 sps:$4 sm:$0xff]  }
 0x109   :  { %2961 = vmatprep.subr.bf16.mxu1 %v4240_v27  ;;  %v4429_v27 = vld [vmem:[%s5927_s0 + $0x5c] ss:$100 sps:$4 sm:$0xff]  }
 0x10b   :  { %2919 = vmatpush1.bf16.msra.mxu0 %v4235_v28  ;;  %v4331_v28 = vld [vmem:[%s5926_s1 + $0xa60] ss:$8 sps:$4 sm:$0xff]  }
 0x10c   :  { %2962 = vmatpush1.bf16.msra.mxu1 %v4238_v29  ;;  %2920 = vmatprep.subr.bf16.mxu0 %v4243_v30  ;;  %v4334_v29 = vld [vmem:[%s5926_s1 + $0xb60] ss:$8 sps:$4 sm:$0xff]   ;;  %v4339_v30 = vld [vmem:[%s5926_s1 + $0xa54] ss:$8 sps:$4 sm:$0xff]  }
 0x10d   :  { %2963 = vmatprep.subr.bf16.mxu1 %v4246_v31  ;;  %v4342_v31 = vld [vmem:[%s5926_s1 + $0xb54] ss:$8 sps:$4 sm:$0xff]  }
 0x10f   :  { %2921 = vmatpush1.bf16.msra.mxu0 %v4241_v32  ;;  %v4337_v32 = vld [vmem:[%s5926_s1 + $0xa50] ss:$8 sps:$4 sm:$0xff]  }
 0x110   :  { %2964 = vmatpush1.bf16.msra.mxu1 %v4244_v33  ;;  %2922 = vmatprep.subr.bf16.mxu0 %v4249_v34  ;;  %v4340_v33 = vld [vmem:[%s5926_s1 + $0xb50] ss:$8 sps:$4 sm:$0xff]   ;;  %v4345_v34 = vld [vmem:[%s5926_s1 + $0xa44] ss:$8 sps:$4 sm:$0xff]  }
 0x111   :  { %2965 = vmatprep.subr.bf16.mxu1 %v4252_v35  ;;  %v4348_v35 = vld [vmem:[%s5926_s1 + $0xb44] ss:$8 sps:$4 sm:$0xff]  }
 0x113   :  { %2923 = vmatpush1.bf16.msra.mxu0 %v4247_v36  ;;  %v4343_v36 = vld [vmem:[%s5926_s1 + $0xa40] ss:$8 sps:$4 sm:$0xff]  }
 0x114   :  { %2966 = vmatpush1.bf16.msra.mxu1 %v4250_v37  ;;  %2924 = vmatprep.subr.bf16.mxu0 %v4255_v38  ;;  %v4346_v37 = vld [vmem:[%s5926_s1 + $0xb40] ss:$8 sps:$4 sm:$0xff]   ;;  %v4351_v38 = vld [vmem:[%s5926_s1 + $0xa34] ss:$8 sps:$4 sm:$0xff]  }
 0x115   :  { %2967 = vmatprep.subr.bf16.mxu1 %v4258_v39  ;;  %v4354_v39 = vld [vmem:[%s5926_s1 + $0xb34] ss:$8 sps:$4 sm:$0xff]  }
 0x117   :  { %2925 = vmatpush1.bf16.msra.mxu0 %v4253_v40  ;;  %v4349_v40 = vld [vmem:[%s5926_s1 + $0xa30] ss:$8 sps:$4 sm:$0xff]  }
 0x118   :  { %2968 = vmatpush1.bf16.msra.mxu1 %v4256_v41  ;;  %2926 = vmatprep.subr.bf16.mxu0 %v4261_v42  ;;  %v4352_v41 = vld [vmem:[%s5926_s1 + $0xb30] ss:$8 sps:$4 sm:$0xff]   ;;  %v4357_v42 = vld [vmem:[%s5926_s1 + $0xa24] ss:$8 sps:$4 sm:$0xff]  }
 0x119   :  { %2969 = vmatprep.subr.bf16.mxu1 %v4264_v43  ;;  %v4360_v43 = vld [vmem:[%s5926_s1 + $0xb24] ss:$8 sps:$4 sm:$0xff]  }
 0x11b   :  { %2927 = vmatpush1.bf16.msra.mxu0 %v4259_v44  ;;  %v4355_v44 = vld [vmem:[%s5926_s1 + $0xa20] ss:$8 sps:$4 sm:$0xff]  }
 0x11c   :  { %2970 = vmatpush1.bf16.msra.mxu1 %v4262_v45  ;;  %2928 = vmatprep.subr.bf16.mxu0 %v4267_v46  ;;  %v4358_v45 = vld [vmem:[%s5926_s1 + $0xb20] ss:$8 sps:$4 sm:$0xff]   ;;  %v4363_v46 = vld [vmem:[%s5926_s1 + $0xa14] ss:$8 sps:$4 sm:$0xff]  }
 0x11d   :  { %2971 = vmatprep.subr.bf16.mxu1 %v4270_v47  ;;  %v4366_v47 = vld [vmem:[%s5926_s1 + $0xb14] ss:$8 sps:$4 sm:$0xff]  }
 0x11f   :  { %2929 = vmatpush1.bf16.msra.mxu0 %v4265_v48  ;;  %v4361_v48 = vld [vmem:[%s5926_s1 + $0xa10] ss:$8 sps:$4 sm:$0xff]  }
 0x120   :  { %2972 = vmatpush1.bf16.msra.mxu1 %v4268_v49  ;;  %2930 = vmatprep.subr.bf16.mxu0 %v4273_v50  ;;  %v4364_v49 = vld [vmem:[%s5926_s1 + $0xb10] ss:$8 sps:$4 sm:$0xff]   ;;  %v4369_v50 = vld [vmem:[%s5926_s1 + $0xa04] ss:$8 sps:$4 sm:$0xff]  }
 0x121   :  { %2973 = vmatprep.subr.bf16.mxu1 %v4276_v51  ;;  %v4372_v51 = vld [vmem:[%s5926_s1 + $0xb04] ss:$8 sps:$4 sm:$0xff]  }
 0x123   :  { %2931 = vmatpush2.bf16.msra.mxu0 %v4271_v52  ;;  %v4367_v52 = vld [vmem:[%s5926_s1 + $0xa00] ss:$8 sps:$4 sm:$0xff]  }
 0x124   :  { %2974 = vmatpush2.bf16.msra.mxu1 %v4274_v53  ;;  %2932 = vmatprep.subr.bf16.mxu0 %v4279_v54  ;;  %v4370_v53 = vld [vmem:[%s5926_s1 + $0xb00] ss:$8 sps:$4 sm:$0xff]   ;;  %v4375_v54 = vld [vmem:[%s5926_s1 + $0xaf4] ss:$8 sps:$4 sm:$0xff]  }
 0x125   :  { %2975 = vmatprep.subr.bf16.mxu1 %v4282_v55  ;;  %v4378_v55 = vld [vmem:[%s5926_s1 + $0xbf4] ss:$8 sps:$4 sm:$0xff]  }
 0x127   :  { %2933 = vmatpush2.bf16.msra.mxu0 %v4277_v56  ;;  %v4373_v56 = vld [vmem:[%s5926_s1 + $0xaf0] ss:$8 sps:$4 sm:$0xff]  }
 0x128   :  { %2976 = vmatpush2.bf16.msra.mxu1 %v4280_v57  ;;  %2934 = vmatprep.subr.bf16.mxu0 %v4285_v58  ;;  %v4376_v57 = vld [vmem:[%s5926_s1 + $0xbf0] ss:$8 sps:$4 sm:$0xff]   ;;  %v4381_v58 = vld [vmem:[%s5926_s1 + $0xae4] ss:$8 sps:$4 sm:$0xff]  }
 0x129   :  { %2977 = vmatprep.subr.bf16.mxu1 %v4288_v59  ;;  %v4384_v59 = vld [vmem:[%s5926_s1 + $0xbe4] ss:$8 sps:$4 sm:$0xff]  }
 0x12b   :  { %2935 = vmatpush2.bf16.msra.mxu0 %v4283_v60  ;;  %v4379_v60 = vld [vmem:[%s5926_s1 + $0xae0] ss:$8 sps:$4 sm:$0xff]  }
 0x12c   :  { %2978 = vmatpush2.bf16.msra.mxu1 %v4286_v61  ;;  %2936 = vmatprep.subr.bf16.mxu0 %v4291_v62  ;;  %v4382_v61 = vld [vmem:[%s5926_s1 + $0xbe0] ss:$8 sps:$4 sm:$0xff]   ;;  %v4387_v62 = vld [vmem:[%s5926_s1 + $0xad4] ss:$8 sps:$4 sm:$0xff]  }
 0x12d   :  { %2979 = vmatprep.subr.bf16.mxu1 %v4294_v63  ;;  %v4390_v63 = vld [vmem:[%s5926_s1 + $0xbd4] ss:$8 sps:$4 sm:$0xff]  }
 0x12f   :  { %2937 = vmatpush2.bf16.msra.mxu0 %v4289_v0  ;;  %v4385_v0 = vld [vmem:[%s5926_s1 + $0xad0] ss:$8 sps:$4 sm:$0xff]  }
 0x130   :  { %2980 = vmatpush2.bf16.msra.mxu1 %v4292_v1  ;;  %2938 = vmatprep.subr.bf16.mxu0 %v4297_v2  ;;  %v4388_v1 = vld [vmem:[%s5926_s1 + $0xbd0] ss:$8 sps:$4 sm:$0xff]   ;;  %v4393_v2 = vld [vmem:[%s5926_s1 + $0xac4] ss:$8 sps:$4 sm:$0xff]  }
 0x131   :  { %2981 = vmatprep.subr.bf16.mxu1 %v4300_v3  ;;  %v4396_v3 = vld [vmem:[%s5926_s1 + $0xbc4] ss:$8 sps:$4 sm:$0xff]  }
 0x133   :  { %2939 = vmatpush2.bf16.msra.mxu0 %v4295_v4  ;;  %v4391_v4 = vld [vmem:[%s5926_s1 + $0xac0] ss:$8 sps:$4 sm:$0xff]  }
 0x134   :  { %2982 = vmatpush2.bf16.msra.mxu1 %v4298_v5  ;;  %2940 = vmatprep.subr.bf16.mxu0 %v4303_v6  ;;  %v4394_v5 = vld [vmem:[%s5926_s1 + $0xbc0] ss:$8 sps:$4 sm:$0xff]   ;;  %v4399_v6 = vld [vmem:[%s5926_s1 + $0xab4] ss:$8 sps:$4 sm:$0xff]  }
 0x135   :  { %2983 = vmatprep.subr.bf16.mxu1 %v4306_v7  ;;  %v4402_v7 = vld [vmem:[%s5926_s1 + $0xbb4] ss:$8 sps:$4 sm:$0xff]  }
 0x137   :  { %2941 = vmatpush2.bf16.msra.mxu0 %v4301_v8  ;;  %v4397_v8 = vld [vmem:[%s5926_s1 + $0xab0] ss:$8 sps:$4 sm:$0xff]  }
 0x138   :  { %2984 = vmatpush2.bf16.msra.mxu1 %v4304_v9  ;;  %2942 = vmatprep.subr.bf16.mxu0 %v4309_v10  ;;  %v4400_v9 = vld [vmem:[%s5926_s1 + $0xbb0] ss:$8 sps:$4 sm:$0xff]   ;;  %v4405_v10 = vld [vmem:[%s5926_s1 + $0xaa4] ss:$8 sps:$4 sm:$0xff]  }
 0x139   :  { %2985 = vmatprep.subr.bf16.mxu1 %v4312_v11  ;;  %v4408_v11 = vld [vmem:[%s5926_s1 + $0xba4] ss:$8 sps:$4 sm:$0xff]  }
 0x13b   :  { %2943 = vmatpush2.bf16.msra.mxu0 %v4307_v12  ;;  %v4403_v12 = vld [vmem:[%s5926_s1 + $0xaa0] ss:$8 sps:$4 sm:$0xff]  }
 0x13c   :  { %2986 = vmatpush2.bf16.msra.mxu1 %v4310_v13  ;;  %2944 = vmatprep.subr.bf16.mxu0 %v4315_v14  ;;  %v4406_v13 = vld [vmem:[%s5926_s1 + $0xba0] ss:$8 sps:$4 sm:$0xff]   ;;  %v4411_v14 = vld [vmem:[%s5926_s1 + $0xa94] ss:$8 sps:$4 sm:$0xff]  }
 0x13d   :  { %2987 = vmatprep.subr.bf16.mxu1 %v4318_v15  ;;  %v4414_v15 = vld [vmem:[%s5926_s1 + $0xb94] ss:$8 sps:$4 sm:$0xff]  }
 0x13f   :  { %2945 = vmatpush2.bf16.msra.mxu0 %v4313_v16  ;;  %v4409_v16 = vld [vmem:[%s5926_s1 + $0xa90] ss:$8 sps:$4 sm:$0xff]  }
 0x140   :  { %2988 = vmatpush2.bf16.msra.mxu1 %v4316_v17  ;;  %3000 = vmatprep.subr.bf16.mxu0 %v4324_v18  ;;  %v4412_v17 = vld [vmem:[%s5926_s1 + $0xb90] ss:$8 sps:$4 sm:$0xff]   ;;  %v4417_v18 = vld [vmem:[%s5926_s1 + $0xa84] ss:$8 sps:$4 sm:$0xff]  }
 0x141   :  { %3043 = vmatprep.subr.bf16.mxu1 %v4330_v19  ;;  %v4420_v19 = vld [vmem:[%s5926_s1 + $0xb84] ss:$8 sps:$4 sm:$0xff]  }
 0x142   :  { %2947 = vmatmul.mubr.bf16.vlgmr.msra.gmra.mxu0 %v4319_v20  ;;  %v4415_v20 = vld [vmem:[%s5926_s1 + $0xa80] ss:$8 sps:$4 sm:$0xff]  }
 0x143   :  { %2990 = vmatmul.mubr.bf16.vlgmr.msra.gmra.mxu1 %v4325_v21  ;;  %3001 = vmatpush1.bf16.msra.mxu0 %v4322_v22  ;;  %v4418_v21 = vld [vmem:[%s5926_s1 + $0xb80] ss:$8 sps:$4 sm:$0xff]   ;;  %v4426_v22 = vld [vmem:[%s5926_s1 + $0xc74] ss:$8 sps:$4 sm:$0xff]  }
 0x144   :  { %3044 = vmatpush1.bf16.msra.mxu1 %v4328_v23  ;;  %3002 = vmatprep.subr.bf16.mxu0 %v4333_v24  ;;  %v4421_v23 = vld [vmem:[%s5927_s0 + $0x50] ss:$100 sps:$4 sm:$0xff]   ;;  %v4427_v24 = vld [vmem:[%s5927_s0 + $0x58] ss:$100 sps:$4 sm:$0xff]  }
 0x145   :  { %3045 = vmatprep.subr.bf16.mxu1 %v4336_v25  ;;  %3032 = vmatprep.mubr.bf16.mxu0 %v4423_v26  ;;  %v4424_v25 = vld [vmem:[%s5926_s1 + $0xc70] ss:$8 sps:$4 sm:$0xff]   ;;  %v4432_v26 = vld [vmem:[%s5926_s1 + $0xc64] ss:$8 sps:$4 sm:$0xff]  }
 0x146   :  { %3075 = vmatprep.mubr.bf16.mxu1 %v4429_v27  ;;  %v4430_v27 = vld [vmem:[%s5926_s1 + $0xc60] ss:$8 sps:$4 sm:$0xff]  }
 0x147   :  { %3003 = vmatpush1.bf16.msra.mxu0 %v4331_v28  ;;  %v4456_v28 = vmov 0  }
 0x148   :  { %3046 = vmatpush1.bf16.msra.mxu1 %v4334_v29  ;;  %3004 = vmatprep.subr.bf16.mxu0 %v4339_v30  ;;  %v4435_v29 = vld [vmem:[%s5926_s1 + $0xc54] ss:$8 sps:$4 sm:$0xff]   ;;  %v4433_v30 = vld [vmem:[%s5926_s1 + $0xc50] ss:$8 sps:$4 sm:$0xff]  }
 0x149   :  { %3047 = vmatprep.subr.bf16.mxu1 %v4342_v31  ;;  %v4438_v31 = vld [vmem:[%s5926_s1 + $0xc44] ss:$8 sps:$4 sm:$0xff]  }
 0x14b   :  { %3005 = vmatpush1.bf16.msra.mxu0 %v4337_v32  ;;  %v4436_v32 = vld [vmem:[%s5926_s1 + $0xc40] ss:$8 sps:$4 sm:$0xff]  }
 0x14c   :  { %3048 = vmatpush1.bf16.msra.mxu1 %v4340_v33  ;;  %3006 = vmatprep.subr.bf16.mxu0 %v4345_v34  ;;  %v4441_v33 = vld [vmem:[%s5926_s1 + $0xc34] ss:$8 sps:$4 sm:$0xff]   ;;  %v4439_v34 = vld [vmem:[%s5926_s1 + $0xc30] ss:$8 sps:$4 sm:$0xff]  }
 0x14d   :  { %3049 = vmatprep.subr.bf16.mxu1 %v4348_v35  ;;  %v4444_v35 = vld [vmem:[%s5926_s1 + $0xc24] ss:$8 sps:$4 sm:$0xff]  }
 0x14f   :  { %3007 = vmatpush1.bf16.msra.mxu0 %v4343_v36  ;;  %v4442_v36 = vld [vmem:[%s5926_s1 + $0xc20] ss:$8 sps:$4 sm:$0xff]  }
 0x150   :  { %3050 = vmatpush1.bf16.msra.mxu1 %v4346_v37  ;;  %3008 = vmatprep.subr.bf16.mxu0 %v4351_v38  ;;  %v4447_v37 = vld [vmem:[%s5926_s1 + $0xc14] ss:$8 sps:$4 sm:$0xff]   ;;  %v4445_v38 = vld [vmem:[%s5926_s1 + $0xc10] ss:$8 sps:$4 sm:$0xff]  }
 0x151   :  { %3051 = vmatprep.subr.bf16.mxu1 %v4354_v39  ;;  %v4450_v39 = vld [vmem:[%s5926_s1 + $0xc04] ss:$8 sps:$4 sm:$0xff]  }
 0x153   :  { %3009 = vmatpush1.bf16.msra.mxu0 %v4349_v40  ;;  %v4448_v40 = vld [vmem:[%s5926_s1 + $0xc00] ss:$8 sps:$4 sm:$0xff]  }
 0x154   :  { %3052 = vmatpush1.bf16.msra.mxu1 %v4352_v41  ;;  %3010 = vmatprep.subr.bf16.mxu0 %v4357_v42  ;;  %v4451_v41 = vld [vmem:[%s5927_s0 + $0x60] ss:$100 sps:$4 sm:$0xff]   ;;  %v2604_v42 = vpop.f32.mrf.mxu0 }
 0x155   :  { %3053 = vmatprep.subr.bf16.mxu1 %v4360_v43  ;;  %v2647_v43 = vpop.f32.mrf.mxu1 }
 0x157   :  { %3011 = vmatpush1.bf16.msra.mxu0 %v4355_v44  ;;  %v2606_v44 = vpop.f32.mrf.mxu0 }
 0x158   :  { %3054 = vmatpush1.bf16.msra.mxu1 %v4358_v45  ;;  %3012 = vmatprep.subr.bf16.mxu0 %v4363_v46  ;;  %v2649_v45 = vpop.f32.mrf.mxu1 }
 0x159   :  { %3055 = vmatprep.subr.bf16.mxu1 %v4366_v47  ;;  %v2608_v46 = vpop.f32.mrf.mxu0 }
 0x15a   :  { %v2651_v47 = vpop.f32.mrf.mxu1 }
 0x15b   :  { %3013 = vmatpush1.bf16.msra.mxu0 %v4361_v48  ;;  %v2610_v48 = vpop.f32.mrf.mxu0 }
 0x15c   :  { %3056 = vmatpush1.bf16.msra.mxu1 %v4364_v49  ;;  %3014 = vmatprep.subr.bf16.mxu0 %v4369_v50  ;;  %v2653_v50 = vpop.f32.mrf.mxu1 }
 0x15d   :  { %3057 = vmatprep.subr.bf16.mxu1 %v4372_v51  ;;  %v2690_v49 = vpop.f32.mrf.mxu0 }
 0x15f   :  { %3015 = vmatpush1.bf16.msra.mxu0 %v4367_v52  ;;  %v2692_v51 = vpop.f32.mrf.mxu0  ;;  %v2733_v52 = vpop.f32.mrf.mxu1 }
 0x160   :  { %3058 = vmatpush1.bf16.msra.mxu1 %v4370_v53  ;;  %3016 = vmatprep.subr.bf16.mxu0 %v4375_v54 }
 0x161   :  { %3059 = vmatprep.subr.bf16.mxu1 %v4378_v55  ;;  %v2694_v53 = vpop.f32.mrf.mxu0  ;;  %v2735_v54 = vpop.f32.mrf.mxu1 }
 0x163   :  { %3017 = vmatpush2.bf16.msra.mxu0 %v4373_v56  ;;  %v2696_v55 = vpop.f32.mrf.mxu0  ;;  %v2737_v56 = vpop.f32.mrf.mxu1 }
 0x164   :  { %3060 = vmatpush2.bf16.msra.mxu1 %v4376_v57  ;;  %3018 = vmatprep.subr.bf16.mxu0 %v4381_v58 }
 0x165   :  { %3061 = vmatprep.subr.bf16.mxu1 %v4384_v59  ;;  %v2739_v58 = vpop.f32.mrf.mxu1 }
 0x167   :  { %3019 = vmatpush2.bf16.msra.mxu0 %v4379_v60 }
 0x168   :  { %3062 = vmatpush2.bf16.msra.mxu1 %v4382_v61  ;;  %3020 = vmatprep.subr.bf16.mxu0 %v4387_v62 }
 0x169   :  { %3063 = vmatprep.subr.bf16.mxu1 %v4390_v63 }
 0x16b   :  { %3021 = vmatpush2.bf16.msra.mxu0 %v4385_v0 }
 0x16c   :  { %3064 = vmatpush2.bf16.msra.mxu1 %v4388_v1  ;;  %3022 = vmatprep.subr.bf16.mxu0 %v4393_v2 }
 0x16d   :  { %3065 = vmatprep.subr.bf16.mxu1 %v4396_v3 }
 0x16f   :  { %3023 = vmatpush2.bf16.msra.mxu0 %v4391_v4 }
 0x170   :  { %3066 = vmatpush2.bf16.msra.mxu1 %v4394_v5  ;;  %3024 = vmatprep.subr.bf16.mxu0 %v4399_v6 }
 0x171   :  { %3067 = vmatprep.subr.bf16.mxu1 %v4402_v7  ;;  %v2648_v7 = vadd.f32 %v2647_v43, %v2604_v42 }
 0x173   :  { %3025 = vmatpush2.bf16.msra.mxu0 %v4397_v8 }
 0x174   :  { %3068 = vmatpush2.bf16.msra.mxu1 %v4400_v9  ;;  %3026 = vmatprep.subr.bf16.mxu0 %v4405_v10  ;;  %v2650_v10 = vadd.f32 %v2649_v45, %v2606_v44 }
 0x175   :  { %3069 = vmatprep.subr.bf16.mxu1 %v4408_v11  ;;  %v2691_v11 = vadd.f32 %v2690_v49, %v2648_v7 }
 0x177   :  { %3027 = vmatpush2.bf16.msra.mxu0 %v4403_v12  ;;  %v2652_v12 = vadd.f32 %v2651_v47, %v2608_v46 }
 0x178   :  { %3070 = vmatpush2.bf16.msra.mxu1 %v4406_v13  ;;  %3028 = vmatprep.subr.bf16.mxu0 %v4411_v14  ;;  %v2693_v14 = vadd.f32 %v2692_v51, %v2650_v10 }
 0x179   :  { %3071 = vmatprep.subr.bf16.mxu1 %v4414_v15  ;;  %v2695_v15 = vadd.f32 %v2694_v53, %v2652_v12 }
 0x17b   :  { %3029 = vmatpush2.bf16.msra.mxu0 %v4409_v16 }
 0x17c   :  { %3072 = vmatpush2.bf16.msra.mxu1 %v4412_v17  ;;  %3030 = vmatprep.subr.bf16.mxu0 %v4417_v18  ;;  %v2654_v17 = vadd.f32 %v2653_v50, %v2610_v48  ;;  %v2734_v18 = vadd.f32 %v2733_v52, %v2691_v11 }
 0x17d   :  { %3073 = vmatprep.subr.bf16.mxu1 %v4420_v19 }
 0x17f   :  { %3031 = vmatpush2.bf16.msra.mxu0 %v4415_v20 }
 0x180   :  { %3074 = vmatpush2.bf16.msra.mxu1 %v4418_v21  ;;  %3086 = vmatprep.subr.bf16.mxu0 %v4426_v22  ;;  %v2736_v21 = vadd.f32 %v2735_v54, %v2693_v14  ;;  %v2697_v22 = vadd.f32 %v2696_v55, %v2654_v17 }
 0x182   :  { %3033 = vmatmul.mubr.bf16.vlgmr.msra.gmra.mxu0 %v4421_v23  ;;  %v2776_v57 = vpop.f32.mrf.mxu0 }
 0x183   :  { %3076 = vmatmul.mubr.bf16.vlgmr.msra.gmra.mxu1 %v4427_v24  ;;  %3087 = vmatpush1.bf16.msra.mxu0 %v4424_v25  ;;  %v2819_v60 = vpop.f32.mrf.mxu1  ;;  %v2777_v23 = vadd.f32 %v2776_v57, %v2734_v18  ;;  %v2738_v24 = vadd.f32 %v2737_v56, %v2695_v15 }
 0x184   :  { %3118 = vmatprep.mubr.bf16.mxu0 %v4456_v28  ;;  %3088 = vmatprep.subr.bf16.mxu0 %v4432_v26  ;;  %v2778_v59 = vpop.f32.mrf.mxu0 }
 0x185   :  { %v2821_v62 = vpop.f32.mrf.mxu1  ;;  %v2779_v25 = vadd.f32 %v2778_v59, %v2736_v21 }
 0x186   :  { %v2780_v61 = vpop.f32.mrf.mxu0 }
 0x187   :  { %3089 = vmatpush1.bf16.msra.mxu0 %v4430_v27  ;;  %v2823_v0 = vpop.f32.mrf.mxu1  ;;  %v2781_v26 = vadd.f32 %v2780_v61, %v2738_v24 }
 0x188   :  { %3090 = vmatprep.subr.bf16.mxu0 %v4435_v29  ;;  %v2782_v63 = vpop.f32.mrf.mxu0  ;;  %v2740_v29 = vadd.f32 %v2739_v58, %v2697_v22 }
 0x189   :  { %v2825_v2 = vpop.f32.mrf.mxu1 }
 0x18b   :  { %3091 = vmatpush1.bf16.msra.mxu0 %v4433_v30  ;;  %v2820_v30 = vadd.f32 %v2819_v60, %v2777_v23 }
 0x18c   :  { %3092 = vmatprep.subr.bf16.mxu0 %v4438_v31  ;;  %v2822_v31 = vadd.f32 %v2821_v62, %v2779_v25 }
 0x18f   :  { %3093 = vmatpush1.bf16.msra.mxu0 %v4436_v32  ;;  %v2783_v32 = vadd.f32 %v2782_v63, %v2740_v29 }
 0x190   :  { %3094 = vmatprep.subr.bf16.mxu0 %v4441_v33 }
 0x193   :  { %3095 = vmatpush1.bf16.msra.mxu0 %v4439_v34  ;;  %v2824_v34 = vadd.f32 %v2823_v0, %v2781_v26 }
 0x194   :  { %3096 = vmatprep.subr.bf16.mxu0 %v4444_v35 }
 0x197   :  { %3097 = vmatpush1.bf16.msra.mxu0 %v4442_v36 }
 0x198   :  { %3098 = vmatprep.subr.bf16.mxu0 %v4447_v37 }
 0x19b   :  { %3099 = vmatpush1.bf16.msra.mxu0 %v4445_v38 }
 0x19c   :  { %3100 = vmatprep.subr.bf16.mxu0 %v4450_v39 }
 0x19f   :  { %3101 = vmatpush1.bf16.msra.mxu0 %v4448_v40  ;;  %v2826_v40 = vadd.f32 %v2825_v2, %v2783_v32 }
 0x1a2   :  { %3119 = vmatmul.mubr.bf16.vlgmr.msra.gmra.mxu0 %v4451_v41 }
 0x1c2   :  { %v2862_v1 = vpop.f32.mrf.mxu0 }
 0x1c3   :  { %v2905_v4 = vpop.f32.mrf.mxu1  ;;  %v2863_v33 = vadd.f32 %v2862_v1, %v2820_v30 }
 0x1c4   :  { %v2864_v3 = vpop.f32.mrf.mxu0 }
 0x1c5   :  { %v2907_v6 = vpop.f32.mrf.mxu1  ;;  %v2865_v37 = vadd.f32 %v2864_v3, %v2822_v31  ;;  %v2906_v41 = vadd.f32 %v2905_v4, %v2863_v33 }
 0x1c6   :  { %v2866_v5 = vpop.f32.mrf.mxu0 }
 0x1c7   :  { %v2909_v9 = vpop.f32.mrf.mxu1  ;;  %v2867_v38 = vadd.f32 %v2866_v5, %v2824_v34  ;;  %v2908_v43 = vadd.f32 %v2907_v6, %v2865_v37  ;;  %v5762_v5 = vld [vmem:[%s5928_s2 + $0x20] sm:$0xff]  ;;  %v5767_v6 = vld [vmem:[%s5928_s2 + $0x30] sm:$0xff] }
 0x1c8   :  { %v2868_v8 = vpop.f32.mrf.mxu0  ;;  %v3323_v17 = vrot.slane %v5762_v5, 5  ;;  %v3324_v18 = vrot.slane %v5767_v6, 5  ;;  %v3278_v6 = vld [vmem:[%s5928_s2] sm:$0xff] }
 0x1c9   :  { %v2911_v16 = vpop.f32.mrf.mxu1  ;;  %v2869_v44 = vadd.f32 %v2868_v8, %v2826_v40  ;;  %v2910_v46 = vadd.f32 %v2909_v9, %v2867_v38 }
 0x1cb   :  { %v2912_v51 = vadd.f32 %v2911_v16, %v2869_v44 }
 0x202   :  { %v2948_v13 = vpop.f32.mrf.mxu0 }
 0x203   :  { %v2991_v20 = vpop.f32.mrf.mxu1  ;;  %v2949_v45 = vadd.f32 %v2948_v13, %v2906_v41 }
 0x204   :  { %v2950_v19 = vpop.f32.mrf.mxu0 }
 0x205   :  { %v2993_v28 = vpop.f32.mrf.mxu1  ;;  %v2951_v49 = vadd.f32 %v2950_v19, %v2908_v43  ;;  %v2992_v52 = vadd.f32 %v2991_v20, %v2949_v45 }
 0x206   :  { %v2952_v27 = vpop.f32.mrf.mxu0 }
 0x207   :  { %v2995_v36 = vpop.f32.mrf.mxu1  ;;  %v2953_v50 = vadd.f32 %v2952_v27, %v2910_v46  ;;  %v2994_v55 = vadd.f32 %v2993_v28, %v2951_v49 }
 0x208   :  { %v2954_v35 = vpop.f32.mrf.mxu0 }
 0x209   :  { %v2997_v42 = vpop.f32.mrf.mxu1  ;;  %v2955_v56 = vadd.f32 %v2954_v35, %v2912_v51  ;;  %v2996_v58 = vadd.f32 %v2995_v36, %v2953_v50  ;;  %v5800_v35 = vsel %vm3258_vm4, %v3323_v17, %v3324_v18 }
 0x20b   :  { %v2998_v63 = vadd.f32 %v2997_v42, %v2955_v56 }
 0x242   :  { %v3034_v39 = vpop.f32.mrf.mxu0 }
 0x243   :  { %v3077_v48 = vpop.f32.mrf.mxu1  ;;  %v3035_v57 = vadd.f32 %v3034_v39, %v2992_v52 }
 0x244   :  { %v3036_v47 = vpop.f32.mrf.mxu0 }
 0x245   :  { %v3079_v54 = vpop.f32.mrf.mxu1  ;;  %v3037_v59 = vadd.f32 %v3036_v47, %v2994_v55  ;;  %v3078_v0 = vadd.f32 %v3077_v48, %v3035_v57 }
 0x246   :  { %v3038_v53 = vpop.f32.mrf.mxu0 }
 0x247   :  { %v3039_v60 = vadd.f32 %v3038_v53, %v2996_v58  ;;  %v3081_v62 = vpop.f32.mrf.mxu1  ;;  %v3080_v2 = vadd.f32 %v3079_v54, %v3037_v59 }
 0x248   :  { %v3040_v61 = vpop.f32.mrf.mxu0 }
 0x249   :  { %v3041_v3 = vadd.f32 %v3040_v61, %v2998_v63  ;;  %v3082_v7 = vadd.f32 %v3081_v62, %v3039_v60  ;;  %v3083_v8 = vpop.f32.mrf.mxu1 }
 0x24b   :  { %v3084_v19 = vadd.f32 %v3083_v8, %v3041_v3 }
 0x262   :  { %v3120_v1 = vpop.f32.mrf.mxu0 }
 0x263   :  { %v5757_v4 = vadd.f32 %v3120_v1, %v3078_v0 }
 0x264   :  { %v3122_v9 = vpop.f32.mrf.mxu0 }
 0x265   :  { %v5769_v10 = vadd.f32 %v3122_v9, %v3080_v2  ;;  %v3130_v11 = vsel %vm3129_vm1, %v5757_v4, -inf  ;;  %v3145_v12 = vsel %vm3144_vm2, %v5757_v4, -inf  ;;  %v3162_v13 = vsel %vm3161_vm0, %v5757_v4, -inf }
 0x266   :  { %v3124_v14 = vpop.f32.mrf.mxu0  ;;  %v3131_v15 = vrot.slane %v3130_v11, 4  ;;  %v3146_v16 = vrot.slane %v3145_v12, 4  ;;  %v3163_v27 = vrot.slane %v3162_v13, 4  ;;  %v3177_v39 = vsel %vm3176_vm3, %v5757_v4, -inf }
 0x267   :  { %v5779_v20 = vadd.f32 %v3124_v14, %v3082_v7  ;;  %v3137_v21 = vsel %vm3129_vm1, %v5769_v10, -inf  ;;  %v3152_v22 = vsel %vm3144_vm2, %v5769_v10, -inf  ;;  %v3169_v34 = vsel %vm3161_vm0, %v5769_v10, -inf }
 0x268   :  { %v3126_v23 = vpop.f32.mrf.mxu0  ;;  %v3132_v24 = vmax.f32 %v3130_v11, %v3131_v15  ;;  %v3138_v25 = vrot.slane %v3137_v21, 4  ;;  %v3147_v26 = vmax.f32 %v3145_v12, %v3146_v16  ;;  %v3153_v31 = vrot.slane %v3152_v22, 4 }
 0x269   :  { %v5787_v28 = vsel %vm3161_vm0, %v5779_v20, -inf  ;;  %v5791_v29 = vsel %vm3176_vm3, %v5779_v20, -inf  ;;  %v5793_v30 = vadd.f32 %v3126_v23, %v3084_v19  ;;  %v5805_v37 = vmax.f32 %v5757_v4, %v5779_v20 }
 0x26a   :  { %v3133_v32 = vrot.slane %v3132_v24, 2  ;;  %v3139_v33 = vmax.f32 %v3137_v21, %v3138_v25  ;;  %v3224_v36 = vrot.slane %v5787_v28, 4  ;;  %v3148_v38 = vrot.slane %v3147_v26, 2 }
 0x26b   :  { %v3238_v40 = vrot.slane %v5791_v29, 4  ;;  %v3230_v41 = vsel %vm3161_vm0, %v5793_v30, -inf  ;;  %v3154_v45 = vmax.f32 %v3152_v22, %v3153_v31  ;;  %v3164_v46 = vmax.f32 %v3162_v13, %v3163_v27 }
 0x26c   :  { %v3134_v42 = vmax.f32 %v3132_v24, %v3133_v32  ;;  %v3140_v43 = vrot.slane %v3139_v33, 2  ;;  %v3149_v44 = vmax.f32 %v3147_v26, %v3148_v38  ;;  %v3170_v47 = vrot.slane %v3169_v34, 4 }
 0x26d   :  { %v3178_v50 = vrot.slane %v3177_v39, 4  ;;  %v3184_v51 = vsel %vm3176_vm3, %v5769_v10, -inf  ;;  %v3155_v53 = vrot.slane %v3154_v45, 2  ;;  %v3165_v54 = vrot.slane %v3164_v46, 2 }
 0x26e   :  { %v3135_v48 = vrot.slane %v3134_v42, 1  ;;  %v3141_v49 = vmax.f32 %v3139_v33, %v3140_v43  ;;  %v3150_v52 = vrot.slane %v3149_v44, 1  ;;  %v3171_v55 = vmax.f32 %v3169_v34, %v3170_v47 }
 0x26f   :  { %v3244_v56 = vsel %vm3176_vm3, %v5793_v30, -inf  ;;  %v5818_v57 = vmax.f32 %v5769_v10, %v5793_v30  ;;  %v3179_v58 = vmax.f32 %v3177_v39, %v3178_v50  ;;  %v3185_v59 = vrot.slane %v3184_v51, 4 }
 0x270   :  { %v3142_v60 = vrot.slane %v3141_v49, 1  ;;  %v3156_v61 = vmax.f32 %v3154_v45, %v3155_v53  ;;  %v3166_v62 = vmax.f32 %v3164_v46, %v3165_v54  ;;  %v3172_v63 = vrot.slane %v3171_v55, 2 }
 0x271   :  { %v5820_v0 = vmax.f32 %v3134_v42, %v3135_v48  ;;  %v3180_v1 = vrot.slane %v3179_v58, 2  ;;  %v3186_v2 = vmax.f32 %v3184_v51, %v3185_v59  ;;  %v3193_v3 = vsel %vm3129_vm1, %v5779_v20, -inf }
 0x272   :  { %v5824_v7 = vmax.f32 %v3149_v44, %v3150_v52  ;;  %v3157_v8 = vrot.slane %v3156_v61, 1  ;;  %v3167_v9 = vrot.slane %v3166_v62, 1  ;;  %v3173_v11 = vmax.f32 %v3171_v55, %v3172_v63 }
 0x273   :  { %v3181_v12 = vmax.f32 %v3179_v58, %v3180_v1  ;;  %v3187_v13 = vrot.slane %v3186_v2, 2  ;;  %v3194_v14 = vrot.slane %v3193_v3, 4  ;;  %v3200_v15 = vsel %vm3129_vm1, %v5793_v30, -inf }
 0x274   :  { %v3231_v16 = vrot.slane %v3230_v41, 4  ;;  %v3245_v17 = vrot.slane %v3244_v56, 4  ;;  %v5828_v19 = vmax.f32 %v3141_v49, %v3142_v60  ;;  %v3201_v21 = vrot.slane %v3200_v15, 4 }
 0x275   :  { %v3174_v22 = vrot.slane %v3173_v11, 1  ;;  %v3188_v23 = vmax.f32 %v3186_v2, %v3187_v13  ;;  %v3195_v24 = vmax.f32 %v3193_v3, %v3194_v14  ;;  %v3207_v25 = vsel %vm3144_vm2, %v5779_v20, -inf }
 0x276   :  { %v5832_v26 = vmax.f32 %v3156_v61, %v3157_v8  ;;  %v3159_v27 = vmax.f32 %v5820_v0, %v5824_v7  ;;  %v3202_v31 = vmax.f32 %v3200_v15, %v3201_v21  ;;  %v3208_v32 = vrot.slane %v3207_v25, 4 }
 0x277   :  { %v5836_v33 = vmax.f32 %v3166_v62, %v3167_v9  ;;  %v3182_v34 = vrot.slane %v3181_v12, 1  ;;  %v3196_v38 = vrot.slane %v3195_v24, 2  ;;  %v3214_v39 = vsel %vm3144_vm2, %v5793_v30, -inf }
 0x278   :  { %v3203_v42 = vrot.slane %v3202_v31, 2  ;;  %v3209_v43 = vmax.f32 %v3207_v25, %v3208_v32  ;;  %v3215_v44 = vrot.slane %v3214_v39, 4  ;;  %v3225_v45 = vmax.f32 %v5787_v28, %v3224_v36  ;;  %v3285_v32 = vld [vmem:[%s5928_s2 + $0x38] sm:$0xff] }
 0x279   :  { %v5841_v46 = vmax.f32 %v3173_v11, %v3174_v22  ;;  %v3189_v47 = vrot.slane %v3188_v23, 1  ;;  %v3197_v48 = vmax.f32 %v3195_v24, %v3196_v38  ;;  %v3232_v49 = vmax.f32 %v3230_v41, %v3231_v16 }
 0x27a   :  { %v3204_v50 = vmax.f32 %v3202_v31, %v3203_v42  ;;  %v3210_v51 = vrot.slane %v3209_v43, 2  ;;  %v3216_v52 = vmax.f32 %v3214_v39, %v3215_v44  ;;  %v3226_v53 = vrot.slane %v3225_v45, 2 }
 0x27b   :  { %v3183_v54 = vmax.f32 %v3181_v12, %v3182_v34  ;;  %v3198_v55 = vrot.slane %v3197_v48, 1  ;;  %v3233_v58 = vrot.slane %v3232_v49, 2  ;;  %v3239_v59 = vmax.f32 %v5791_v29, %v3238_v40 }
 0x27c   :  { %v3205_v60 = vrot.slane %v3204_v50, 1  ;;  %v3211_v61 = vmax.f32 %v3209_v43, %v3210_v51  ;;  %v3217_v28 = vrot.slane %v3216_v52, 2  ;;  %v3227_v36 = vmax.f32 %v3225_v45, %v3226_v53  ;;  %v3288_v43 = vld [vmem:[%s5928_s2 + $0x50] sm:$0x3] }
 0x27d   :  { %v3190_v62 = vmax.f32 %v3188_v23, %v3189_v47  ;;  %v3234_v63 = vmax.f32 %v3232_v49, %v3233_v58  ;;  %v3240_v1 = vrot.slane %v3239_v59, 2  ;;  %v3246_v41 = vmax.f32 %v3244_v56, %v3245_v17  ;;  %v3283_v17 = vld [vmem:[%s5928_s2 + $0x28] sm:$0xff] }
 0x27e   :  { %v3160_v2 = vmax.f32 %v5828_v19, %v5832_v26  ;;  %v3212_v3 = vrot.slane %v3211_v61, 1  ;;  %v3218_v8 = vmax.f32 %v3216_v52, %v3217_v28  ;;  %v3228_v9 = vrot.slane %v3227_v36, 1  ;;  %v3286_v19 = vld [vmem:[%s5928_s2 + $0x40] sm:$0xff] }
 0x27f   :  { %v3199_v11 = vmax.f32 %v3197_v48, %v3198_v55  ;;  %v3235_v12 = vrot.slane %v3234_v63, 1  ;;  %v3241_v13 = vmax.f32 %v3239_v59, %v3240_v1  ;;  %v3247_v14 = vrot.slane %v3246_v41, 2 }
 0x280   :  { %v3191_v29 = vmax.f32 %v5836_v33, %v3183_v54  ;;  %v3206_v40 = vmax.f32 %v3204_v50, %v3205_v60  ;;  %v3213_v15 = vmax.f32 %v3211_v61, %v3212_v3  ;;  %v3219_v16 = vrot.slane %v3218_v8, 1  ;;  %v3287_v33 = vld [vmem:[%s5928_s2 + $0x48] sm:$0xff]  ;;  %v3289_v50 = vld [vmem:[%s5928_s2 + $0x58] sm:$0x3] }
 0x281   :  { %v3192_v21 = vmax.f32 %v5841_v46, %v3190_v62  ;;  %v3242_v22 = vrot.slane %v3241_v13, 1  ;;  %v3248_v23 = vmax.f32 %v3246_v41, %v3247_v14  ;;  %v3262_v56 = vrot.slane %v5805_v37, 4  ;;  %v3281_v62 = vld [vmem:[%s5928_s2 + $0x18] sm:$0xff] }
 0x282   :  { %v3220_v24 = vmax.f32 %v3218_v8, %v3219_v16  ;;  %v3229_v25 = vmax.f32 %v3227_v36, %v3228_v9  ;;  %v3236_v26 = vmax.f32 %v3234_v63, %v3235_v12  ;;  %v3269_v31 = vrot.slane %v5818_v57, 4  ;;  %v3280_v36 = vld [vmem:[%s5928_s2 + $0x10] sm:$0xff] }
 0x283   :  { %v3221_v34 = vmax.f32 %v3199_v11, %v3213_v15  ;;  %v3243_v38 = vmax.f32 %v3241_v13, %v3242_v22  ;;  %v3249_v39 = vrot.slane %v3248_v23, 1  ;;  %v3263_v42 = vmax.f32 %v5805_v37, %v3262_v56 }
 0x284   :  { %v3222_v44 = vmax.f32 %v3206_v40, %v3220_v24  ;;  %v3270_v45 = vmax.f32 %v5818_v57, %v3269_v31  ;;  %v3326_v46 = vrot.slane %v3283_v17, 5  ;;  %v3329_v47 = vrot.slane %v3286_v19, 5 }
 0x285   :  { %v3250_v48 = vmax.f32 %v3248_v23, %v3249_v39  ;;  %v3264_v49 = vrot.slane %v3263_v42, 2  ;;  %v3327_v51 = vrot.slane %v3285_v32, 5  ;;  %v3331_v52 = vrot.slane %v3287_v33, 5 }
 0x286   :  { %v3251_v53 = vmax.f32 %v3229_v25, %v3243_v38  ;;  %v3254_v37 = vsel %vm3253_vm5, %v3159_v27, %v3191_v29  ;;  %v3271_v54 = vrot.slane %v3270_v45, 2  ;;  %v3333_v55 = vrot.slane %v3288_v43, 5 }
 0x287   :  { %v3252_v58 = vmax.f32 %v3236_v26, %v3250_v48  ;;  %v3255_v57 = vsel %vm3253_vm5, %v3160_v2, %v3192_v21  ;;  %v3256_v59 = vsel %vm3129_vm1, %v3254_v37, %v3221_v34  ;;  %v3265_v60 = vmax.f32 %v3263_v42, %v3264_v49 }
 0x288   :  { %v3257_v61 = vsel %vm3129_vm1, %v3255_v57, %v3222_v44  ;;  %v3272_v28 = vmax.f32 %v3270_v45, %v3271_v54  ;;  %v3330_v0 = vsel %vm3258_vm4, %v3324_v18, %v3329_v47  ;;  %v3335_v7 = vrot.slane %v3289_v50, 5  ;;  %v3279_v18 = vld [vmem:[%s5928_s2 + $0x8] sm:$0xff] }
 0x289   :  { %v3266_v27 = vrot.slane %v3265_v60, 1  ;;  %v3328_v63 = vsel %vm3258_vm4, %v3326_v46, %v3327_v51  ;;  %v3332_v1 = vsel %vm3258_vm4, %v3327_v51, %v3331_v52  ;;  %v3259_v41 = vsel %vm3258_vm4, %v3256_v59, %v3251_v53 }
 0x28a   :  { %v3273_v2 = vrot.slane %v3272_v28, 1  ;;  %v3334_v3 = vsel %vm3258_vm4, %v3329_v47, %v3333_v55  ;;  %v3260_v8 = vsel %vm3258_vm4, %v3257_v61, %v3252_v58  ;;  %v3292_v11 = vmul.f32 %v3280_v36, %v5779_v20 }
 0x28b   :  { %v3267_v9 = vmax.f32 %v3265_v60, %v3266_v27  ;;  %v3345_v12 = vmul.f32 %v3330_v0, %v5779_v20  ;;  %v3293_v14 = vmul.f32 %v3281_v62, %v5793_v30  ;;  %v3336_v29 = vsel %vm3258_vm4, %v3331_v52, %v3335_v7 }
 0x28c   :  { %v3274_v13 = vmax.f32 %v3272_v28, %v3273_v2  ;;  %v3346_v40 = vmul.f32 %v3332_v1, %v5793_v30  ;;  %v3290_v16 = vmul.f32 %v3278_v6, %v5757_v4  ;;  %v3291_v21 = vmul.f32 %v3279_v18, %v5769_v10 }
 0x28d   :  { %v3276_v15 = vsel %vm3275_vm6, %v3259_v41, %v3267_v9  ;;  %v3343_v22 = vmul.f32 %v5800_v35, %v5757_v4  ;;  %v3344_v56 = vmul.f32 %v3328_v63, %v5769_v10  ;;  %v3374_v41 = vld [vmem:[%s5929_s3] sm:$0x3] }
 0x28e   :  { %v3277_v23 = vsel %vm3275_vm6, %v3260_v8, %v3274_v13  ;;  %v3294_v20 = vmul.f32 %v5762_v5, %v3276_v15  ;;  %v3347_v19 = vmul.f32 %v3334_v3, %v3276_v15  ;;  %v3296_v25 = vadd.f32 %v3292_v11, %v3290_v16 }
 0x28f   :  { %v3295_v24 = vmul.f32 %v3283_v17, %v3277_v23  ;;  %v3348_v26 = vmul.f32 %v3336_v29, %v3277_v23  ;;  %v3349_v30 = vadd.f32 %v3345_v12, %v3343_v22  ;;  %v3306_v32 = vadd.f32 %v3293_v14, %v3291_v21 }
 0x290   :  { %v3298_v31 = vsel %vm3297_vm7, %v3294_v20, 0.0  ;;  %v3350_v33 = vsel %vm3297_vm7, %v3347_v19, 0.0  ;;  %v3358_v34 = vadd.f32 %v3346_v40, %v3344_v56 }
 0x291   :  { %v3299_v38 = vadd.f32 %v3298_v31, %v3296_v25  ;;  %v3307_v4 = vsel %vm3297_vm7, %v3295_v24, 0.0  ;;  %v3351_v35 = vadd.f32 %v3350_v33, %v3349_v30  ;;  %v3359_v39 = vsel %vm3297_vm7, %v3348_v26, 0.0 }
 0x292   :  { %v3308_v5 = vadd.f32 %v3307_v4, %v3306_v32  ;;  %v3360_v42 = vadd.f32 %v3359_v39, %v3358_v34 }
 0x293   :  { %v3300_v10 = vrot.slane %v3299_v38, 4  ;;  %v3352_v43 = vrot.slane %v3351_v35, 4 }
 0x294   :  { %v3309_v17 = vrot.slane %v3308_v5, 4  ;;  %v3361_v44 = vrot.slane %v3360_v42, 4 }
 0x295   :  { %v3301_v45 = vadd.f32 %v3300_v10, %v3299_v38  ;;  %v3353_v46 = vadd.f32 %v3352_v43, %v3351_v35 }
 0x296   :  { %v3310_v47 = vadd.f32 %v3309_v17, %v3308_v5  ;;  %v3362_v48 = vadd.f32 %v3361_v44, %v3360_v42 }
 0x297   :  { %v3302_v49 = vrot.slane %v3301_v45, 2  ;;  %v3354_v50 = vrot.slane %v3353_v46, 2 }
 0x298   :  { %v3311_v51 = vrot.slane %v3310_v47, 2  ;;  %v3363_v52 = vrot.slane %v3362_v48, 2 }
 0x299   :  { %v3303_v53 = vadd.f32 %v3302_v49, %v3301_v45  ;;  %v3355_v37 = vadd.f32 %v3354_v50, %v3353_v46 }
 0x29a   :  { %v3312_v54 = vadd.f32 %v3311_v51, %v3310_v47  ;;  %v3364_v55 = vadd.f32 %v3363_v52, %v3362_v48 }
 0x29b   :  { %v3304_v58 = vrot.slane %v3303_v53, 1  ;;  %v3356_v57 = vrot.slane %v3355_v37, 1 }
 0x29c   :  { %v3313_v59 = vrot.slane %v3312_v54, 1  ;;  %v3365_v60 = vrot.slane %v3364_v55, 1 }
 0x29d   :  { %v3305_v61 = vadd.f32 %v3304_v58, %v3303_v53  ;;  %v3357_v28 = vadd.f32 %v3356_v57, %v3355_v37 }
 0x29e   :  { %v3314_v36 = vadd.f32 %v3313_v59, %v3312_v54  ;;  %v3366_v0 = vadd.f32 %v3365_v60, %v3364_v55 }
 0x29f   :  { %v3367_v7 = vsel %vm3253_vm5, %v3305_v61, %v3357_v28 }
 0x2a0   :  { %v3368_v27 = vsel %vm3253_vm5, %v3314_v36, %v3366_v0  ;;  %v3369_v62 = vsel %vm3129_vm1, %v3367_v7, 0.0 }
 0x2a1   :  { %v3370_v63 = vsel %vm3129_vm1, %v3368_v27, 0.0 }
 0x2a2   :  { %v3371_v1 = vadd.f32 %v3370_v63, %v3369_v62 }
 0x2a4   :  { %3372 = vadd.xlane.f32.xlu0 %v3371_v1 }
 0x32d   :  { %v3373_v2 = vpop.xlane.xlu0 %3372 }
 0x32e   :  { %v3375_v6 = vadd.f32 %v3374_v41, %v3373_v2 }
 0x330   :  { %v3813_v18 = vmul.f32 -1.442695, %v3375_v6 }
 0x332   :  { %4452 = vpow2.f32 %v3813_v18 }
 0x33f   :  { %v4453_v3 = vpop.eup %4452 }
 0x340   :  { %v3379_v8 = vadd.f32 1.0, %v4453_v3 }
 0x342   :  { %4454 = vrcp.f32 %v3379_v8 }
 0x34f   :  { %v4455_v9 = vpop.eup %4454 }
 0x350   :  { %3383 = vst.msk [vmem:[%s5930_s4] sm:$0x3] %vm3382_vm8, %v4455_v9 }

</bundles_post_ra>
